<compile_context>
chip_gen: v7x
topology: tpu7x:2x2x1
jax: 0.10.0
libtpu: 0.0.40
codegen_flags: <defaults>
</compile_context>

<pallas_src>
import functools
import math

import jax
import jax.numpy as jnp
from jax.experimental import pallas as pl
from jax.experimental.pallas import tpu as pltpu

CHANNEL = 64
LATENT = 32
K = 4
STRIDE = 2
PAD = 1
NEG_SLOPE = 0.2
BN_EPS = 1e-5


def _round_up(x, m):
    return (x + m - 1) // m * m


def _leaky(y):
    return jnp.where(y > 0, y, NEG_SLOPE * y)


# ----------------------------------------------------------------------------
# Pallas kernel 1: fused bf16 matmul (MXU) + shift + activation
# (BN / bias scale is pre-folded into the weight columns, so the epilogue is
#  just an add + activation; scale input stream removed.)
# ----------------------------------------------------------------------------
def _matmul_shift_act_kernel(p_ref, w_ref, shift_ref, o_ref, *, activation):
    y = jnp.dot(p_ref[...], w_ref[...], preferred_element_type=jnp.float32)
    y = y + shift_ref[...]
    if activation == "leaky_relu":
        y = _leaky(y)
    elif activation == "sigmoid":
        y = jax.nn.sigmoid(y)
    o_ref[...] = y.astype(o_ref.dtype)


def fused_matmul(p, w, shift, activation="none", out_dtype=jnp.bfloat16):
    """p: (M, K), w: (K, N), shift: (N,). Returns act(p@w + shift)[:M, :N].

    Inputs are padded (M -> mult of 16, K/N -> mult of 128), cast to bf16 and
    run through one Pallas call with a 2-D parallel (M, N) grid and a full-K
    tile. Output is lane-dense (padded N) and emitted in `out_dtype`."""
    M, Kd = p.shape
    _, N = w.shape

    Kp = _round_up(Kd, 128)            # single full-K tile
    Np = _round_up(N, 128)             # lane-dense output (no masked stores)
    tn = Np if Np <= 256 else 128

    Mp = _round_up(M, 16)              # mult of 16 -> native bf16 sublane tile
    tm = min(512, Mp)
    if Mp // tm < 2 and Mp >= 32:      # give v7x's 2nd TensorCore a block
        tm = _round_up(Mp // 2, 16)
    # VMEM guard (matters only if CHANNEL is scaled back up toward 512):
    # keep the bf16 P tile under ~4 MiB; proper K tiling is a TODO at 512.
    while tm > 16 and tm * Kp * 2 > 4 * 1024 * 1024:
        tm = max(16, (tm // 2 // 16) * 16)
    Mp = _round_up(Mp, tm)

    p_pad = jnp.pad(p.astype(jnp.bfloat16), ((0, Mp - M), (0, Kp - Kd)))
    w_pad = jnp.pad(w.astype(jnp.bfloat16), ((0, Kp - Kd), (0, Np - N)))
    shift_pad = jnp.pad(shift.astype(jnp.float32), (0, Np - N)).reshape(1, Np)

    grid = (Mp // tm, Np // tn)
    out = pl.pallas_call(
        functools.partial(_matmul_shift_act_kernel, activation=activation),
        out_shape=jax.ShapeDtypeStruct((Mp, Np), out_dtype),
        grid_spec=pltpu.PrefetchScalarGridSpec(
            num_scalar_prefetch=0,
            grid=grid,
            in_specs=[
                pl.BlockSpec((tm, Kp), lambda i, j: (i, 0)),
                pl.BlockSpec((Kp, tn), lambda i, j: (0, j)),
                pl.BlockSpec((1, tn), lambda i, j: (0, j)),
            ],
            out_specs=pl.BlockSpec((tm, tn), lambda i, j: (i, j)),
        ),
        compiler_params=pltpu.CompilerParams(
            dimension_semantics=("parallel", "parallel")),
    )(p_pad, w_pad, shift_pad)
    return out[:M, :N]


# ----------------------------------------------------------------------------
# Pallas kernel 2: fused latent chain (e4 -> mean/logvar -> reparameterize ->
# fc -> d1 center-tap), all VMEM-resident, single launch, no grid.
# ----------------------------------------------------------------------------
def _latent_kernel(h3_ref, w4_ref, s4_ref, wm_ref, bm_ref, wl_ref, bl_ref,
                   eps_ref, wfc_ref, bfc_ref, wd1_ref, sd1_ref,
                   g1_ref, mu_ref, lv_ref):
    # e4: Conv3d(k=4,s=2,p=1) on a 2^3 input == matmul over its 8 valid taps.
    h4 = jnp.dot(h3_ref[...], w4_ref[...], preferred_element_type=jnp.float32)
    h4 = _leaky(h4 + s4_ref[...])
    h4b = h4.astype(jnp.bfloat16)
    # latent heads (separate tiny matmuls -> no lane slicing needed)
    mu = jnp.dot(h4b, wm_ref[...], preferred_element_type=jnp.float32) + bm_ref[...]
    lv = jnp.dot(h4b, wl_ref[...], preferred_element_type=jnp.float32) + bl_ref[...]
    mu_ref[...] = mu
    lv_ref[...] = lv
    # reparameterize
    z = mu + jnp.exp(0.5 * lv) * eps_ref[...]
    # decoder fc
    fc = jnp.dot(z.astype(jnp.bfloat16), wfc_ref[...],
                 preferred_element_type=jnp.float32) + bfc_ref[...]
    fc = _leaky(fc)
    # d1: ConvTranspose3d(k=4,s=2,p=1) on a 1^3 input == center 2^3-tap matmul
    g1 = jnp.dot(fc.astype(jnp.bfloat16), wd1_ref[...],
                 preferred_element_type=jnp.float32) + sd1_ref[...]
    g1_ref[...] = _leaky(g1).astype(g1_ref.dtype)


def latent_block(params, h3_flat, eps):
    """h3_flat: (B, 8*C2) bf16 (flattened (B,2,2,2,C2) e3 output).
    Returns g1_flat (B, 8*C2) bf16 [(rd,rh,rw,cout) cols], mu, logvar f32."""
    C, C2 = CHANNEL, CHANNEL // 2
    B = h3_flat.shape[0]

    # e4 weight reduced to the 8 taps that see real data (pad=1 around a 2^3
    # input): kernel index k in {1,2} per dim <-> input position k-1.
    s4, sh4 = _fold_bn(params["e4_b"], params["bn4"], C)
    w4 = jnp.transpose(params["e4_w"][:, :, 1:3, 1:3, 1:3],
                       (2, 3, 4, 1, 0)).reshape(8 * C2, C)
    w4 = (w4 * s4[None, :]).astype(jnp.bfloat16)

    # d1 weight reduced to the center taps: output phase r uses kernel index
    # r+1 per dim (1^3 input); columns ordered (rd, rh, rw, cout).
    s1, sh1 = _fold_bn(params["d1_b"], params["dbn1"], C2)
    wd1 = jnp.transpose(params["d1_w"][:, :, 1:3, 1:3, 1:3],
                        (0, 2, 3, 4, 1)).reshape(C, 8 * C2)
    wd1 = (wd1 * jnp.tile(s1, 8)[None, :]).astype(jnp.bfloat16)
    sd1 = jnp.tile(sh1, 8)

    args = (
        h3_flat.astype(jnp.bfloat16),
        w4, sh4.reshape(1, C).astype(jnp.float32),
        params["mean_w"].T.astype(jnp.bfloat16),
        params["mean_b"].reshape(1, LATENT).astype(jnp.float32),
        params["logvar_w"].T.astype(jnp.bfloat16),
        params["logvar_b"].reshape(1, LATENT).astype(jnp.float32),
        eps.astype(jnp.float32),
        params["fc_w"].T.astype(jnp.bfloat16),
        params["fc_b"].reshape(1, C).astype(jnp.float32),
        wd1, sd1.reshape(1, 8 * C2).astype(jnp.float32),
    )
    g1, mu, lv = pl.pallas_call(
        _latent_kernel,
        out_shape=(
            jax.ShapeDtypeStruct((B, 8 * C2), jnp.bfloat16),
            jax.ShapeDtypeStruct((B, LATENT), jnp.float32),
            jax.ShapeDtypeStruct((B, LATENT), jnp.float32),
        ),
    )(*args)
    return g1, mu, lv


# ----------------------------------------------------------------------------
# im2col / weight-prep glue (plain JAX; the hot path is the Pallas kernels)
# ----------------------------------------------------------------------------
def extract_patches(x, k, stride, pad):
    """x: (N, D, H, W, C) -> patches (N*Do*Ho*Wo, k^3*C), row order (kd,kh,kw,C)."""
    xp = jnp.pad(x, ((0, 0), (pad, pad), (pad, pad), (pad, pad), (0, 0)))
    N, D, H, W, C = xp.shape
    Do = (D - k) // stride + 1
    Ho = (H - k) // stride + 1
    Wo = (W - k) // stride + 1
    pieces = []
    for kd in range(k):
        for kh in range(k):
            for kw in range(k):
                pieces.append(xp[:, kd:kd + stride * Do:stride,
                                 kh:kh + stride * Ho:stride,
                                 kw:kw + stride * Wo:stride, :])
    pat = jnp.stack(pieces, axis=4)  # (N, Do, Ho, Wo, k^3, C)
    pat = pat.reshape(N * Do * Ho * Wo, k * k * k * C)
    return pat, (N, Do, Ho, Wo)


def _fold_bn(bias, bn, cout):
    if bn is None:
        return jnp.ones((cout,), jnp.float32), bias
    gamma, beta, mean, var = bn
    scale = gamma / jnp.sqrt(var + BN_EPS)
    shift = (bias - mean) * scale + beta
    return scale, shift


def conv3d(x, w_pt, bias, bn=None, activation="leaky_relu",
           out_dtype=jnp.bfloat16):
    """PyTorch Conv3d(k=4, s=2, p=1). w_pt: (Cout, Cin, 4, 4, 4)."""
    cout = w_pt.shape[0]
    w_mat = jnp.transpose(w_pt, (2, 3, 4, 1, 0)).reshape(-1, cout)
    scale, shift = _fold_bn(bias, bn, cout)
    if bn is not None:
        w_mat = w_mat * scale[None, :]           # fold BN scale into weights
    pat, (N, Do, Ho, Wo) = extract_patches(x.astype(jnp.bfloat16), K, STRIDE, PAD)
    y = fused_matmul(pat, w_mat, shift, activation, out_dtype)
    return y.reshape(N, Do, Ho, Wo, cout)


def _polyphase_weight(w_pt):
    """ConvTranspose3d(k=4,s=2,p=1) weight (Cin, Cout, 4, 4, 4) -> combined
    stride-1 weight (27*Cin, 8*Cout): 3x3x3 taps (offsets -1,0,+1) x 8 output
    phases. Per dim, output o = 2m+r reads x[m-1+ti] with original kernel index
    k = 3 - 2*ti + r (zero contribution when k is outside [0,3])."""
    cin, cout = w_pt.shape[0], w_pt.shape[1]
    ti = jnp.arange(3)[:, None]           # tap index
    r = jnp.arange(2)[None, :]            # output parity (phase)
    kraw = 3 - 2 * ti + r                 # (3, 2) original kernel index
    valid = (kraw >= 0) & (kraw <= 3)
    kidx = jnp.clip(kraw, 0, 3)
    wt = jnp.transpose(w_pt, (2, 3, 4, 0, 1))   # (4, 4, 4, Cin, Cout)
    wg = wt[kidx[:, :, None, None, None, None],
            kidx[None, None, :, :, None, None],
            kidx[None, None, None, None, :, :]]  # (3,2,3,2,3,2,Cin,Cout)
    m = (valid[:, :, None, None, None, None]
         & valid[None, None, :, :, None, None]
         & valid[None, None, None, None, :, :])
    wg = wg * m[..., None, None]
    # (td, rd, th, rh, tw, rw, Cin, Cout) -> (td, th, tw, Cin, rd, rh, rw, Cout)
    return jnp.transpose(wg, (0, 2, 4, 6, 1, 3, 5, 7)).reshape(27 * cin,
                                                               8 * cout)


def conv_transpose3d(x, w_pt, bias, bn=None, activation="leaky_relu",
                     out_dtype=jnp.bfloat16):
    """PyTorch ConvTranspose3d(k=4, s=2, p=1). w_pt: (Cin, Cout, 4, 4, 4).

    Polyphase lowering: all 8 output phases come from ONE matmul over shared
    3x3x3 stride-1 patches of the (un-dilated) input with the combined weight,
    then a (bf16) depth-to-space interleave."""
    cout = w_pt.shape[1]
    scale, shift = _fold_bn(bias, bn, cout)
    w_comb = _polyphase_weight(w_pt)                      # (27*Cin, 8*Cout)
    if bn is not None:
        w_comb = w_comb * jnp.tile(scale, 8)[None, :]     # fold BN scale
    shift8 = jnp.tile(shift, 8)
    pat, (N, Do, Ho, Wo) = extract_patches(x.astype(jnp.bfloat16), 3, 1, 1)
    y = fused_matmul(pat, w_comb, shift8, activation, out_dtype)  # (M, 8*Cout)
    y = y.reshape(N, Do, Ho, Wo, 2, 2, 2, cout)
    y = jnp.transpose(y, (0, 1, 4, 2, 5, 3, 6, 7))
    return y.reshape(N, 2 * Do, 2 * Ho, 2 * Wo, cout)


# ----------------------------------------------------------------------------
# Parameters (deterministic synthetic init)
# ----------------------------------------------------------------------------
def init_params(key):
    C8, C4, C2, C = CHANNEL // 8, CHANNEL // 4, CHANNEL // 2, CHANNEL

    def w(k, shape):
        fan_in = max(1, math.prod(shape[1:]))
        return jax.random.normal(k, shape, jnp.float32) / jnp.sqrt(fan_in)

    def b(k, n):
        return 0.01 * jax.random.normal(k, (n,), jnp.float32)

    def bn(n):
        return (jnp.ones((n,), jnp.float32), jnp.zeros((n,), jnp.float32),
                jnp.zeros((n,), jnp.float32), jnp.ones((n,), jnp.float32))

    ks = jax.random.split(key, 24)
    p = {
        # encoder (Conv3d weights: (Cout, Cin, 4, 4, 4))
        "e1_w": w(ks[0], (C8, 1, K, K, K)), "e1_b": b(ks[1], C8),
        "e2_w": w(ks[2], (C4, C8, K, K, K)), "e2_b": b(ks[3], C4), "bn2": bn(C4),
        "e3_w": w(ks[4], (C2, C4, K, K, K)), "e3_b": b(ks[5], C2), "bn3": bn(C2),
        "e4_w": w(ks[6], (C, C2, K, K, K)), "e4_b": b(ks[7], C), "bn4": bn(C),
        # latent heads (Linear: (out, in))
        "mean_w": w(ks[8], (LATENT, C)), "mean_b": b(ks[9], LATENT),
        "logvar_w": w(ks[10], (LATENT, C)), "logvar_b": b(ks[11], LATENT),
        # decoder fc
        "fc_w": w(ks[12], (C, LATENT)), "fc_b": b(ks[13], C),
        # decoder (ConvTranspose3d weights: (Cin, Cout, 4, 4, 4))
        "d1_w": w(ks[14], (C, C2, K, K, K)), "d1_b": b(ks[15], C2), "dbn1": bn(C2),
        "d2_w": w(ks[16], (C2, C4, K, K, K)), "d2_b": b(ks[17], C4), "dbn2": bn(C4),
        "d3_w": w(ks[18], (C4, C8, K, K, K)), "d3_b": b(ks[19], C8), "dbn3": bn(C8),
        "d4_w": w(ks[20], (C8, 1, K, K, K)), "d4_b": b(ks[21], 1),
    }
    return p


# ----------------------------------------------------------------------------
# Forward pass (7 pallas_calls total: e1, e2, e3, fused-latent, d2, d3, d4)
# ----------------------------------------------------------------------------
def var_auto_enc_forward(params, x_ncdhw, eps):
    x = jnp.transpose(x_ncdhw, (0, 2, 3, 4, 1))  # NCDHW -> NDHWC

    # encoder (bf16 intermediates)
    h1 = conv3d(x, params["e1_w"], params["e1_b"], bn=None)
    h2 = conv3d(h1, params["e2_w"], params["e2_b"], bn=params["bn2"])
    h3 = conv3d(h2, params["e3_w"], params["e3_b"], bn=params["bn3"])

    # fused latent chain: e4 -> mean/logvar -> reparameterize -> fc -> d1
    h3_flat = h3.reshape(h3.shape[0], -1)            # (B, 8*C2), bf16
    g1_flat, mu, logvar = latent_block(params, h3_flat, eps)
    g1 = g1_flat.reshape(-1, 2, 2, 2, CHANNEL // 2)  # (B, 2, 2, 2, C2)

    # decoder (bf16 intermediates, f32 only for the final sigmoid output)
    g2 = conv_transpose3d(g1, params["d2_w"], params["d2_b"], bn=params["dbn2"])
    g3 = conv_transpose3d(g2, params["d3_w"], params["d3_b"], bn=params["dbn3"])
    recon = conv_transpose3d(g3, params["d4_w"], params["d4_b"], bn=None,
                             activation="sigmoid", out_dtype=jnp.float32)

    recon = jnp.transpose(recon, (0, 4, 1, 2, 3))    # NDHWC -> NCDHW
    return recon, mu, logvar


if __name__ == "__main__":
    key = jax.random.PRNGKey(0)
    pkey, xkey, ekey = jax.random.split(key, 3)
    params = init_params(pkey)

    # PyTorch-convention input: (N, C=1, D, H, W)
    x = jax.random.normal(xkey, (2, 1, 16, 16, 16), jnp.float32)
    eps = jax.random.normal(ekey, (2, LATENT), jnp.float32)

    recon, mu, logvar = jax.jit(var_auto_enc_forward)(params, x, eps)
    jax.block_until_ready((recon, mu, logvar))

    assert recon.shape == (2, 1, 16, 16, 16), recon.shape
    assert mu.shape == (2, LATENT) and logvar.shape == (2, LATENT)
    assert bool(jnp.all(jnp.isfinite(recon)))
    assert bool(jnp.all(jnp.isfinite(mu))) and bool(jnp.all(jnp.isfinite(logvar)))
    assert bool(jnp.all((recon >= 0) & (recon <= 1)))
    print("KERNEL_OK")
</pallas_src>

<mosaic_0001>
module attributes {stable_mosaic.version = 11 : i64} {
  func.func @_matmul_shift_act_kernel(%arg0: i32, %arg1: i32, %arg2: memref<512x128xbf16, #tpu.memory_space<vmem>>, %arg3: memref<128x128xbf16, #tpu.memory_space<vmem>>, %arg4: memref<1x128xf32, #tpu.memory_space<vmem>>, %arg5: memref<512x128xbf16, #tpu.memory_space<vmem>>) attributes {dimension_semantics = [#tpu.dimension_semantics<parallel>, #tpu.dimension_semantics<parallel>], iteration_bounds = array<i64: 2, 1>, scalar_prefetch = 0 : i64, scratch_operands = 0 : i64, tpu.core_type = #tpu.core_type<tc>, window_params = [{transform_indices = @transform_0, window_bounds = array<i64: 512, 128>}, {transform_indices = @transform_1, window_bounds = array<i64: 128, 128>}, {transform_indices = @transform_2, window_bounds = array<i64: 1, 128>}, {transform_indices = @transform_3, window_bounds = array<i64: 512, 128>}]} {
    %c0 = arith.constant 0 : index
    %c0_0 = arith.constant 0 : index
    %0 = vector.load %arg2[%c0, %c0_0] : memref<512x128xbf16, #tpu.memory_space<vmem>>, vector<512x128xbf16>
    %c0_1 = arith.constant 0 : index
    %c0_2 = arith.constant 0 : index
    %1 = vector.load %arg3[%c0_1, %c0_2] : memref<128x128xbf16, #tpu.memory_space<vmem>>, vector<128x128xbf16>
    %cst = arith.constant dense<0.000000e+00> : vector<512x128xf32>
    %2 = tpu.matmul %0, %1, %cst {dimension_numbers = #tpu.dot_dimension_numbers<[1], [0], [0], [1], [0, 0, 1, 1], [], []>} : vector<512x128xbf16>, vector<128x128xbf16>, vector<512x128xf32> -> vector<512x128xf32>
    %c0_3 = arith.constant 0 : index
    %c0_4 = arith.constant 0 : index
    %3 = vector.load %arg4[%c0_3, %c0_4] : memref<1x128xf32, #tpu.memory_space<vmem>>, vector<1x128xf32>
    %4 = vector.broadcast %3 : vector<1x128xf32> to vector<512x128xf32>
    %5 = arith.addf %2, %4 : vector<512x128xf32>
    %cst_5 = arith.constant 0.000000e+00 : f32
    %6 = vector.broadcast %cst_5 : f32 to vector<512x128xf32>
    %7 = arith.cmpf ogt, %5, %6 : vector<512x128xf32>
    %cst_6 = arith.constant 2.000000e-01 : f32
    %8 = vector.broadcast %cst_6 : f32 to vector<512x128xf32>
    %9 = arith.mulf %8, %5 : vector<512x128xf32>
    %10 = arith.select %7, %5, %9 : vector<512x128xi1>, vector<512x128xf32>
    %11 = arith.truncf %10 : vector<512x128xf32> to vector<512x128xbf16>
    %c0_7 = arith.constant 0 : index
    %c0_8 = arith.constant 0 : index
    %12 = vector.load %arg5[%c0_7, %c0_8] : memref<512x128xbf16, #tpu.memory_space<vmem>>, vector<512x128xbf16>
    tpu.vector_store %arg5[%c0_7, %c0_8], %11 {strides = array<i32>} : memref<512x128xbf16, #tpu.memory_space<vmem>>, vector<512x128xbf16>,
    return
  }
  func.func @transform_0(%arg0: i32, %arg1: i32) -> (i32, i32) {
    %c0_i32 = arith.constant 0 : i32
    %c0_i32_0 = arith.constant 0 : i32
    return %arg0, %c0_i32 : i32, i32
  }
  func.func @transform_1(%arg0: i32, %arg1: i32) -> (i32, i32) {
    %c0_i32 = arith.constant 0 : i32
    %c0_i32_0 = arith.constant 0 : i32
    return %c0_i32, %arg1 : i32, i32
  }
  func.func @transform_2(%arg0: i32, %arg1: i32) -> (i32, i32) {
    %c0_i32 = arith.constant 0 : i32
    %c0_i32_0 = arith.constant 0 : i32
    return %c0_i32, %arg1 : i32, i32
  }
  func.func @transform_3(%arg0: i32, %arg1: i32) -> (i32, i32) {
    %c0_i32 = arith.constant 0 : i32
    return %arg0, %arg1 : i32, i32
  }
}

module attributes {stable_mosaic.version = 11 : i64} {
  func.func @_matmul_shift_act_kernel(%arg0: i32, %arg1: i32, %arg2: memref<64x512xbf16, #tpu.memory_space<vmem>>, %arg3: memref<512x128xbf16, #tpu.memory_space<vmem>>, %arg4: memref<1x128xf32, #tpu.memory_space<vmem>>, %arg5: memref<64x128xbf16, #tpu.memory_space<vmem>>) attributes {dimension_semantics = [#tpu.dimension_semantics<parallel>, #tpu.dimension_semantics<parallel>], iteration_bounds = array<i64: 2, 1>, scalar_prefetch = 0 : i64, scratch_operands = 0 : i64, tpu.core_type = #tpu.core_type<tc>, window_params = [{transform_indices = @transform_0, window_bounds = array<i64: 64, 512>}, {transform_indices = @transform_1, window_bounds = array<i64: 512, 128>}, {transform_indices = @transform_2, window_bounds = array<i64: 1, 128>}, {transform_indices = @transform_3, window_bounds = array<i64: 64, 128>}]} {
    %c0 = arith.constant 0 : index
    %c0_0 = arith.constant 0 : index
    %0 = vector.load %arg2[%c0, %c0_0] : memref<64x512xbf16, #tpu.memory_space<vmem>>, vector<64x512xbf16>
    %c0_1 = arith.constant 0 : index
    %c0_2 = arith.constant 0 : index
    %1 = vector.load %arg3[%c0_1, %c0_2] : memref<512x128xbf16, #tpu.memory_space<vmem>>, vector<512x128xbf16>
    %cst = arith.constant dense<0.000000e+00> : vector<64x128xf32>
    %2 = tpu.matmul %0, %1, %cst {dimension_numbers = #tpu.dot_dimension_numbers<[1], [0], [0], [1], [0, 0, 1, 1], [], []>} : vector<64x512xbf16>, vector<512x128xbf16>, vector<64x128xf32> -> vector<64x128xf32>
    %c0_3 = arith.constant 0 : index
    %c0_4 = arith.constant 0 : index
    %3 = vector.load %arg4[%c0_3, %c0_4] : memref<1x128xf32, #tpu.memory_space<vmem>>, vector<1x128xf32>
    %4 = vector.broadcast %3 : vector<1x128xf32> to vector<64x128xf32>
    %5 = arith.addf %2, %4 : vector<64x128xf32>
    %cst_5 = arith.constant 0.000000e+00 : f32
    %6 = vector.broadcast %cst_5 : f32 to vector<64x128xf32>
    %7 = arith.cmpf ogt, %5, %6 : vector<64x128xf32>
    %cst_6 = arith.constant 2.000000e-01 : f32
    %8 = vector.broadcast %cst_6 : f32 to vector<64x128xf32>
    %9 = arith.mulf %8, %5 : vector<64x128xf32>
    %10 = arith.select %7, %5, %9 : vector<64x128xi1>, vector<64x128xf32>
    %11 = arith.truncf %10 : vector<64x128xf32> to vector<64x128xbf16>
    %c0_7 = arith.constant 0 : index
    %c0_8 = arith.constant 0 : index
    %12 = vector.load %arg5[%c0_7, %c0_8] : memref<64x128xbf16, #tpu.memory_space<vmem>>, vector<64x128xbf16>
    tpu.vector_store %arg5[%c0_7, %c0_8], %11 {strides = array<i32>} : memref<64x128xbf16, #tpu.memory_space<vmem>>, vector<64x128xbf16>,
    return
  }
  func.func @transform_0(%arg0: i32, %arg1: i32) -> (i32, i32) {
    %c0_i32 = arith.constant 0 : i32
    %c0_i32_0 = arith.constant 0 : i32
    return %arg0, %c0_i32 : i32, i32
  }
  func.func @transform_1(%arg0: i32, %arg1: i32) -> (i32, i32) {
    %c0_i32 = arith.constant 0 : i32
    %c0_i32_0 = arith.constant 0 : i32
    return %c0_i32, %arg1 : i32, i32
  }
  func.func @transform_2(%arg0: i32, %arg1: i32) -> (i32, i32) {
    %c0_i32 = arith.constant 0 : i32
    %c0_i32_0 = arith.constant 0 : i32
    return %c0_i32, %arg1 : i32, i32
  }
  func.func @transform_3(%arg0: i32, %arg1: i32) -> (i32, i32) {
    %c0_i32 = arith.constant 0 : i32
    return %arg0, %arg1 : i32, i32
  }
}

module attributes {stable_mosaic.version = 11 : i64} {
  func.func @_matmul_shift_act_kernel(%arg0: i32, %arg1: i32, %arg2: memref<16x1024xbf16, #tpu.memory_space<vmem>>, %arg3: memref<1024x128xbf16, #tpu.memory_space<vmem>>, %arg4: memref<1x128xf32, #tpu.memory_space<vmem>>, %arg5: memref<16x128xbf16, #tpu.memory_space<vmem>>) attributes {dimension_semantics = [#tpu.dimension_semantics<parallel>, #tpu.dimension_semantics<parallel>], iteration_bounds = array<i64: 1, 1>, scalar_prefetch = 0 : i64, scratch_operands = 0 : i64, tpu.core_type = #tpu.core_type<tc>, window_params = [{transform_indices = @transform_0, window_bounds = array<i64: 16, 1024>}, {transform_indices = @transform_1, window_bounds = array<i64: 1024, 128>}, {transform_indices = @transform_2, window_bounds = array<i64: 1, 128>}, {transform_indices = @transform_3, window_bounds = array<i64: 16, 128>}]} {
    %c0 = arith.constant 0 : index
    %c0_0 = arith.constant 0 : index
    %0 = vector.load %arg2[%c0, %c0_0] : memref<16x1024xbf16, #tpu.memory_space<vmem>>, vector<16x1024xbf16>
    %c0_1 = arith.constant 0 : index
    %c0_2 = arith.constant 0 : index
    %1 = vector.load %arg3[%c0_1, %c0_2] : memref<1024x128xbf16, #tpu.memory_space<vmem>>, vector<1024x128xbf16>
    %cst = arith.constant dense<0.000000e+00> : vector<16x128xf32>
    %2 = tpu.matmul %0, %1, %cst {dimension_numbers = #tpu.dot_dimension_numbers<[1], [0], [0], [1], [0, 0, 1, 1], [], []>} : vector<16x1024xbf16>, vector<1024x128xbf16>, vector<16x128xf32> -> vector<16x128xf32>
    %c0_3 = arith.constant 0 : index
    %c0_4 = arith.constant 0 : index
    %3 = vector.load %arg4[%c0_3, %c0_4] : memref<1x128xf32, #tpu.memory_space<vmem>>, vector<1x128xf32>
    %4 = vector.broadcast %3 : vector<1x128xf32> to vector<16x128xf32>
    %5 = arith.addf %2, %4 : vector<16x128xf32>
    %cst_5 = arith.constant 0.000000e+00 : f32
    %6 = vector.broadcast %cst_5 : f32 to vector<16x128xf32>
    %7 = arith.cmpf ogt, %5, %6 : vector<16x128xf32>
    %cst_6 = arith.constant 2.000000e-01 : f32
    %8 = vector.broadcast %cst_6 : f32 to vector<16x128xf32>
    %9 = arith.mulf %8, %5 : vector<16x128xf32>
    %10 = arith.select %7, %5, %9 : vector<16x128xi1>, vector<16x128xf32>
    %11 = arith.truncf %10 : vector<16x128xf32> to vector<16x128xbf16>
    %c0_7 = arith.constant 0 : index
    %c0_8 = arith.constant 0 : index
    %12 = vector.load %arg5[%c0_7, %c0_8] : memref<16x128xbf16, #tpu.memory_space<vmem>>, vector<16x128xbf16>
    tpu.vector_store %arg5[%c0_7, %c0_8], %11 {strides = array<i32>} : memref<16x128xbf16, #tpu.memory_space<vmem>>, vector<16x128xbf16>,
    return
  }
  func.func @transform_0(%arg0: i32, %arg1: i32) -> (i32, i32) {
    %c0_i32 = arith.constant 0 : i32
    %c0_i32_0 = arith.constant 0 : i32
    return %arg0, %c0_i32 : i32, i32
  }
  func.func @transform_1(%arg0: i32, %arg1: i32) -> (i32, i32) {
    %c0_i32 = arith.constant 0 : i32
    %c0_i32_0 = arith.constant 0 : i32
    return %c0_i32, %arg1 : i32, i32
  }
  func.func @transform_2(%arg0: i32, %arg1: i32) -> (i32, i32) {
    %c0_i32 = arith.constant 0 : i32
    %c0_i32_0 = arith.constant 0 : i32
    return %c0_i32, %arg1 : i32, i32
  }
  func.func @transform_3(%arg0: i32, %arg1: i32) -> (i32, i32) {
    %c0_i32 = arith.constant 0 : i32
    return %arg0, %arg1 : i32, i32
  }
}

module attributes {stable_mosaic.version = 11 : i64} {
  func.func @_latent_kernel(%arg0: memref<2x256xbf16, #tpu.memory_space<vmem>>, %arg1: memref<256x64xbf16, #tpu.memory_space<vmem>>, %arg2: memref<1x64xf32, #tpu.memory_space<vmem>>, %arg3: memref<64x32xbf16, #tpu.memory_space<vmem>>, %arg4: memref<1x32xf32, #tpu.memory_space<vmem>>, %arg5: memref<64x32xbf16, #tpu.memory_space<vmem>>, %arg6: memref<1x32xf32, #tpu.memory_space<vmem>>, %arg7: memref<2x32xf32, #tpu.memory_space<vmem>>, %arg8: memref<32x64xbf16, #tpu.memory_space<vmem>>, %arg9: memref<1x64xf32, #tpu.memory_space<vmem>>, %arg10: memref<64x256xbf16, #tpu.memory_space<vmem>>, %arg11: memref<1x256xf32, #tpu.memory_space<vmem>>, %arg12: memref<2x256xbf16, #tpu.memory_space<vmem>>, %arg13: memref<2x32xf32, #tpu.memory_space<vmem>>, %arg14: memref<2x32xf32, #tpu.memory_space<vmem>>) attributes {dimension_semantics = [], scalar_prefetch = 0 : i64, scratch_operands = 0 : i64, tpu.core_type = #tpu.core_type<tc>} {
    %c0 = arith.constant 0 : index
    %c0_0 = arith.constant 0 : index
    %0 = vector.load %arg0[%c0, %c0_0] : memref<2x256xbf16, #tpu.memory_space<vmem>>, vector<2x256xbf16>
    %c0_1 = arith.constant 0 : index
    %c0_2 = arith.constant 0 : index
    %1 = vector.load %arg1[%c0_1, %c0_2] : memref<256x64xbf16, #tpu.memory_space<vmem>>, vector<256x64xbf16>
    %cst = arith.constant dense<0.000000e+00> : vector<2x64xf32>
    %2 = tpu.matmul %0, %1, %cst {dimension_numbers = #tpu.dot_dimension_numbers<[1], [0], [0], [1], [0, 0, 1, 1], [], []>} : vector<2x256xbf16>, vector<256x64xbf16>, vector<2x64xf32> -> vector<2x64xf32>
    %c0_3 = arith.constant 0 : index
    %c0_4 = arith.constant 0 : index
    %3 = vector.load %arg2[%c0_3, %c0_4] : memref<1x64xf32, #tpu.memory_space<vmem>>, vector<1x64xf32>
    %4 = vector.broadcast %3 : vector<1x64xf32> to vector<2x64xf32>
    %5 = arith.addf %2, %4 : vector<2x64xf32>
    %cst_5 = arith.constant 0.000000e+00 : f32
    %6 = vector.broadcast %cst_5 : f32 to vector<2x64xf32>
    %7 = arith.cmpf ogt, %5, %6 : vector<2x64xf32>
    %cst_6 = arith.constant 2.000000e-01 : f32
    %8 = vector.broadcast %cst_6 : f32 to vector<2x64xf32>
    %9 = arith.mulf %8, %5 : vector<2x64xf32>
    %10 = arith.select %7, %5, %9 : vector<2x64xi1>, vector<2x64xf32>
    %11 = arith.truncf %10 : vector<2x64xf32> to vector<2x64xbf16>
    %c0_7 = arith.constant 0 : index
    %c0_8 = arith.constant 0 : index
    %12 = vector.load %arg3[%c0_7, %c0_8] : memref<64x32xbf16, #tpu.memory_space<vmem>>, vector<64x32xbf16>
    %cst_9 = arith.constant dense<0.000000e+00> : vector<2x32xf32>
    %13 = tpu.matmul %11, %12, %cst_9 {dimension_numbers = #tpu.dot_dimension_numbers<[1], [0], [0], [1], [0, 0, 1, 1], [], []>} : vector<2x64xbf16>, vector<64x32xbf16>, vector<2x32xf32> -> vector<2x32xf32>
    %c0_10 = arith.constant 0 : index
    %c0_11 = arith.constant 0 : index
    %14 = vector.load %arg4[%c0_10, %c0_11] : memref<1x32xf32, #tpu.memory_space<vmem>>, vector<1x32xf32>
    %15 = vector.broadcast %14 : vector<1x32xf32> to vector<2x32xf32>
    %16 = arith.addf %13, %15 : vector<2x32xf32>
    %c0_12 = arith.constant 0 : index
    %c0_13 = arith.constant 0 : index
    %17 = vector.load %arg5[%c0_12, %c0_13] : memref<64x32xbf16, #tpu.memory_space<vmem>>, vector<64x32xbf16>
    %cst_14 = arith.constant dense<0.000000e+00> : vector<2x32xf32>
    %18 = tpu.matmul %11, %17, %cst_14 {dimension_numbers = #tpu.dot_dimension_numbers<[1], [0], [0], [1], [0, 0, 1, 1], [], []>} : vector<2x64xbf16>, vector<64x32xbf16>, vector<2x32xf32> -> vector<2x32xf32>
    %c0_15 = arith.constant 0 : index
    %c0_16 = arith.constant 0 : index
    %19 = vector.load %arg6[%c0_15, %c0_16] : memref<1x32xf32, #tpu.memory_space<vmem>>, vector<1x32xf32>
    %20 = vector.broadcast %19 : vector<1x32xf32> to vector<2x32xf32>
    %21 = arith.addf %18, %20 : vector<2x32xf32>
    %c0_17 = arith.constant 0 : index
    %c0_18 = arith.constant 0 : index
    %22 = vector.load %arg13[%c0_17, %c0_18] : memref<2x32xf32, #tpu.memory_space<vmem>>, vector<2x32xf32>
    tpu.vector_store %arg13[%c0_17, %c0_18], %16 {strides = array<i32>} : memref<2x32xf32, #tpu.memory_space<vmem>>, vector<2x32xf32>,
    %c0_19 = arith.constant 0 : index
    %c0_20 = arith.constant 0 : index
    %23 = vector.load %arg14[%c0_19, %c0_20] : memref<2x32xf32, #tpu.memory_space<vmem>>, vector<2x32xf32>
    tpu.vector_store %arg14[%c0_19, %c0_20], %21 {strides = array<i32>} : memref<2x32xf32, #tpu.memory_space<vmem>>, vector<2x32xf32>,
    %cst_21 = arith.constant 5.000000e-01 : f32
    %24 = vector.broadcast %cst_21 : f32 to vector<2x32xf32>
    %25 = arith.mulf %24, %21 : vector<2x32xf32>
    %26 = math.exp %25 : vector<2x32xf32>
    %c0_22 = arith.constant 0 : index
    %c0_23 = arith.constant 0 : index
    %27 = vector.load %arg7[%c0_22, %c0_23] : memref<2x32xf32, #tpu.memory_space<vmem>>, vector<2x32xf32>
    %28 = arith.mulf %26, %27 : vector<2x32xf32>
    %29 = arith.addf %16, %28 : vector<2x32xf32>
    %30 = arith.truncf %29 : vector<2x32xf32> to vector<2x32xbf16>
    %c0_24 = arith.constant 0 : index
    %c0_25 = arith.constant 0 : index
    %31 = vector.load %arg8[%c0_24, %c0_25] : memref<32x64xbf16, #tpu.memory_space<vmem>>, vector<32x64xbf16>
    %cst_26 = arith.constant dense<0.000000e+00> : vector<2x64xf32>
    %32 = tpu.matmul %30, %31, %cst_26 {dimension_numbers = #tpu.dot_dimension_numbers<[1], [0], [0], [1], [0, 0, 1, 1], [], []>} : vector<2x32xbf16>, vector<32x64xbf16>, vector<2x64xf32> -> vector<2x64xf32>
    %c0_27 = arith.constant 0 : index
    %c0_28 = arith.constant 0 : index
    %33 = vector.load %arg9[%c0_27, %c0_28] : memref<1x64xf32, #tpu.memory_space<vmem>>, vector<1x64xf32>
    %34 = vector.broadcast %33 : vector<1x64xf32> to vector<2x64xf32>
    %35 = arith.addf %32, %34 : vector<2x64xf32>
    %cst_29 = arith.constant 0.000000e+00 : f32
    %36 = vector.broadcast %cst_29 : f32 to vector<2x64xf32>
    %37 = arith.cmpf ogt, %35, %36 : vector<2x64xf32>
    %cst_30 = arith.constant 2.000000e-01 : f32
    %38 = vector.broadcast %cst_30 : f32 to vector<2x64xf32>
    %39 = arith.mulf %38, %35 : vector<2x64xf32>
    %40 = arith.select %37, %35, %39 : vector<2x64xi1>, vector<2x64xf32>
    %41 = arith.truncf %40 : vector<2x64xf32> to vector<2x64xbf16>
    %c0_31 = arith.constant 0 : index
    %c0_32 = arith.constant 0 : index
    %42 = vector.load %arg10[%c0_31, %c0_32] : memref<64x256xbf16, #tpu.memory_space<vmem>>, vector<64x256xbf16>
    %cst_33 = arith.constant dense<0.000000e+00> : vector<2x256xf32>
    %43 = tpu.matmul %41, %42, %cst_33 {dimension_numbers = #tpu.dot_dimension_numbers<[1], [0], [0], [1], [0, 0, 1, 1], [], []>} : vector<2x64xbf16>, vector<64x256xbf16>, vector<2x256xf32> -> vector<2x256xf32>
    %c0_34 = arith.constant 0 : index
    %c0_35 = arith.constant 0 : index
    %44 = vector.load %arg11[%c0_34, %c0_35] : memref<1x256xf32, #tpu.memory_space<vmem>>, vector<1x256xf32>
    %45 = vector.broadcast %44 : vector<1x256xf32> to vector<2x256xf32>
    %46 = arith.addf %43, %45 : vector<2x256xf32>
    %cst_36 = arith.constant 0.000000e+00 : f32
    %47 = vector.broadcast %cst_36 : f32 to vector<2x256xf32>
    %48 = arith.cmpf ogt, %46, %47 : vector<2x256xf32>
    %cst_37 = arith.constant 2.000000e-01 : f32
    %49 = vector.broadcast %cst_37 : f32 to vector<2x256xf32>
    %50 = arith.mulf %49, %46 : vector<2x256xf32>
    %51 = arith.select %48, %46, %50 : vector<2x256xi1>, vector<2x256xf32>
    %52 = arith.truncf %51 : vector<2x256xf32> to vector<2x256xbf16>
    %c0_38 = arith.constant 0 : index
    %c0_39 = arith.constant 0 : index
    %53 = vector.load %arg12[%c0_38, %c0_39] : memref<2x256xbf16, #tpu.memory_space<vmem>>, vector<2x256xbf16>
    tpu.vector_store %arg12[%c0_38, %c0_39], %52 {strides = array<i32>} : memref<2x256xbf16, #tpu.memory_space<vmem>>, vector<2x256xbf16>,
    return
  }
}

module attributes {stable_mosaic.version = 11 : i64} {
  func.func @_matmul_shift_act_kernel(%arg0: i32, %arg1: i32, %arg2: memref<16x896xbf16, #tpu.memory_space<vmem>>, %arg3: memref<896x128xbf16, #tpu.memory_space<vmem>>, %arg4: memref<1x128xf32, #tpu.memory_space<vmem>>, %arg5: memref<16x128xbf16, #tpu.memory_space<vmem>>) attributes {dimension_semantics = [#tpu.dimension_semantics<parallel>, #tpu.dimension_semantics<parallel>], iteration_bounds = array<i64: 1, 1>, scalar_prefetch = 0 : i64, scratch_operands = 0 : i64, tpu.core_type = #tpu.core_type<tc>, window_params = [{transform_indices = @transform_0, window_bounds = array<i64: 16, 896>}, {transform_indices = @transform_1, window_bounds = array<i64: 896, 128>}, {transform_indices = @transform_2, window_bounds = array<i64: 1, 128>}, {transform_indices = @transform_3, window_bounds = array<i64: 16, 128>}]} {
    %c0 = arith.constant 0 : index
    %c0_0 = arith.constant 0 : index
    %0 = vector.load %arg2[%c0, %c0_0] : memref<16x896xbf16, #tpu.memory_space<vmem>>, vector<16x896xbf16>
    %c0_1 = arith.constant 0 : index
    %c0_2 = arith.constant 0 : index
    %1 = vector.load %arg3[%c0_1, %c0_2] : memref<896x128xbf16, #tpu.memory_space<vmem>>, vector<896x128xbf16>
    %cst = arith.constant dense<0.000000e+00> : vector<16x128xf32>
    %2 = tpu.matmul %0, %1, %cst {dimension_numbers = #tpu.dot_dimension_numbers<[1], [0], [0], [1], [0, 0, 1, 1], [], []>} : vector<16x896xbf16>, vector<896x128xbf16>, vector<16x128xf32> -> vector<16x128xf32>
    %c0_3 = arith.constant 0 : index
    %c0_4 = arith.constant 0 : index
    %3 = vector.load %arg4[%c0_3, %c0_4] : memref<1x128xf32, #tpu.memory_space<vmem>>, vector<1x128xf32>
    %4 = vector.broadcast %3 : vector<1x128xf32> to vector<16x128xf32>
    %5 = arith.addf %2, %4 : vector<16x128xf32>
    %cst_5 = arith.constant 0.000000e+00 : f32
    %6 = vector.broadcast %cst_5 : f32 to vector<16x128xf32>
    %7 = arith.cmpf ogt, %5, %6 : vector<16x128xf32>
    %cst_6 = arith.constant 2.000000e-01 : f32
    %8 = vector.broadcast %cst_6 : f32 to vector<16x128xf32>
    %9 = arith.mulf %8, %5 : vector<16x128xf32>
    %10 = arith.select %7, %5, %9 : vector<16x128xi1>, vector<16x128xf32>
    %11 = arith.truncf %10 : vector<16x128xf32> to vector<16x128xbf16>
    %c0_7 = arith.constant 0 : index
    %c0_8 = arith.constant 0 : index
    %12 = vector.load %arg5[%c0_7, %c0_8] : memref<16x128xbf16, #tpu.memory_space<vmem>>, vector<16x128xbf16>
    tpu.vector_store %arg5[%c0_7, %c0_8], %11 {strides = array<i32>} : memref<16x128xbf16, #tpu.memory_space<vmem>>, vector<16x128xbf16>,
    return
  }
  func.func @transform_0(%arg0: i32, %arg1: i32) -> (i32, i32) {
    %c0_i32 = arith.constant 0 : i32
    %c0_i32_0 = arith.constant 0 : i32
    return %arg0, %c0_i32 : i32, i32
  }
  func.func @transform_1(%arg0: i32, %arg1: i32) -> (i32, i32) {
    %c0_i32 = arith.constant 0 : i32
    %c0_i32_0 = arith.constant 0 : i32
    return %c0_i32, %arg1 : i32, i32
  }
  func.func @transform_2(%arg0: i32, %arg1: i32) -> (i32, i32) {
    %c0_i32 = arith.constant 0 : i32
    %c0_i32_0 = arith.constant 0 : i32
    return %c0_i32, %arg1 : i32, i32
  }
  func.func @transform_3(%arg0: i32, %arg1: i32) -> (i32, i32) {
    %c0_i32 = arith.constant 0 : i32
    return %arg0, %arg1 : i32, i32
  }
}

module attributes {stable_mosaic.version = 11 : i64} {
  func.func @_matmul_shift_act_kernel(%arg0: i32, %arg1: i32, %arg2: memref<512x256xbf16, #tpu.memory_space<vmem>>, %arg3: memref<256x128xbf16, #tpu.memory_space<vmem>>, %arg4: memref<1x128xf32, #tpu.memory_space<vmem>>, %arg5: memref<512x128xf32, #tpu.memory_space<vmem>>) attributes {dimension_semantics = [#tpu.dimension_semantics<parallel>, #tpu.dimension_semantics<parallel>], iteration_bounds = array<i64: 2, 1>, scalar_prefetch = 0 : i64, scratch_operands = 0 : i64, tpu.core_type = #tpu.core_type<tc>, window_params = [{transform_indices = @transform_0, window_bounds = array<i64: 512, 256>}, {transform_indices = @transform_1, window_bounds = array<i64: 256, 128>}, {transform_indices = @transform_2, window_bounds = array<i64: 1, 128>}, {transform_indices = @transform_3, window_bounds = array<i64: 512, 128>}]} {
    %c0 = arith.constant 0 : index
    %c0_0 = arith.constant 0 : index
    %0 = vector.load %arg2[%c0, %c0_0] : memref<512x256xbf16, #tpu.memory_space<vmem>>, vector<512x256xbf16>
    %c0_1 = arith.constant 0 : index
    %c0_2 = arith.constant 0 : index
    %1 = vector.load %arg3[%c0_1, %c0_2] : memref<256x128xbf16, #tpu.memory_space<vmem>>, vector<256x128xbf16>
    %cst = arith.constant dense<0.000000e+00> : vector<512x128xf32>
    %2 = tpu.matmul %0, %1, %cst {dimension_numbers = #tpu.dot_dimension_numbers<[1], [0], [0], [1], [0, 0, 1, 1], [], []>} : vector<512x256xbf16>, vector<256x128xbf16>, vector<512x128xf32> -> vector<512x128xf32>
    %c0_3 = arith.constant 0 : index
    %c0_4 = arith.constant 0 : index
    %3 = vector.load %arg4[%c0_3, %c0_4] : memref<1x128xf32, #tpu.memory_space<vmem>>, vector<1x128xf32>
    %4 = vector.broadcast %3 : vector<1x128xf32> to vector<512x128xf32>
    %5 = arith.addf %2, %4 : vector<512x128xf32>
    %6 = arith.negf %5 : vector<512x128xf32>
    %7 = math.exp %6 : vector<512x128xf32>
    %cst_5 = arith.constant 1.000000e+00 : f32
    %8 = vector.broadcast %cst_5 : f32 to vector<512x128xf32>
    %9 = arith.addf %8, %7 : vector<512x128xf32>
    %10 = arith.divf %8, %9 : vector<512x128xf32>
    %c0_6 = arith.constant 0 : index
    %c0_7 = arith.constant 0 : index
    %11 = vector.load %arg5[%c0_6, %c0_7] : memref<512x128xf32, #tpu.memory_space<vmem>>, vector<512x128xf32>
    tpu.vector_store %arg5[%c0_6, %c0_7], %10 {strides = array<i32>} : memref<512x128xf32, #tpu.memory_space<vmem>>, vector<512x128xf32>,
    return
  }
  func.func @transform_0(%arg0: i32, %arg1: i32) -> (i32, i32) {
    %c0_i32 = arith.constant 0 : i32
    %c0_i32_0 = arith.constant 0 : i32
    return %arg0, %c0_i32 : i32, i32
  }
  func.func @transform_1(%arg0: i32, %arg1: i32) -> (i32, i32) {
    %c0_i32 = arith.constant 0 : i32
    %c0_i32_0 = arith.constant 0 : i32
    return %c0_i32, %arg1 : i32, i32
  }
  func.func @transform_2(%arg0: i32, %arg1: i32) -> (i32, i32) {
    %c0_i32 = arith.constant 0 : i32
    %c0_i32_0 = arith.constant 0 : i32
    return %c0_i32, %arg1 : i32, i32
  }
  func.func @transform_3(%arg0: i32, %arg1: i32) -> (i32, i32) {
    %c0_i32 = arith.constant 0 : i32
    return %arg0, %arg1 : i32, i32
  }
}

</mosaic_0001>

<bundles_post_ra>
// kernel: var_auto_enc_forward.7
= control target key start
LH: loop header
LB: loop body
LE: loop exit
PB: predicated region body
PF: predicated region fallthrough
CT: control target
= control target key end

     0   :  { %s2073_s12 = smov 0   ;;  %s2075_s13 = smov 0   ;;  %s2283_s0 = inlined_call_operand.vmem [shape: bf16[1024,128], index: 0, kind: input, shape index: {}]   ;;  %s2284_s1 = inlined_call_operand.vmem [shape: bf16[128,128], index: 1, kind: input, shape index: {}]   ;;  %s2285_s2 = inlined_call_operand.vmem [shape: f32[1,128], index: 2, kind: input, shape index: {}]   ;;  %s2286_s3 = inlined_call_operand.vmem [shape: bf16[1024,128], index: 3, kind: output, shape index: {}]  }
   0x1   :  { %s2077_s14 = smov 0  }
   0x2 LB: > { %s25_s15 = sadd.s32 1, %s2047_s13  ;;  %p1462_p0 = scmp.ge.s32.totalorder %s2051_s14, 1  ;;  %s2051_s14 = sphi %s2077_s14, %s13_s14   ;;  %s2047_s13 = sphi %s2075_s13, %s2288_s13   ;;  %s2043_s12 = sphi %s2073_s12, %s2287_s12  }
   0x3   : > { %p27_p1 = scmp.ge.s32.totalorder %s25_s15, 2  ;;  %p169_p2 = scmp.lt.s32.totalorder %s2051_s14, 3 }
   0x5   : > { %s2290_s15 = smov (%p27_p1, %s25_s15), 0  ;;  %p170_p3 = pnand %p1462_p0, %p169_p2 }
   0x6   : > { %v1989_v0 = vld [vmem:[%s2284_s1] sm:$0xff] (!%p170_p3)   ;;  %s1463_s18 = sshll.u32 (!%p170_p3), %s2043_s12, 6  ;;  %v1990_v1 = vld [vmem:[%s2284_s1 + $0x8] sm:$0xff] (!%p170_p3)   ;;  %v1991_v2 = vld [vmem:[%s2284_s1 + $0x10] sm:$0xff] (!%p170_p3)  }
   0x7   : > { %173 = sbr.rel (%p170_p3) target bundleno = 328 (0x148), region = 32  ;;  %p204_p4 = scmp.lt.s32.totalorder (!%p170_p3), %s1463_s18, 127  ;;  %1869 = vmatprep.subr.bf16.mxu0 (!%p170_p3), %v1989_v0  ;;  %1949 = vmatprep.subr.bf16.mxu1 (!%p170_p3), %v1989_v0  ;;  %v1992_v3 = vld [vmem:[%s2284_s1 + $0x18] sm:$0xff] (!%p170_p3)   ;;  %v1993_v6 = vld [vmem:[%s2284_s1 + $0x20] sm:$0xff] (!%p170_p3)   ;;  %v1994_v7 = vld [vmem:[%s2284_s1 + $0x28] sm:$0xff] (!%p170_p3)  }
   0x8   : > { %1870 = vmatpush3.bf16.msra.mxu0 (!%p170_p3), %v1989_v0  ;;  %1957 = vmatpush3.bf16.msra.mxu1 (!%p170_p3), %v1989_v0  ;;  %v1995_v8 = vld [vmem:[%s2284_s1 + $0x30] sm:$0xff] (!%p170_p3)   ;;  %v1996_v9 = vld [vmem:[%s2284_s1 + $0x38] sm:$0xff] (!%p170_p3)   ;;  %v2160_v40 = vld [vmem:[%s2285_s2] ss:$0 sm:$0xff] (!%p170_p3) }
   0x9   : > { %1871 = vmatprep.subr.bf16.mxu0 (!%p170_p3), %v1990_v1  ;;  %1950 = vmatprep.subr.bf16.mxu1 (!%p170_p3), %v1990_v1 }
   0xc   : > { %1872 = vmatpush3.bf16.msra.mxu0 (!%p170_p3), %v1990_v1  ;;  %1958 = vmatpush3.bf16.msra.mxu1 (!%p170_p3), %v1990_v1 }
   0xd   : > { %1873 = vmatprep.subr.bf16.mxu0 (!%p170_p3), %v1991_v2  ;;  %1951 = vmatprep.subr.bf16.mxu1 (!%p170_p3), %v1991_v2 }
   0xe   : > { %s2292_s18 = smov (!%p204_p4, %s1463_s18), 127 }
   0xf   : > { %s1464_s23 = sshll.u32 %s2292_s18, 2 }
  0x10   : > { %s2108_s26 = scalar_lea.vmem %s2283_s0, %s1464_s23  ;;  %1874 = vmatpush3.bf16.msra.mxu0 %v1991_v2  ;;  %1959 = vmatpush3.bf16.msra.mxu1 %v1991_v2  ;;  %s2177_s17 = scalar_lea.vmem %s2286_s3, %s1464_s23 }
  0x11   : > { %v1997_v4 = vld [vmem:[%s2108_s26] sm:$0xff]   ;;  %1875 = vmatprep.subr.bf16.mxu0 %v1992_v3  ;;  %1952 = vmatprep.subr.bf16.mxu1 %v1992_v3  ;;  %v1999_v10 = vld [vmem:[%s2108_s26 + $0x8] sm:$0xff]   ;;  %v2001_v12 = vld [vmem:[%s2108_s26 + $0x10] sm:$0xff]  }
  0x12   : > { %v1998_v5 = vld [vmem:[%s2108_s26 + $0x80] sm:$0xff]   ;;  %1885 = vmatprep.mubr.bf16.mxu0 %v1997_v4  ;;  %v2000_v11 = vld [vmem:[%s2108_s26 + $0x88] sm:$0xff]   ;;  %v2002_v13 = vld [vmem:[%s2108_s26 + $0x90] sm:$0xff]  }
  0x13   : > { %1917 = vmatprep.mubr.bf16.mxu1 %v1998_v5  ;;  %v2003_v14 = vld [vmem:[%s2108_s26 + $0x18] sm:$0xff]   ;;  %v2005_v16 = vld [vmem:[%s2108_s26 + $0x20] sm:$0xff]   ;;  %v2007_v18 = vld [vmem:[%s2108_s26 + $0x28] sm:$0xff]  }
  0x14   : > { %1876 = vmatpush3.bf16.msra.mxu0 %v1992_v3  ;;  %1960 = vmatpush3.bf16.msra.mxu1 %v1992_v3  ;;  %v2004_v15 = vld [vmem:[%s2108_s26 + $0x98] sm:$0xff]   ;;  %v2006_v17 = vld [vmem:[%s2108_s26 + $0xa0] sm:$0xff]   ;;  %v2008_v19 = vld [vmem:[%s2108_s26 + $0xa8] sm:$0xff]  }
  0x15   : > { %1877 = vmatprep.subr.bf16.mxu0 %v1993_v6  ;;  %1953 = vmatprep.subr.bf16.mxu1 %v1993_v6  ;;  %v2009_v20 = vld [vmem:[%s2108_s26 + $0x30] sm:$0xff]   ;;  %v2011_v22 = vld [vmem:[%s2108_s26 + $0x38] sm:$0xff]   ;;  %v2013_v24 = vld [vmem:[%s2108_s26 + $0x40] sm:$0xff]  }
  0x16   : > { %v2010_v21 = vld [vmem:[%s2108_s26 + $0xb0] sm:$0xff]   ;;  %v2012_v23 = vld [vmem:[%s2108_s26 + $0xb8] sm:$0xff]   ;;  %v2014_v25 = vld [vmem:[%s2108_s26 + $0xc0] sm:$0xff]  }
  0x17   : > { %v2015_v26 = vld [vmem:[%s2108_s26 + $0x48] sm:$0xff]   ;;  %v2017_v28 = vld [vmem:[%s2108_s26 + $0x50] sm:$0xff]   ;;  %v2019_v30 = vld [vmem:[%s2108_s26 + $0x58] sm:$0xff]  }
  0x18   : > { %1878 = vmatpush3.bf16.msra.mxu0 %v1993_v6  ;;  %1961 = vmatpush3.bf16.msra.mxu1 %v1993_v6  ;;  %v2016_v27 = vld [vmem:[%s2108_s26 + $0xc8] sm:$0xff]   ;;  %v2018_v29 = vld [vmem:[%s2108_s26 + $0xd0] sm:$0xff]   ;;  %v2020_v31 = vld [vmem:[%s2108_s26 + $0xd8] sm:$0xff]  }
  0x19   : > { %1879 = vmatprep.subr.bf16.mxu0 %v1994_v7  ;;  %1954 = vmatprep.subr.bf16.mxu1 %v1994_v7  ;;  %v2021_v32 = vld [vmem:[%s2108_s26 + $0x60] sm:$0xff]   ;;  %v2023_v34 = vld [vmem:[%s2108_s26 + $0x68] sm:$0xff]   ;;  %v2025_v36 = vld [vmem:[%s2108_s26 + $0x70] sm:$0xff]  }
  0x1a   : > { %v2022_v33 = vld [vmem:[%s2108_s26 + $0xe0] sm:$0xff]   ;;  %v2024_v35 = vld [vmem:[%s2108_s26 + $0xe8] sm:$0xff]   ;;  %v2026_v37 = vld [vmem:[%s2108_s26 + $0xf0] sm:$0xff]  }
  0x1b   : > { %v2027_v38 = vld [vmem:[%s2108_s26 + $0x78] sm:$0xff]  }
  0x1c   : > { %1880 = vmatpush3.bf16.msra.mxu0 %v1994_v7  ;;  %1962 = vmatpush3.bf16.msra.mxu1 %v1994_v7  ;;  %v2028_v39 = vld [vmem:[%s2108_s26 + $0xf8] sm:$0xff]  }
  0x1d   : > { %1881 = vmatprep.subr.bf16.mxu0 %v1995_v8  ;;  %1955 = vmatprep.subr.bf16.mxu1 %v1995_v8 }
  0x20   : > { %1882 = vmatpush3.bf16.msra.mxu0 %v1995_v8  ;;  %1963 = vmatpush3.bf16.msra.mxu1 %v1995_v8 }
  0x21   : > { %1883 = vmatprep.subr.bf16.mxu0 %v1996_v9  ;;  %1956 = vmatprep.subr.bf16.mxu1 %v1996_v9 }
  0x24   : > { %1884 = vmatpush3.bf16.msra.mxu0 %v1996_v9  ;;  %1964 = vmatpush3.bf16.msra.mxu1 %v1996_v9 }
  0x27   : > { %1886 = vmatmul.mubr.bf16.vlgmr.msra.gmra.mrb[0].mxu0 %v1999_v10  ;;  %1918 = vmatmul.mubr.bf16.vlgmr.msra.gmra.mrb[0].mxu1 %v2000_v11 }
  0x28   : > { %1889 = vmatprep.mubr.bf16.mxu0 %v2001_v12  ;;  %1921 = vmatprep.mubr.bf16.mxu1 %v2002_v13 }
  0x2f   : > { %1890 = vmatmul.mubr.bf16.gmra.mrb[4].mxu0 %v2003_v14  ;;  %1922 = vmatmul.mubr.bf16.gmra.mrb[4].mxu1 %v2004_v15 }
  0x30   : > { %1893 = vmatprep.mubr.bf16.mxu0 %v2005_v16  ;;  %1925 = vmatprep.mubr.bf16.mxu1 %v2006_v17 }
  0x37   : > { %1894 = vmatmul.mubr.bf16.gmra.mrb[8].mxu0 %v2007_v18  ;;  %1926 = vmatmul.mubr.bf16.gmra.mrb[8].mxu1 %v2008_v19 }
  0x38   : > { %1897 = vmatprep.mubr.bf16.mxu0 %v2009_v20  ;;  %1929 = vmatprep.mubr.bf16.mxu1 %v2010_v21 }
  0x3f   : > { %1898 = vmatmul.mubr.bf16.gmra.mrb[12].mxu0 %v2011_v22  ;;  %1930 = vmatmul.mubr.bf16.gmra.mrb[12].mxu1 %v2012_v23 }
  0x40   : > { %1901 = vmatprep.mubr.bf16.mxu0 %v2013_v24  ;;  %1933 = vmatprep.mubr.bf16.mxu1 %v2014_v25 }
  0x47   : > { %1902 = vmatmul.mubr.bf16.gmra.mrb[16].mxu0 %v2015_v26  ;;  %1934 = vmatmul.mubr.bf16.gmra.mrb[16].mxu1 %v2016_v27 }
  0x48   : > { %1905 = vmatprep.mubr.bf16.mxu0 %v2017_v28  ;;  %1937 = vmatprep.mubr.bf16.mxu1 %v2018_v29 }
  0x4f   : > { %1906 = vmatmul.mubr.bf16.gmra.mrb[20].mxu0 %v2019_v30  ;;  %1938 = vmatmul.mubr.bf16.gmra.mrb[20].mxu1 %v2020_v31 }
  0x50   : > { %1909 = vmatprep.mubr.bf16.mxu0 %v2021_v32  ;;  %1941 = vmatprep.mubr.bf16.mxu1 %v2022_v33 }
  0x57   : > { %1910 = vmatmul.mubr.bf16.gmra.mrb[24].mxu0 %v2023_v34  ;;  %1942 = vmatmul.mubr.bf16.gmra.mrb[24].mxu1 %v2024_v35 }
  0x58   : > { %1913 = vmatprep.mubr.bf16.mxu0 %v2025_v36  ;;  %1945 = vmatprep.mubr.bf16.mxu1 %v2026_v37 }
  0x5f   : > { %1914 = vmatmul.mubr.bf16.gmra.mrb[28].mxu0 %v2027_v38  ;;  %1946 = vmatmul.mubr.bf16.gmra.mrb[28].mxu1 %v2028_v39 }
  0xfa   : > { %v1887_v41 = vpop.f32.mrb[0].mxu0  ;;  %v1919_v42 = vpop.f32.mrb[0].mxu1 }
  0xfb   : > { %v596_v43 = vadd.f32 %v1887_v41, %v2160_v40  ;;  %v724_v44 = vadd.f32 %v1919_v42, %v2160_v40  ;;  %v587_v45 = vpop.f32.mrb[1].mxu0  ;;  %v715_v46 = vpop.f32.mrb[1].mxu1 }
  0xfc   : > { %v588_v47 = vadd.f32 %v2160_v40, %v587_v45  ;;  %v716_v48 = vadd.f32 %v2160_v40, %v715_v46  ;;  %v1888_v49 = vpop.f32.mrb[2].mxu0  ;;  %v1920_v50 = vpop.f32.mrb[2].mxu1 }
  0xfd   : > { %vm844_vm0 = vcmp.gt.f32.partialorder %v596_v43, 0.0  ;;  %v908_v51 = vmul.f32 0.2, %v596_v43  ;;  %vm876_vm1 = vcmp.gt.f32.partialorder %v724_v44, 0.0  ;;  %v940_v52 = vmul.f32 0.2, %v724_v44 }
  0xfe   : > { %vm842_vm2 = vcmp.gt.f32.partialorder %v588_v47, 0.0  ;;  %v906_v53 = vmul.f32 0.2, %v588_v47  ;;  %vm874_vm3 = vcmp.gt.f32.partialorder %v716_v48, 0.0  ;;  %v938_v54 = vmul.f32 0.2, %v716_v48 }
  0xff   : > { %v599_v55 = vadd.f32 %v1888_v49, %v2160_v40  ;;  %v727_v56 = vadd.f32 %v1920_v50, %v2160_v40  ;;  %v590_v57 = vpop.f32.mrb[3].mxu0  ;;  %v718_v58 = vpop.f32.mrb[3].mxu1  ;;  %v972_v59 = vsel %vm844_vm0, %v596_v43, %v908_v51  ;;  %v1004_v60 = vsel %vm876_vm1, %v724_v44, %v940_v52 }
 0x100   : > { %v591_v61 = vadd.f32 %v2160_v40, %v590_v57  ;;  %v719_v62 = vadd.f32 %v2160_v40, %v718_v58  ;;  %v970_v3 = vsel %vm842_vm2, %v588_v47, %v906_v53  ;;  %v1002_v4 = vsel %vm874_vm3, %v716_v48, %v938_v54 }
 0x101   : > { %vm845_vm4 = vcmp.gt.f32.partialorder %v599_v55, 0.0  ;;  %v909_v63 = vmul.f32 0.2, %v599_v55  ;;  %vm877_vm5 = vcmp.gt.f32.partialorder %v727_v56, 0.0  ;;  %v941_v0 = vmul.f32 0.2, %v727_v56 }
 0x102   : > { %vm843_vm6 = vcmp.gt.f32.partialorder %v591_v61, 0.0  ;;  %v907_v1 = vmul.f32 0.2, %v591_v61  ;;  %vm875_vm7 = vcmp.gt.f32.partialorder %v719_v62, 0.0  ;;  %v939_v2 = vmul.f32 0.2, %v719_v62 }
 0x103   : > { %v973_v5 = vsel %vm845_vm4, %v599_v55, %v909_v63  ;;  %v1005_v6 = vsel %vm877_vm5, %v727_v56, %v941_v0  ;;  %v1891_v7 = vpop.f32.mrb[4].mxu0  ;;  %v1923_v8 = vpop.f32.mrb[4].mxu1 }
 0x104   : > { %v1646_v9 = vpack.c.bf16 %v973_v5, %v972_v59  ;;  %v1726_v10 = vpack.c.bf16 %v1005_v6, %v1004_v60  ;;  %v971_v11 = vsel %vm843_vm6, %v591_v61, %v907_v1  ;;  %v1003_v12 = vsel %vm875_vm7, %v719_v62, %v939_v2  ;;  %v603_v13 = vpop.f32.mrb[5].mxu0  ;;  %v731_v14 = vpop.f32.mrb[5].mxu1 }
 0x105   : > { %v1641_v15 = vpack.c.bf16 %v971_v11, %v970_v3  ;;  %v1721_v16 = vpack.c.bf16 %v1003_v12, %v1002_v4  ;;  %v612_v17 = vadd.f32 %v1891_v7, %v2160_v40  ;;  %v740_v18 = vadd.f32 %v1923_v8, %v2160_v40  ;;  %v1892_v19 = vpop.f32.mrb[6].mxu0  ;;  %v1924_v20 = vpop.f32.mrb[6].mxu1 }
 0x106   : > { %1798 = vst [vmem:[%s2177_s17 + $0x8] sm:$0xff] %v1646_v9   ;;  %1814 = vst [vmem:[%s2177_s17 + $0x88] sm:$0xff] %v1726_v10   ;;  %v604_v21 = vadd.f32 %v2160_v40, %v603_v13  ;;  %v732_v22 = vadd.f32 %v2160_v40, %v731_v14  ;;  %v615_v23 = vadd.f32 %v1892_v19, %v2160_v40  ;;  %v606_v25 = vpop.f32.mrb[7].mxu0  ;;  %v734_v26 = vpop.f32.mrb[7].mxu1 }
 0x107   : > { %v743_v24 = vadd.f32 %v1924_v20, %v2160_v40  ;;  %1642 = vst [vmem:[%s2177_s17] sm:$0xff] %v1641_v15   ;;  %1813 = vst [vmem:[%s2177_s17 + $0x80] sm:$0xff] %v1721_v16   ;;  %vm848_vm8 = vcmp.gt.f32.partialorder %v612_v17, 0.0  ;;  %v912_v27 = vmul.f32 0.2, %v612_v17  ;;  %vm880_vm9 = vcmp.gt.f32.partialorder %v740_v18, 0.0 }
 0x108   : > { %v944_v28 = vmul.f32 0.2, %v740_v18  ;;  %vm846_vm10 = vcmp.gt.f32.partialorder %v604_v21, 0.0  ;;  %v910_v29 = vmul.f32 0.2, %v604_v21  ;;  %vm878_vm11 = vcmp.gt.f32.partialorder %v732_v22, 0.0 }
 0x109   : > { %v942_v30 = vmul.f32 0.2, %v732_v22  ;;  %v976_v31 = vsel %vm848_vm8, %v612_v17, %v912_v27  ;;  %vm849_vm12 = vcmp.gt.f32.partialorder %v615_v23, 0.0  ;;  %v913_v33 = vmul.f32 0.2, %v615_v23 }
 0x10a   : > { %v1008_v32 = vsel %vm880_vm9, %v740_v18, %v944_v28  ;;  %v974_v34 = vsel %vm846_vm10, %v604_v21, %v910_v29  ;;  %vm881_vm13 = vcmp.gt.f32.partialorder %v743_v24, 0.0  ;;  %v945_v36 = vmul.f32 0.2, %v743_v24  ;;  %v1895_v37 = vpop.f32.mrb[8].mxu0  ;;  %v1927_v38 = vpop.f32.mrb[8].mxu1 }
 0x10b   : > { %v1006_v35 = vsel %vm878_vm11, %v732_v22, %v942_v30  ;;  %v977_v39 = vsel %vm849_vm12, %v615_v23, %v913_v33  ;;  %v607_v41 = vadd.f32 %v2160_v40, %v606_v25  ;;  %v735_v42 = vadd.f32 %v2160_v40, %v734_v26  ;;  %v619_v44 = vpop.f32.mrb[9].mxu0  ;;  %v747_v45 = vpop.f32.mrb[9].mxu1 }
 0x10c   : > { %v628_v43 = vadd.f32 %v1895_v37, %v2160_v40  ;;  %v1656_v46 = vpack.c.bf16 %v977_v39, %v976_v31  ;;  %v1009_v47 = vsel %vm881_vm13, %v743_v24, %v945_v36  ;;  %v756_v48 = vadd.f32 %v1927_v38, %v2160_v40  ;;  %v1896_v50 = vpop.f32.mrb[10].mxu0  ;;  %v1928_v51 = vpop.f32.mrb[10].mxu1 }
 0x10d   : > { %v620_v49 = vadd.f32 %v2160_v40, %v619_v44  ;;  %v1736_v52 = vpack.c.bf16 %v1009_v47, %v1008_v32  ;;  %vm847_vm14 = vcmp.gt.f32.partialorder %v607_v41, 0.0  ;;  %v911_v53 = vmul.f32 0.2, %v607_v41  ;;  %v622_v54 = vpop.f32.mrb[11].mxu0  ;;  %v750_v55 = vpop.f32.mrb[11].mxu1 }
 0x10e   : > { %vm879_vm15 = vcmp.gt.f32.partialorder %v735_v42, 0.0  ;;  %1800 = vst [vmem:[%s2177_s17 + $0x18] sm:$0xff] %v1656_v46   ;;  %v943_v56 = vmul.f32 0.2, %v735_v42  ;;  %vm852_vm0 = vcmp.gt.f32.partialorder %v628_v43, 0.0  ;;  %vm884_vm1 = vcmp.gt.f32.partialorder %v756_v48, 0.0 }
 0x10f   : > { %v916_v57 = vmul.f32 0.2, %v628_v43  ;;  %1816 = vst [vmem:[%s2177_s17 + $0x98] sm:$0xff] %v1736_v52   ;;  %v975_v58 = vsel %vm847_vm14, %v607_v41, %v911_v53  ;;  %v948_v59 = vmul.f32 0.2, %v756_v48  ;;  %vm850_vm2 = vcmp.gt.f32.partialorder %v620_v49, 0.0 }
 0x110   : > { %v914_v60 = vmul.f32 0.2, %v620_v49  ;;  %v1651_v61 = vpack.c.bf16 %v975_v58, %v974_v34  ;;  %v1007_v62 = vsel %vm879_vm15, %v735_v42, %v943_v56  ;;  %v748_v0 = vadd.f32 %v2160_v40, %v747_v45 }
 0x111   : > { %v980_v63 = vsel %vm852_vm0, %v628_v43, %v916_v57  ;;  %v1731_v1 = vpack.c.bf16 %v1007_v62, %v1006_v35  ;;  %v1012_v2 = vsel %vm884_vm1, %v756_v48, %v948_v59  ;;  %v631_v4 = vadd.f32 %v1896_v50, %v2160_v40 }
 0x112   : > { %v978_v3 = vsel %vm850_vm2, %v620_v49, %v914_v60  ;;  %1799 = vst [vmem:[%s2177_s17 + $0x10] sm:$0xff] %v1651_v61   ;;  %vm882_vm3 = vcmp.gt.f32.partialorder %v748_v0, 0.0  ;;  %v946_v5 = vmul.f32 0.2, %v748_v0  ;;  %v759_v6 = vadd.f32 %v1928_v51, %v2160_v40  ;;  %v1899_v8 = vpop.f32.mrb[12].mxu0  ;;  %v1931_v9 = vpop.f32.mrb[12].mxu1 }
 0x113   : > { %v623_v7 = vadd.f32 %v2160_v40, %v622_v54  ;;  %1815 = vst [vmem:[%s2177_s17 + $0x90] sm:$0xff] %v1731_v1   ;;  %vm853_vm4 = vcmp.gt.f32.partialorder %v631_v4, 0.0  ;;  %v917_v10 = vmul.f32 0.2, %v631_v4  ;;  %v751_v11 = vadd.f32 %v2160_v40, %v750_v55  ;;  %v635_v13 = vpop.f32.mrb[13].mxu0  ;;  %v763_v14 = vpop.f32.mrb[13].mxu1 }
 0x114   : > { %v644_v12 = vadd.f32 %v1899_v8, %v2160_v40  ;;  %v1010_v15 = vsel %vm882_vm3, %v748_v0, %v946_v5  ;;  %vm885_vm5 = vcmp.gt.f32.partialorder %v759_v6, 0.0  ;;  %v949_v16 = vmul.f32 0.2, %v759_v6  ;;  %v1900_v17 = vpop.f32.mrb[14].mxu0  ;;  %v1932_v18 = vpop.f32.mrb[14].mxu1 }
 0x115   : > { %vm851_vm6 = vcmp.gt.f32.partialorder %v623_v7, 0.0  ;;  %v981_v19 = vsel %vm853_vm4, %v631_v4, %v917_v10  ;;  %v915_v20 = vmul.f32 0.2, %v623_v7  ;;  %vm883_vm7 = vcmp.gt.f32.partialorder %v751_v11, 0.0  ;;  %v638_v22 = vpop.f32.mrb[15].mxu0  ;;  %v766_v26 = vpop.f32.mrb[15].mxu1 }
 0x116   : > { %v947_v21 = vmul.f32 0.2, %v751_v11  ;;  %v1666_v23 = vpack.c.bf16 %v981_v19, %v980_v63  ;;  %v1013_v24 = vsel %vm885_vm5, %v759_v6, %v949_v16  ;;  %vm856_vm8 = vcmp.gt.f32.partialorder %v644_v12, 0.0 }
 0x117   : > { %v920_v25 = vmul.f32 0.2, %v644_v12  ;;  %v1746_v27 = vpack.c.bf16 %v1013_v24, %v1012_v2  ;;  %v979_v28 = vsel %vm851_vm6, %v623_v7, %v915_v20  ;;  %v772_v30 = vadd.f32 %v1931_v9, %v2160_v40 }
 0x118   : > { %v1011_v29 = vsel %vm883_vm7, %v751_v11, %v947_v21  ;;  %1802 = vst [vmem:[%s2177_s17 + $0x28] sm:$0xff] %v1666_v23   ;;  %v1661_v31 = vpack.c.bf16 %v979_v28, %v978_v3  ;;  %v636_v34 = vadd.f32 %v2160_v40, %v635_v13  ;;  %v764_v36 = vadd.f32 %v2160_v40, %v763_v14 }
 0x119   : > { %v1741_v32 = vpack.c.bf16 %v1011_v29, %v1010_v15  ;;  %v984_v33 = vsel %vm856_vm8, %v644_v12, %v920_v25  ;;  %1818 = vst [vmem:[%s2177_s17 + $0xa8] sm:$0xff] %v1746_v27   ;;  %vm888_vm9 = vcmp.gt.f32.partialorder %v772_v30, 0.0  ;;  %v952_v35 = vmul.f32 0.2, %v772_v30 }
 0x11a   : > { %v647_v37 = vadd.f32 %v1900_v17, %v2160_v40  ;;  %1801 = vst [vmem:[%s2177_s17 + $0x20] sm:$0xff] %v1661_v31   ;;  %vm854_vm10 = vcmp.gt.f32.partialorder %v636_v34, 0.0  ;;  %v918_v38 = vmul.f32 0.2, %v636_v34  ;;  %v775_v39 = vadd.f32 %v1932_v18, %v2160_v40  ;;  %v1903_v42 = vpop.f32.mrb[16].mxu0  ;;  %v1935_v43 = vpop.f32.mrb[16].mxu1 }
 0x11b   : > { %1817 = vst [vmem:[%s2177_s17 + $0xa0] sm:$0xff] %v1741_v32   ;;  %v639_v41 = vadd.f32 %v2160_v40, %v638_v22  ;;  %v1016_v44 = vsel %vm888_vm9, %v772_v30, %v952_v35  ;;  %vm886_vm11 = vcmp.gt.f32.partialorder %v764_v36, 0.0  ;;  %v950_v45 = vmul.f32 0.2, %v764_v36  ;;  %v651_v46 = vpop.f32.mrb[17].mxu0  ;;  %v779_v47 = vpop.f32.mrb[17].mxu1 }
 0x11c   : > { %vm857_vm12 = vcmp.gt.f32.partialorder %v647_v37, 0.0  ;;  %v982_v48 = vsel %vm854_vm10, %v636_v34, %v918_v38  ;;  %v921_v49 = vmul.f32 0.2, %v647_v37  ;;  %vm889_vm13 = vcmp.gt.f32.partialorder %v775_v39, 0.0  ;;  %v1904_v51 = vpop.f32.mrb[18].mxu0  ;;  %v1936_v55 = vpop.f32.mrb[18].mxu1 }
 0x11d   : > { %v953_v50 = vmul.f32 0.2, %v775_v39  ;;  %v1014_v52 = vsel %vm886_vm11, %v764_v36, %v950_v45  ;;  %vm855_vm14 = vcmp.gt.f32.partialorder %v639_v41, 0.0  ;;  %v919_v53 = vmul.f32 0.2, %v639_v41  ;;  %v654_v56 = vpop.f32.mrb[19].mxu0 }
 0x11e   : > { %v767_v54 = vadd.f32 %v2160_v40, %v766_v26  ;;  %v985_v57 = vsel %vm857_vm12, %v647_v37, %v921_v49  ;;  %v660_v59 = vadd.f32 %v1903_v42, %v2160_v40  ;;  %v788_v60 = vadd.f32 %v1935_v43, %v2160_v40  ;;  %v782_v61 = vpop.f32.mrb[19].mxu1 }
 0x11f   : > { %v1017_v58 = vsel %vm889_vm13, %v775_v39, %v953_v50  ;;  %v1676_v62 = vpack.c.bf16 %v985_v57, %v984_v33  ;;  %v983_v0 = vsel %vm855_vm14, %v639_v41, %v919_v53  ;;  %v652_v5 = vadd.f32 %v2160_v40, %v651_v46 }
 0x120   : > { %v1756_v63 = vpack.c.bf16 %v1017_v58, %v1016_v44  ;;  %vm887_vm15 = vcmp.gt.f32.partialorder %v767_v54, 0.0  ;;  %v1671_v1 = vpack.c.bf16 %v983_v0, %v982_v48  ;;  %v951_v2 = vmul.f32 0.2, %v767_v54 }
 0x121   : > { %vm860_vm0 = vcmp.gt.f32.partialorder %v660_v59, 0.0  ;;  %v924_v3 = vmul.f32 0.2, %v660_v59  ;;  %1804 = vst [vmem:[%s2177_s17 + $0x38] sm:$0xff] %v1676_v62   ;;  %vm892_vm1 = vcmp.gt.f32.partialorder %v788_v60, 0.0  ;;  %v780_v6 = vadd.f32 %v2160_v40, %v779_v47 }
 0x122   : > { %1820 = vst [vmem:[%s2177_s17 + $0xb8] sm:$0xff] %v1756_v63   ;;  %v956_v4 = vmul.f32 0.2, %v788_v60  ;;  %1803 = vst [vmem:[%s2177_s17 + $0x30] sm:$0xff] %v1671_v1   ;;  %v1015_v7 = vsel %vm887_vm15, %v767_v54, %v951_v2  ;;  %v663_v9 = vadd.f32 %v1904_v51, %v2160_v40  ;;  %v791_v10 = vadd.f32 %v1936_v55, %v2160_v40  ;;  %v1907_v11 = vpop.f32.mrb[20].mxu0  ;;  %v1939_v12 = vpop.f32.mrb[20].mxu1 }
 0x123   : > { %v988_v8 = vsel %vm860_vm0, %v660_v59, %v924_v3  ;;  %v1751_v13 = vpack.c.bf16 %v1015_v7, %v1014_v52  ;;  %vm858_vm2 = vcmp.gt.f32.partialorder %v652_v5, 0.0  ;;  %v922_v15 = vmul.f32 0.2, %v652_v5  ;;  %v667_v16 = vpop.f32.mrb[21].mxu0  ;;  %v795_v17 = vpop.f32.mrb[21].mxu1 }
 0x124   : > { %v1020_v14 = vsel %vm892_vm1, %v788_v60, %v956_v4  ;;  %vm890_vm3 = vcmp.gt.f32.partialorder %v780_v6, 0.0  ;;  %v954_v18 = vmul.f32 0.2, %v780_v6  ;;  %vm861_vm4 = vcmp.gt.f32.partialorder %v663_v9, 0.0  ;;  %v1908_v23 = vpop.f32.mrb[22].mxu0  ;;  %v1940_v24 = vpop.f32.mrb[22].mxu1 }
 0x125   : > { %v925_v19 = vmul.f32 0.2, %v663_v9  ;;  %1819 = vst [vmem:[%s2177_s17 + $0xb0] sm:$0xff] %v1751_v13   ;;  %v986_v20 = vsel %vm858_vm2, %v652_v5, %v922_v15  ;;  %vm893_vm5 = vcmp.gt.f32.partialorder %v791_v10, 0.0  ;;  %v957_v21 = vmul.f32 0.2, %v791_v10 }
 0x126   : > { %v655_v22 = vadd.f32 %v2160_v40, %v654_v56  ;;  %v1018_v25 = vsel %vm890_vm3, %v780_v6, %v954_v18  ;;  %v783_v27 = vadd.f32 %v2160_v40, %v782_v61  ;;  %v676_v28 = vadd.f32 %v1907_v11, %v2160_v40  ;;  %v670_v29 = vpop.f32.mrb[23].mxu0  ;;  %v798_v30 = vpop.f32.mrb[23].mxu1 }
 0x127   : > { %v989_v26 = vsel %vm861_vm4, %v663_v9, %v925_v19  ;;  %v1021_v32 = vsel %vm893_vm5, %v791_v10, %v957_v21  ;;  %v804_v38 = vadd.f32 %v1939_v12, %v2160_v40  ;;  %v668_v39 = vadd.f32 %v2160_v40, %v667_v16 }
 0x128   : > { %v1686_v31 = vpack.c.bf16 %v989_v26, %v988_v8  ;;  %vm859_vm6 = vcmp.gt.f32.partialorder %v655_v22, 0.0  ;;  %v923_v33 = vmul.f32 0.2, %v655_v22  ;;  %v1766_v34 = vpack.c.bf16 %v1021_v32, %v1020_v14 }
 0x129   : > { %vm891_vm7 = vcmp.gt.f32.partialorder %v783_v27, 0.0  ;;  %v955_v35 = vmul.f32 0.2, %v783_v27  ;;  %vm864_vm8 = vcmp.gt.f32.partialorder %v676_v28, 0.0  ;;  %v928_v37 = vmul.f32 0.2, %v676_v28 }
 0x12a   : > { %1806 = vst [vmem:[%s2177_s17 + $0x48] sm:$0xff] %v1686_v31   ;;  %v987_v36 = vsel %vm859_vm6, %v655_v22, %v923_v33  ;;  %1822 = vst [vmem:[%s2177_s17 + $0xc8] sm:$0xff] %v1766_v34   ;;  %v796_v43 = vadd.f32 %v2160_v40, %v795_v17  ;;  %v679_v44 = vadd.f32 %v1908_v23, %v2160_v40  ;;  %v1911_v45 = vpop.f32.mrb[24].mxu0  ;;  %v1943_v46 = vpop.f32.mrb[24].mxu1  ;;  %vm896_vm9 = vcmp.gt.f32.partialorder %v804_v38, 0.0 }
 0x12b   : > { %v1681_v41 = vpack.c.bf16 %v987_v36, %v986_v20  ;;  %v1019_v42 = vsel %vm891_vm7, %v783_v27, %v955_v35  ;;  %v960_v48 = vmul.f32 0.2, %v804_v38  ;;  %v683_v49 = vpop.f32.mrb[25].mxu0  ;;  %v811_v50 = vpop.f32.mrb[25].mxu1  ;;  %v992_v51 = vsel %vm864_vm8, %v676_v28, %v928_v37 }
 0x12c   : > { %v1761_v47 = vpack.c.bf16 %v1019_v42, %v1018_v25  ;;  %vm862_vm10 = vcmp.gt.f32.partialorder %v668_v39, 0.0  ;;  %v926_v52 = vmul.f32 0.2, %v668_v39  ;;  %v958_v53 = vmul.f32 0.2, %v796_v43  ;;  %v1912_v56 = vpop.f32.mrb[26].mxu0 }
 0x12d   : > { %1805 = vst [vmem:[%s2177_s17 + $0x40] sm:$0xff] %v1681_v41   ;;  %vm894_vm11 = vcmp.gt.f32.partialorder %v796_v43, 0.0  ;;  %vm865_vm12 = vcmp.gt.f32.partialorder %v679_v44, 0.0  ;;  %v929_v54 = vmul.f32 0.2, %v679_v44  ;;  %v807_v55 = vadd.f32 %v1940_v24, %v2160_v40  ;;  %v1944_v57 = vpop.f32.mrb[26].mxu1 }
 0x12e   : > { %1821 = vst [vmem:[%s2177_s17 + $0xc0] sm:$0xff] %v1761_v47   ;;  %v1024_v58 = vsel %vm896_vm9, %v804_v38, %v960_v48  ;;  %v990_v59 = vsel %vm862_vm10, %v668_v39, %v926_v52  ;;  %v671_v60 = vadd.f32 %v2160_v40, %v670_v29  ;;  %v799_v61 = vadd.f32 %v2160_v40, %v798_v30  ;;  %v686_v62 = vpop.f32.mrb[27].mxu0  ;;  %v814_v63 = vpop.f32.mrb[27].mxu1 }
 0x12f   : > { %v993_v0 = vsel %vm865_vm12, %v679_v44, %v929_v54  ;;  %vm897_vm13 = vcmp.gt.f32.partialorder %v807_v55, 0.0  ;;  %v961_v1 = vmul.f32 0.2, %v807_v55  ;;  %v692_v2 = vadd.f32 %v1911_v45, %v2160_v40 }
 0x130   : > { %v1696_v3 = vpack.c.bf16 %v993_v0, %v992_v51  ;;  %vm863_vm14 = vcmp.gt.f32.partialorder %v671_v60, 0.0  ;;  %v927_v4 = vmul.f32 0.2, %v671_v60  ;;  %vm895_vm15 = vcmp.gt.f32.partialorder %v799_v61, 0.0 }
 0x131   : > { %v1025_v5 = vsel %vm897_vm13, %v807_v55, %v961_v1  ;;  %v959_v6 = vmul.f32 0.2, %v799_v61  ;;  %vm868_vm0 = vcmp.gt.f32.partialorder %v692_v2, 0.0  ;;  %v932_v7 = vmul.f32 0.2, %v692_v2 }
 0x132   : > { %1808 = vst [vmem:[%s2177_s17 + $0x58] sm:$0xff] %v1696_v3   ;;  %v1776_v8 = vpack.c.bf16 %v1025_v5, %v1024_v58  ;;  %v991_v9 = vsel %vm863_vm14, %v671_v60, %v927_v4  ;;  %v820_v10 = vadd.f32 %v1943_v46, %v2160_v40  ;;  %v684_v11 = vadd.f32 %v2160_v40, %v683_v49  ;;  %v1915_v12 = vpop.f32.mrb[28].mxu0  ;;  %v1947_v13 = vpop.f32.mrb[28].mxu1 }
 0x133   : > { %v1022_v14 = vsel %vm894_vm11, %v796_v43, %v958_v53  ;;  %v1691_v15 = vpack.c.bf16 %v991_v9, %v990_v59  ;;  %v1023_v16 = vsel %vm895_vm15, %v799_v61, %v959_v6  ;;  %v812_v17 = vadd.f32 %v2160_v40, %v811_v50  ;;  %v699_v18 = vpop.f32.mrb[29].mxu0  ;;  %v827_v19 = vpop.f32.mrb[29].mxu1 }
 0x134   : > { %1824 = vst [vmem:[%s2177_s17 + $0xd8] sm:$0xff] %v1776_v8   ;;  %v1771_v20 = vpack.c.bf16 %v1023_v16, %v1022_v14  ;;  %vm900_vm1 = vcmp.gt.f32.partialorder %v820_v10, 0.0  ;;  %v964_v21 = vmul.f32 0.2, %v820_v10  ;;  %vm866_vm2 = vcmp.gt.f32.partialorder %v684_v11, 0.0  ;;  %v1916_v22 = vpop.f32.mrb[30].mxu0 }
 0x135   : > { %v1948_v23 = vpop.f32.mrb[30].mxu1  ;;  %1807 = vst [vmem:[%s2177_s17 + $0x50] sm:$0xff] %v1691_v15   ;;  %v996_v24 = vsel %vm868_vm0, %v692_v2, %v932_v7  ;;  %v930_v25 = vmul.f32 0.2, %v684_v11  ;;  %vm898_vm3 = vcmp.gt.f32.partialorder %v812_v17, 0.0  ;;  %v695_v26 = vadd.f32 %v1912_v56, %v2160_v40  ;;  %v702_v27 = vpop.f32.mrb[31].mxu0 }
 0x136   : > { %1823 = vst [vmem:[%s2177_s17 + $0xd0] sm:$0xff] %v1771_v20   ;;  %v962_v28 = vmul.f32 0.2, %v812_v17  ;;  %v823_v29 = vadd.f32 %v1944_v57, %v2160_v40  ;;  %v687_v30 = vadd.f32 %v2160_v40, %v686_v62  ;;  %v815_v31 = vadd.f32 %v2160_v40, %v814_v63  ;;  %v830_v32 = vpop.f32.mrb[31].mxu1 }
 0x137   : > { %v1028_v33 = vsel %vm900_vm1, %v820_v10, %v964_v21  ;;  %v994_v34 = vsel %vm866_vm2, %v684_v11, %v930_v25  ;;  %vm869_vm4 = vcmp.gt.f32.partialorder %v695_v26, 0.0  ;;  %v933_v35 = vmul.f32 0.2, %v695_v26 }
 0x138   : > { %vm901_vm5 = vcmp.gt.f32.partialorder %v823_v29, 0.0  ;;  %v965_v36 = vmul.f32 0.2, %v823_v29  ;;  %vm867_vm6 = vcmp.gt.f32.partialorder %v687_v30, 0.0  ;;  %v931_v37 = vmul.f32 0.2, %v687_v30 }
 0x139   : > { %v997_v38 = vsel %vm869_vm4, %v695_v26, %v933_v35  ;;  %vm899_vm7 = vcmp.gt.f32.partialorder %v815_v31, 0.0  ;;  %v963_v39 = vmul.f32 0.2, %v815_v31  ;;  %v708_v41 = vadd.f32 %v1915_v12, %v2160_v40 }
 0x13a   : > { %v1706_v42 = vpack.c.bf16 %v997_v38, %v996_v24  ;;  %v1029_v43 = vsel %vm901_vm5, %v823_v29, %v965_v36  ;;  %v995_v44 = vsel %vm867_vm6, %v687_v30, %v931_v37  ;;  %v836_v45 = vadd.f32 %v1947_v13, %v2160_v40 }
 0x13b   : > { %v1026_v46 = vsel %vm898_vm3, %v812_v17, %v962_v28  ;;  %v1786_v47 = vpack.c.bf16 %v1029_v43, %v1028_v33  ;;  %v1701_v48 = vpack.c.bf16 %v995_v44, %v994_v34  ;;  %v1027_v49 = vsel %vm899_vm7, %v815_v31, %v963_v39 }
 0x13c   : > { %1810 = vst [vmem:[%s2177_s17 + $0x68] sm:$0xff] %v1706_v42   ;;  %v1781_v50 = vpack.c.bf16 %v1027_v49, %v1026_v46  ;;  %vm872_vm8 = vcmp.gt.f32.partialorder %v708_v41, 0.0  ;;  %v936_v51 = vmul.f32 0.2, %v708_v41  ;;  %v968_v52 = vmul.f32 0.2, %v836_v45 }
 0x13d   : > { %1826 = vst [vmem:[%s2177_s17 + $0xe8] sm:$0xff] %v1786_v47   ;;  %1809 = vst [vmem:[%s2177_s17 + $0x60] sm:$0xff] %v1701_v48   ;;  %v700_v53 = vadd.f32 %v2160_v40, %v699_v18  ;;  %v828_v54 = vadd.f32 %v2160_v40, %v827_v19  ;;  %v711_v55 = vadd.f32 %v1916_v22, %v2160_v40  ;;  %vm904_vm9 = vcmp.gt.f32.partialorder %v836_v45, 0.0 }
 0x13e   : > { %v839_v56 = vadd.f32 %v1948_v23, %v2160_v40  ;;  %1825 = vst [vmem:[%s2177_s17 + $0xe0] sm:$0xff] %v1781_v50   ;;  %v703_v57 = vadd.f32 %v2160_v40, %v702_v27  ;;  %v831_v58 = vadd.f32 %v2160_v40, %v830_v32  ;;  %v1000_v59 = vsel %vm872_vm8, %v708_v41, %v936_v51 }
 0x13f   : > { %vm870_vm10 = vcmp.gt.f32.partialorder %v700_v53, 0.0  ;;  %v934_v60 = vmul.f32 0.2, %v700_v53  ;;  %v966_v61 = vmul.f32 0.2, %v828_v54  ;;  %vm873_vm11 = vcmp.gt.f32.partialorder %v711_v55, 0.0 }
 0x140   : > { %v937_v62 = vmul.f32 0.2, %v711_v55  ;;  %vm905_vm12 = vcmp.gt.f32.partialorder %v839_v56, 0.0  ;;  %v969_v63 = vmul.f32 0.2, %v839_v56  ;;  %v1032_v0 = vsel %vm904_vm9, %v836_v45, %v968_v52 }
 0x141   : > { %vm902_vm13 = vcmp.gt.f32.partialorder %v828_v54, 0.0  ;;  %vm871_vm14 = vcmp.gt.f32.partialorder %v703_v57, 0.0  ;;  %v935_v1 = vmul.f32 0.2, %v703_v57  ;;  %vm903_vm15 = vcmp.gt.f32.partialorder %v831_v58, 0.0 }
 0x142   : > { %v1001_v2 = vsel %vm873_vm11, %v711_v55, %v937_v62  ;;  %v1033_v3 = vsel %vm905_vm12, %v839_v56, %v969_v63  ;;  %v967_v40 = vmul.f32 0.2, %v831_v58  ;;  %v998_v4 = vsel %vm870_vm10, %v700_v53, %v934_v60 }
 0x143   : > { %v1716_v5 = vpack.c.bf16 %v1001_v2, %v1000_v59  ;;  %v1796_v6 = vpack.c.bf16 %v1033_v3, %v1032_v0  ;;  %v999_v7 = vsel %vm871_vm14, %v703_v57, %v935_v1  ;;  %v1030_v8 = vsel %vm902_vm13, %v828_v54, %v966_v61 }
 0x144   : > { %v1711_v9 = vpack.c.bf16 %v999_v7, %v998_v4  ;;  %v1031_v10 = vsel %vm903_vm15, %v831_v58, %v967_v40 }
 0x145   : > { %1812 = vst [vmem:[%s2177_s17 + $0x78] sm:$0xff] %v1716_v5   ;;  %1828 = vst [vmem:[%s2177_s17 + $0xf8] sm:$0xff] %v1796_v6   ;;  %v1791_v11 = vpack.c.bf16 %v1031_v10, %v1030_v8 }
 0x146   : > { %1811 = vst [vmem:[%s2177_s17 + $0x70] sm:$0xff] %v1711_v9  }
 0x147   : > { %1827 = vst [vmem:[%s2177_s17 + $0xf0] sm:$0xff] %v1791_v11  }
 0x148 PF: > { %s13_s14 = sadd.s32 1, %s2051_s14   ;;  %s2287_s12 = smov %s2047_s13 }
 0x149   : > { %p10_p5 = scmp.ge.s32.totalorder %s13_s14, 4   ;;  %s2288_s13 = smov %s2290_s15 }
 0x14b   :  { %12 = sbr.rel (!%p10_p5) target bundleno = 2 (0x2), region = 68 }

// kernel: var_auto_enc_forward.8
= control target key start
LH: loop header
LB: loop body
LE: loop exit
PB: predicated region body
PF: predicated region fallthrough
CT: control target
= control target key end

     0   :  { %s1191_s12 = smov 0   ;;  %s1193_s13 = smov 0   ;;  %s1364_s0 = inlined_call_operand.vmem [shape: bf16[128,512], index: 0, kind: input, shape index: {}]   ;;  %s1365_s1 = inlined_call_operand.vmem [shape: bf16[512,128], index: 1, kind: input, shape index: {}]   ;;  %s1366_s2 = inlined_call_operand.vmem [shape: f32[1,128], index: 2, kind: input, shape index: {}]   ;;  %s1367_s3 = inlined_call_operand.vmem [shape: bf16[128,128], index: 3, kind: output, shape index: {}]  }
   0x1   :  { %s1195_s14 = smov 0  }
   0x2 LB: > { %s25_s15 = sadd.s32 1, %s1165_s13  ;;  %p890_p0 = scmp.ge.s32.totalorder %s1169_s14, 1  ;;  %s1169_s14 = sphi %s1195_s14, %s13_s14   ;;  %s1165_s13 = sphi %s1193_s13, %s1369_s13   ;;  %s1161_s12 = sphi %s1191_s12, %s1368_s12  }
   0x3   : > { %p27_p1 = scmp.ge.s32.totalorder %s25_s15, 2  ;;  %p170_p2 = scmp.lt.s32.totalorder %s1169_s14, 3 }
   0x5   : > { %s1371_s15 = smov (%p27_p1, %s25_s15), 0  ;;  %p171_p3 = pnand %p890_p0, %p170_p2 }
   0x6   : > { %v1091_v0 = vld [vmem:[%s1365_s1 + $0x40] sm:$0xff] (!%p171_p3)   ;;  %v1095_v4 = vld [vmem:[%s1365_s1 + $0x48] sm:$0xff] (!%p171_p3)   ;;  %v1099_v8 = vld [vmem:[%s1365_s1 + $0x50] sm:$0xff] (!%p171_p3)   ;;  %s891_s25 = sshll.u32 (!%p171_p3), %s1161_s12, 3 }
   0x7   : > { %174 = sbr.rel (%p171_p3) target bundleno = 291 (0x123), region = 32  ;;  %v1092_v1 = vld [vmem:[%s1365_s1 + $0xc0] sm:$0xff] (!%p171_p3)   ;;  %987 = vmatprep.subr.bf16.mxu0 (!%p171_p3), %v1091_v0  ;;  %v1096_v5 = vld [vmem:[%s1365_s1 + $0xc8] sm:$0xff] (!%p171_p3)   ;;  %v1100_v9 = vld [vmem:[%s1365_s1 + $0xd0] sm:$0xff] (!%p171_p3)   ;;  %p206_p4 = scmp.lt.s32.totalorder (!%p171_p3), %s891_s25, 15 }
   0x8   : > { %v1093_v2 = vld [vmem:[%s1365_s1] sm:$0xff] (!%p171_p3)   ;;  %1027 = vmatprep.subr.bf16.mxu1 (!%p171_p3), %v1092_v1  ;;  %v1097_v6 = vld [vmem:[%s1365_s1 + $0x8] sm:$0xff] (!%p171_p3)   ;;  %v1101_v10 = vld [vmem:[%s1365_s1 + $0x10] sm:$0xff] (!%p171_p3)  }
   0x9   : > { %v1094_v3 = vld [vmem:[%s1365_s1 + $0x80] sm:$0xff] (!%p171_p3)   ;;  %988 = vmatpush3.bf16.msra.mxu0 (!%p171_p3), %v1093_v2  ;;  %v1098_v7 = vld [vmem:[%s1365_s1 + $0x88] sm:$0xff] (!%p171_p3)   ;;  %v1102_v11 = vld [vmem:[%s1365_s1 + $0x90] sm:$0xff] (!%p171_p3)  }
   0xa   : > { %1028 = vmatpush3.bf16.msra.mxu1 (!%p171_p3), %v1094_v3  ;;  %989 = vmatprep.subr.bf16.mxu0 (!%p171_p3), %v1095_v4  ;;  %v1103_v12 = vld [vmem:[%s1365_s1 + $0x58] sm:$0xff] (!%p171_p3)   ;;  %v1107_v16 = vld [vmem:[%s1365_s1 + $0x60] sm:$0xff] (!%p171_p3)   ;;  %v1111_v20 = vld [vmem:[%s1365_s1 + $0x68] sm:$0xff] (!%p171_p3)  }
   0xb   : > { %1029 = vmatprep.subr.bf16.mxu1 (!%p171_p3), %v1096_v5  ;;  %v1104_v13 = vld [vmem:[%s1365_s1 + $0xd8] sm:$0xff] (!%p171_p3)   ;;  %v1108_v17 = vld [vmem:[%s1365_s1 + $0xe0] sm:$0xff] (!%p171_p3)   ;;  %v1112_v21 = vld [vmem:[%s1365_s1 + $0xe8] sm:$0xff] (!%p171_p3)  }
   0xc   : > { %v1105_v14 = vld [vmem:[%s1365_s1 + $0x18] sm:$0xff] (!%p171_p3)   ;;  %v1109_v18 = vld [vmem:[%s1365_s1 + $0x20] sm:$0xff] (!%p171_p3)   ;;  %v1113_v22 = vld [vmem:[%s1365_s1 + $0x28] sm:$0xff] (!%p171_p3)  }
   0xd   : > { %990 = vmatpush3.bf16.msra.mxu0 (!%p171_p3), %v1097_v6  ;;  %v1106_v15 = vld [vmem:[%s1365_s1 + $0x98] sm:$0xff] (!%p171_p3)   ;;  %v1110_v19 = vld [vmem:[%s1365_s1 + $0xa0] sm:$0xff] (!%p171_p3)   ;;  %v1114_v23 = vld [vmem:[%s1365_s1 + $0xa8] sm:$0xff] (!%p171_p3)  }
   0xe   : > { %1030 = vmatpush3.bf16.msra.mxu1 %v1098_v7  ;;  %991 = vmatprep.subr.bf16.mxu0 %v1099_v8  ;;  %s1373_s25 = smov (!%p206_p4, %s891_s25), 15  ;;  %v1115_v24 = vld [vmem:[%s1365_s1 + $0x70] sm:$0xff]   ;;  %v1119_v28 = vld [vmem:[%s1365_s1 + $0x78] sm:$0xff]   ;;  %v1335_v50 = vld [vmem:[%s1366_s2] ss:$0 sm:$0xff] }
   0xf   : > { %1031 = vmatprep.subr.bf16.mxu1 %v1100_v9  ;;  %v1116_v25 = vld [vmem:[%s1365_s1 + $0xf0] sm:$0xff]   ;;  %s955_s24 = sshll.u32 %s1373_s25, 4  ;;  %v1120_v29 = vld [vmem:[%s1365_s1 + $0xf8] sm:$0xff]   ;;  %s895_s17 = sshll.u32 %s1373_s25, 2 }
  0x10   : > { %v1117_v26 = vld [vmem:[%s1365_s1 + $0x30] sm:$0xff]   ;;  %s1308_s12 = scalar_lea.vmem %s1364_s0, %s955_s24  ;;  %v1121_v30 = vld [vmem:[%s1365_s1 + $0x38] sm:$0xff]   ;;  %s1343_s20 = scalar_lea.vmem %s1367_s3, %s895_s17 }
  0x11   : > { %992 = vmatpush3.bf16.msra.mxu0 %v1101_v10  ;;  %v1118_v27 = vld [vmem:[%s1365_s1 + $0xb0] sm:$0xff]   ;;  %v1122_v31 = vld [vmem:[%s1365_s1 + $0xb8] sm:$0xff]  }
  0x12   : > { %1032 = vmatpush3.bf16.msra.mxu1 %v1102_v11  ;;  %993 = vmatprep.subr.bf16.mxu0 %v1103_v12  ;;  %v1123_v32 = vld [vmem:[%s1308_s12] ss:$16 sps:$4 sm:$0xff]   ;;  %v1125_v33 = vld [vmem:[%s1308_s12 + $0x4] ss:$16 sps:$4 sm:$0xff]   ;;  %v1126_v34 = vld [vmem:[%s1308_s12 + $0x8] ss:$16 sps:$4 sm:$0xff]  }
  0x13   : > { %1033 = vmatprep.subr.bf16.mxu1 %v1104_v13  ;;  %v1128_v35 = vld [vmem:[%s1308_s12 + $0xc] ss:$16 sps:$4 sm:$0xff]   ;;  %620 = vmatprep.mubr.bf16.mxu0 %v1125_v33  ;;  %v1129_v36 = vld [vmem:[%s1308_s12 + $0x24] ss:$16 sps:$4 sm:$0xff]   ;;  %v1133_v38 = vld [vmem:[%s1308_s12 + $0x20] ss:$16 sps:$4 sm:$0xff]  }
  0x14   : > { %685 = vmatprep.mubr.bf16.mxu1 %v1128_v35  ;;  %v1131_v37 = vld [vmem:[%s1308_s12 + $0x2c] ss:$16 sps:$4 sm:$0xff]   ;;  %v1134_v39 = vld [vmem:[%s1308_s12 + $0x28] ss:$16 sps:$4 sm:$0xff]   ;;  %v1135_v40 = vld [vmem:[%s1308_s12 + $0x44] ss:$16 sps:$4 sm:$0xff]  }
  0x15   : > { %994 = vmatpush3.bf16.msra.mxu0 %v1105_v14  ;;  %v1137_v41 = vld [vmem:[%s1308_s12 + $0x4c] ss:$16 sps:$4 sm:$0xff]   ;;  %v1139_v42 = vld [vmem:[%s1308_s12 + $0x40] ss:$16 sps:$4 sm:$0xff]   ;;  %v1140_v43 = vld [vmem:[%s1308_s12 + $0x48] ss:$16 sps:$4 sm:$0xff]  }
  0x16   : > { %1034 = vmatpush3.bf16.msra.mxu1 %v1106_v15  ;;  %995 = vmatprep.subr.bf16.mxu0 %v1107_v16  ;;  %v1141_v44 = vld [vmem:[%s1308_s12 + $0x64] ss:$16 sps:$4 sm:$0xff]   ;;  %v1143_v45 = vld [vmem:[%s1308_s12 + $0x6c] ss:$16 sps:$4 sm:$0xff]   ;;  %v1145_v46 = vld [vmem:[%s1308_s12 + $0x60] ss:$16 sps:$4 sm:$0xff]  }
  0x17   : > { %1035 = vmatprep.subr.bf16.mxu1 %v1108_v17  ;;  %v1146_v47 = vld [vmem:[%s1308_s12 + $0x68] ss:$16 sps:$4 sm:$0xff]  }
  0x19   : > { %996 = vmatpush3.bf16.msra.mxu0 %v1109_v18 }
  0x1a   : > { %1036 = vmatpush3.bf16.msra.mxu1 %v1110_v19  ;;  %997 = vmatprep.subr.bf16.mxu0 %v1111_v20 }
  0x1b   : > { %1037 = vmatprep.subr.bf16.mxu1 %v1112_v21 }
  0x1d   : > { %998 = vmatpush3.bf16.msra.mxu0 %v1113_v22 }
  0x1e   : > { %1038 = vmatpush3.bf16.msra.mxu1 %v1114_v23  ;;  %999 = vmatprep.subr.bf16.mxu0 %v1115_v24 }
  0x1f   : > { %1039 = vmatprep.subr.bf16.mxu1 %v1116_v25 }
  0x21   : > { %1000 = vmatpush3.bf16.msra.mxu0 %v1117_v26 }
  0x22   : > { %1040 = vmatpush3.bf16.msra.mxu1 %v1118_v27  ;;  %1001 = vmatprep.subr.bf16.mxu0 %v1119_v28 }
  0x23   : > { %1041 = vmatprep.subr.bf16.mxu1 %v1120_v29 }
  0x25   : > { %1002 = vmatpush3.bf16.msra.mxu0 %v1121_v30 }
  0x26   : > { %1042 = vmatpush3.bf16.msra.mxu1 %v1122_v31 }
  0x28   : > { %621 = vmatmul.mubr.bf16.vlgmr.msra.gmra.mrb[0].mxu0 %v1123_v32 }
  0x29   : > { %686 = vmatmul.mubr.bf16.vlgmr.msra.gmra.mrb[0].mxu1 %v1126_v34  ;;  %628 = vmatprep.mubr.bf16.mxu0 %v1129_v36 }
  0x2a   : > { %693 = vmatprep.mubr.bf16.mxu1 %v1131_v37 }
  0x30   : > { %629 = vmatmul.mubr.bf16.gmra.mrb[4].mxu0 %v1133_v38 }
  0x31   : > { %694 = vmatmul.mubr.bf16.gmra.mrb[4].mxu1 %v1134_v39  ;;  %636 = vmatprep.mubr.bf16.mxu0 %v1135_v40 }
  0x32   : > { %701 = vmatprep.mubr.bf16.mxu1 %v1137_v41 }
  0x38   : > { %637 = vmatmul.mubr.bf16.gmra.mrb[8].mxu0 %v1139_v42 }
  0x39   : > { %702 = vmatmul.mubr.bf16.gmra.mrb[8].mxu1 %v1140_v43  ;;  %644 = vmatprep.mubr.bf16.mxu0 %v1141_v44 }
  0x3a   : > { %709 = vmatprep.mubr.bf16.mxu1 %v1143_v45 }
  0x40   : > { %645 = vmatmul.mubr.bf16.gmra.mrb[12].mxu0 %v1145_v46 }
  0x41   : > { %710 = vmatmul.mubr.bf16.gmra.mrb[12].mxu1 %v1146_v47 }
  0xfb   : > { %v1003_v48 = vpop.f32.mrb[0].mxu0 }
  0xfc   : > { %v1043_v49 = vpop.f32.mrb[0].mxu1  ;;  %v1004_v51 = vpop.f32.mrb[1].mxu0 }
  0xfd   : > { %v1005_v52 = vadd.f32 %v1004_v51, %v1003_v48  ;;  %v1044_v53 = vpop.f32.mrb[1].mxu1  ;;  %v1006_v54 = vpop.f32.mrb[2].mxu0 }
  0xfe   : > { %v1045_v55 = vadd.f32 %v1044_v53, %v1043_v49  ;;  %v1046_v56 = vpop.f32.mrb[2].mxu1  ;;  %v1007_v57 = vpop.f32.mrb[3].mxu0 }
  0xff   : > { %v623_v58 = vadd.f32 %v1005_v52, %v1335_v50  ;;  %v1008_v59 = vadd.f32 %v1007_v57, %v1006_v54  ;;  %v1047_v60 = vpop.f32.mrb[3].mxu1 }
 0x100   : > { %v1048_v61 = vadd.f32 %v1047_v60, %v1046_v56 }
 0x101   : > { %v688_v62 = vadd.f32 %v1045_v55, %v623_v58  ;;  %v626_v63 = vadd.f32 %v1008_v59, %v1335_v50 }
 0x103   : > { %v726_v0 = vmul.f32 0.2, %v688_v62  ;;  %v691_v1 = vadd.f32 %v1048_v61, %v626_v63  ;;  %v1009_v2 = vpop.f32.mrb[4].mxu0  ;;  %vm718_vm0 = vcmp.gt.f32.partialorder %v688_v62, 0.0 }
 0x104   : > { %v1049_v3 = vpop.f32.mrb[4].mxu1  ;;  %v1010_v4 = vpop.f32.mrb[5].mxu0 }
 0x105   : > { %vm719_vm1 = vcmp.gt.f32.partialorder %v691_v1, 0.0  ;;  %v727_v5 = vmul.f32 0.2, %v691_v1  ;;  %v1011_v6 = vadd.f32 %v1010_v4, %v1009_v2  ;;  %v1050_v7 = vpop.f32.mrb[5].mxu1  ;;  %v1012_v8 = vpop.f32.mrb[6].mxu0  ;;  %v734_v12 = vsel %vm718_vm0, %v688_v62, %v726_v0 }
 0x106   : > { %v1051_v9 = vadd.f32 %v1050_v7, %v1049_v3  ;;  %v1052_v10 = vpop.f32.mrb[6].mxu1  ;;  %v1013_v11 = vpop.f32.mrb[7].mxu0 }
 0x107   : > { %v735_v13 = vsel %vm719_vm1, %v691_v1, %v727_v5  ;;  %v631_v14 = vadd.f32 %v1011_v6, %v1335_v50  ;;  %v1014_v15 = vadd.f32 %v1013_v11, %v1012_v8  ;;  %v1053_v16 = vpop.f32.mrb[7].mxu1 }
 0x108   : > { %v967_v17 = vpack.c.bf16 %v735_v13, %v734_v12  ;;  %v1054_v18 = vadd.f32 %v1053_v16, %v1052_v10 }
 0x109   : > { %v696_v19 = vadd.f32 %v1051_v9, %v631_v14  ;;  %v634_v20 = vadd.f32 %v1014_v15, %v1335_v50 }
 0x10a   : > { %968 = vst [vmem:[%s1343_s20] sm:$0xff] %v967_v17  }
 0x10b   : > { %v728_v21 = vmul.f32 0.2, %v696_v19  ;;  %v699_v22 = vadd.f32 %v1054_v18, %v634_v20  ;;  %v1015_v23 = vpop.f32.mrb[8].mxu0  ;;  %vm720_vm2 = vcmp.gt.f32.partialorder %v696_v19, 0.0 }
 0x10c   : > { %v1055_v24 = vpop.f32.mrb[8].mxu1  ;;  %v1016_v25 = vpop.f32.mrb[9].mxu0 }
 0x10d   : > { %vm721_vm3 = vcmp.gt.f32.partialorder %v699_v22, 0.0  ;;  %v729_v26 = vmul.f32 0.2, %v699_v22  ;;  %v1017_v27 = vadd.f32 %v1016_v25, %v1015_v23  ;;  %v1056_v28 = vpop.f32.mrb[9].mxu1  ;;  %v1018_v29 = vpop.f32.mrb[10].mxu0  ;;  %v736_v33 = vsel %vm720_vm2, %v696_v19, %v728_v21 }
 0x10e   : > { %v1057_v30 = vadd.f32 %v1056_v28, %v1055_v24  ;;  %v1058_v31 = vpop.f32.mrb[10].mxu1  ;;  %v1019_v32 = vpop.f32.mrb[11].mxu0 }
 0x10f   : > { %v737_v34 = vsel %vm721_vm3, %v699_v22, %v729_v26  ;;  %v639_v35 = vadd.f32 %v1017_v27, %v1335_v50  ;;  %v1020_v36 = vadd.f32 %v1019_v32, %v1018_v29  ;;  %v1059_v37 = vpop.f32.mrb[11].mxu1 }
 0x110   : > { %v972_v38 = vpack.c.bf16 %v737_v34, %v736_v33  ;;  %v1060_v39 = vadd.f32 %v1059_v37, %v1058_v31 }
 0x111   : > { %v704_v40 = vadd.f32 %v1057_v30, %v639_v35  ;;  %v642_v41 = vadd.f32 %v1020_v36, %v1335_v50 }
 0x112   : > { %984 = vst [vmem:[%s1343_s20 + $0x8] sm:$0xff] %v972_v38  }
 0x113   : > { %v730_v42 = vmul.f32 0.2, %v704_v40  ;;  %v707_v43 = vadd.f32 %v1060_v39, %v642_v41  ;;  %v1021_v44 = vpop.f32.mrb[12].mxu0  ;;  %vm722_vm4 = vcmp.gt.f32.partialorder %v704_v40, 0.0 }
 0x114   : > { %v1061_v45 = vpop.f32.mrb[12].mxu1  ;;  %v1022_v46 = vpop.f32.mrb[13].mxu0 }
 0x115   : > { %vm723_vm5 = vcmp.gt.f32.partialorder %v707_v43, 0.0  ;;  %v731_v47 = vmul.f32 0.2, %v707_v43  ;;  %v1023_v48 = vadd.f32 %v1022_v46, %v1021_v44  ;;  %v1062_v49 = vpop.f32.mrb[13].mxu1  ;;  %v1024_v51 = vpop.f32.mrb[14].mxu0  ;;  %v738_v55 = vsel %vm722_vm4, %v704_v40, %v730_v42 }
 0x116   : > { %v1063_v52 = vadd.f32 %v1062_v49, %v1061_v45  ;;  %v1064_v53 = vpop.f32.mrb[14].mxu1  ;;  %v1025_v54 = vpop.f32.mrb[15].mxu0 }
 0x117   : > { %v739_v56 = vsel %vm723_vm5, %v707_v43, %v731_v47  ;;  %v647_v57 = vadd.f32 %v1023_v48, %v1335_v50  ;;  %v1026_v58 = vadd.f32 %v1025_v54, %v1024_v51  ;;  %v1065_v59 = vpop.f32.mrb[15].mxu1 }
 0x118   : > { %v977_v60 = vpack.c.bf16 %v739_v56, %v738_v55  ;;  %v1066_v61 = vadd.f32 %v1065_v59, %v1064_v53 }
 0x119   : > { %v712_v62 = vadd.f32 %v1063_v52, %v647_v57  ;;  %v650_v63 = vadd.f32 %v1026_v58, %v1335_v50 }
 0x11a   : > { %985 = vst [vmem:[%s1343_s20 + $0x10] sm:$0xff] %v977_v60  }
 0x11b   : > { %v732_v0 = vmul.f32 0.2, %v712_v62  ;;  %v715_v1 = vadd.f32 %v1066_v61, %v650_v63  ;;  %vm724_vm6 = vcmp.gt.f32.partialorder %v712_v62, 0.0 }
 0x11d   : > { %vm725_vm7 = vcmp.gt.f32.partialorder %v715_v1, 0.0  ;;  %v733_v2 = vmul.f32 0.2, %v715_v1  ;;  %v740_v3 = vsel %vm724_vm6, %v712_v62, %v732_v0 }
 0x11f   : > { %v741_v4 = vsel %vm725_vm7, %v715_v1, %v733_v2 }
 0x120   : > { %v982_v5 = vpack.c.bf16 %v741_v4, %v740_v3 }
 0x122   : > { %986 = vst [vmem:[%s1343_s20 + $0x18] sm:$0xff] %v982_v5  }
 0x123 PF: > { %s13_s14 = sadd.s32 1, %s1169_s14   ;;  %s1368_s12 = smov %s1165_s13 }
 0x124   : > { %p10_p5 = scmp.ge.s32.totalorder %s13_s14, 4   ;;  %s1369_s13 = smov %s1371_s15 }
 0x126   :  { %12 = sbr.rel (!%p10_p5) target bundleno = 2 (0x2), region = 68 }

// kernel: tile.38
= control target key start
LH: loop header
LB: loop body
LE: loop exit
PB: predicated region body
PF: predicated region fallthrough
CT: control target
= control target key end

     0   :  { %s22_s0 = inlined_call_operand.vmem [shape: f32[32], index: 0, kind: input, shape index: {}]   ;;  %s23_s1 = inlined_call_operand.vmem [shape: f32[8,32], index: 1, kind: output, shape index: {}]  }
   0x1   :  { %v4_v0 = vld [vmem:[%s22_s0] ss:$0 sm:$0xff] }
   0x2   :  { %5 = vst [vmem:[%s23_s1] sm:$0xff] %v4_v0 }

// kernel: mul.62
= control target key start
LH: loop header
LB: loop body
LE: loop exit
PB: predicated region body
PF: predicated region fallthrough
CT: control target
= control target key end

     0   :  { %s7_s6 = smov 3  ;;  %s14_s9 = smov 3  ;;  %vm4_vm0 = vcmask 261120   ;;  %vm11_vm1 = vcmask 1048320   ;;  %vm18_vm2 = vcmask 785920   ;;  %vm25_vm3 = vcmask 523520   ;;  %s67_s0 = inlined_call_operand.vmem [shape: f32[8,32], index: 0, kind: input, shape index: {}]   ;;  %s68_s1 = inlined_call_operand.vmem [shape: f32[256], index: 1, kind: output, shape index: {}]  }
   0x1   :  { %v33_v0 = vld [vmem:[%s67_s0 + $0x3] ss:$4 sm:%s7_s6]   ;;  %s39_s10 = smov 96   ;;  %s21_s11 = smov 3  ;;  %v34_v1 = vld [vmem:[%s67_s0 + $0x2] ss:$4 sm:%s14_s9]  }
   0x2   :  { %9 = vrot.lane.b32.xlu0 %v33_v0, %s39_s10  ;;  %v35_v2 = vld [vmem:[%s67_s0 + $0x1] ss:$4 sm:%s21_s11]   ;;  %s2_s16 = smov 3  ;;  %s40_s17 = smov 32  }
   0x3   :  { %23 = vrot.lane.b32.xlu1 %v35_v2, %s40_s17  ;;  %v3_v3 = vld [vmem:[%s67_s0] ss:$4 sm:%s2_s16]   ;;  %s41_s0 = smov 64  }
   0x4   :  { %5 = vst.msk [vmem:[#allocation0] sm:$0x3] %vm4_vm0, %v3_v3  }
   0x6   :  { %16 = vrot.lane.b32.xlu0 %v34_v1, %s41_s0 }
  0x74   :  { %v10_v4 = vpop.permute.xlu0 %9  }
  0x75   :  { %12 = vst.msk [vmem:[#allocation0] sm:$0x3] %vm11_vm1, %v10_v4   ;;  %v24_v5 = vpop.permute.xlu1 %23  }
  0x78   :  { %v17_v6 = vpop.permute.xlu0 %16  }
  0x79   :  { %19 = vst.msk [vmem:[#allocation0] sm:$0x3] %vm18_vm2, %v17_v6  }
  0x7a   :  { %26 = vst.msk [vmem:[#allocation0] sm:$0x3] %vm25_vm3, %v24_v5  }
  0x81   :  { %v30_v7 = vld [vmem:[#allocation0] sm:$0x3] }
  0x82   :  { %32 = vst [vmem:[%s68_s1] sm:$0x3] %v30_v7 }

// kernel: var_auto_enc_forward.9
= control target key start
LH: loop header
LB: loop body
LE: loop exit
PB: predicated region body
PF: predicated region fallthrough
CT: control target
= control target key end

     0   :  { %s1242_s1 = inlined_call_operand.vmem [shape: bf16[1024,128], index: 1, kind: input, shape index: {}]   ;;  %s1243_s0 = inlined_call_operand.vmem [shape: bf16[16,1024], index: 0, kind: input, shape index: {}]   ;;  %s1244_s2 = inlined_call_operand.vmem [shape: f32[1,128], index: 2, kind: input, shape index: {}]   ;;  %s1245_s3 = inlined_call_operand.vmem [shape: bf16[16,128], index: 3, kind: output, shape index: {}]  }
   0x1   :  { %v936_v0 = vld [vmem:[%s1242_s1 + $0x40] sm:$0xff]   ;;  %v940_v4 = vld [vmem:[%s1242_s1 + $0x48] sm:$0xff]   ;;  %v944_v8 = vld [vmem:[%s1242_s1 + $0x50] sm:$0xff]  }
   0x2   :  { %v937_v1 = vld [vmem:[%s1242_s1 + $0xc0] sm:$0xff]   ;;  %848 = vmatprep.subr.bf16.mxu0 %v936_v0  ;;  %v941_v5 = vld [vmem:[%s1242_s1 + $0xc8] sm:$0xff]   ;;  %v945_v9 = vld [vmem:[%s1242_s1 + $0xd0] sm:$0xff]  }
   0x3   :  { %v938_v2 = vld [vmem:[%s1242_s1] sm:$0xff]   ;;  %870 = vmatprep.subr.bf16.mxu1 %v937_v1  ;;  %v942_v6 = vld [vmem:[%s1242_s1 + $0x8] sm:$0xff]   ;;  %v946_v10 = vld [vmem:[%s1242_s1 + $0x10] sm:$0xff]  }
   0x4   :  { %v939_v3 = vld [vmem:[%s1242_s1 + $0x80] sm:$0xff]   ;;  %849 = vmatpush3.bf16.msra.mxu0 %v938_v2  ;;  %v943_v7 = vld [vmem:[%s1242_s1 + $0x88] sm:$0xff]   ;;  %v947_v11 = vld [vmem:[%s1242_s1 + $0x90] sm:$0xff]  }
   0x5   :  { %871 = vmatpush3.bf16.msra.mxu1 %v939_v3  ;;  %850 = vmatprep.subr.bf16.mxu0 %v940_v4  ;;  %v948_v12 = vld [vmem:[%s1242_s1 + $0x58] sm:$0xff]   ;;  %v952_v16 = vld [vmem:[%s1242_s1 + $0x60] sm:$0xff]   ;;  %v956_v20 = vld [vmem:[%s1242_s1 + $0x68] sm:$0xff]  }
   0x6   :  { %872 = vmatprep.subr.bf16.mxu1 %v941_v5  ;;  %v949_v13 = vld [vmem:[%s1242_s1 + $0xd8] sm:$0xff]   ;;  %v953_v17 = vld [vmem:[%s1242_s1 + $0xe0] sm:$0xff]   ;;  %v957_v21 = vld [vmem:[%s1242_s1 + $0xe8] sm:$0xff]  }
   0x7   :  { %v950_v14 = vld [vmem:[%s1242_s1 + $0x18] sm:$0xff]   ;;  %v954_v18 = vld [vmem:[%s1242_s1 + $0x20] sm:$0xff]   ;;  %v958_v22 = vld [vmem:[%s1242_s1 + $0x28] sm:$0xff]  }
   0x8   :  { %851 = vmatpush3.bf16.msra.mxu0 %v942_v6  ;;  %v951_v15 = vld [vmem:[%s1242_s1 + $0x98] sm:$0xff]   ;;  %v955_v19 = vld [vmem:[%s1242_s1 + $0xa0] sm:$0xff]   ;;  %v959_v23 = vld [vmem:[%s1242_s1 + $0xa8] sm:$0xff]  }
   0x9   :  { %873 = vmatpush3.bf16.msra.mxu1 %v943_v7  ;;  %852 = vmatprep.subr.bf16.mxu0 %v944_v8  ;;  %v960_v24 = vld [vmem:[%s1242_s1 + $0x70] sm:$0xff]   ;;  %v964_v28 = vld [vmem:[%s1242_s1 + $0x78] sm:$0xff]   ;;  %v15_v32 = vld [vmem:[%s1243_s0] sm:$0xff] }
   0xa   :  { %874 = vmatprep.subr.bf16.mxu1 %v945_v9  ;;  %v961_v25 = vld [vmem:[%s1242_s1 + $0xf0] sm:$0xff]   ;;  %v965_v29 = vld [vmem:[%s1242_s1 + $0xf8] sm:$0xff]   ;;  %v19_v33 = vld [vmem:[%s1243_s0 + $0x20] sm:$0xff] }
   0xb   :  { %v962_v26 = vld [vmem:[%s1242_s1 + $0x30] sm:$0xff]   ;;  %v966_v30 = vld [vmem:[%s1242_s1 + $0x38] sm:$0xff]   ;;  %v16_v34 = vld [vmem:[%s1243_s0 + $0x8] sm:$0xff]  ;;  %v767_v35 = vcombine.low %v15_v32, %v19_v33  ;;  %v768_v36 = vcombine.high %v15_v32, %v19_v33 }
   0xc   :  { %853 = vmatpush3.bf16.msra.mxu0 %v946_v10  ;;  %v963_v27 = vld [vmem:[%s1242_s1 + $0xb0] sm:$0xff]   ;;  %v967_v31 = vld [vmem:[%s1242_s1 + $0xb8] sm:$0xff]   ;;  %v20_v37 = vld [vmem:[%s1243_s0 + $0x28] sm:$0xff] }
   0xd   :  { %875 = vmatpush3.bf16.msra.mxu1 %v947_v11  ;;  %854 = vmatprep.subr.bf16.mxu0 %v948_v12  ;;  %v769_v38 = vcombine.low %v16_v34, %v20_v37  ;;  %v770_v39 = vcombine.high %v16_v34, %v20_v37  ;;  %v968_v40 = vld [vmem:[%s1242_s1 + $0x140] sm:$0xff]   ;;  %v972_v44 = vld [vmem:[%s1242_s1 + $0x148] sm:$0xff]   ;;  %v976_v48 = vld [vmem:[%s1242_s1 + $0x150] sm:$0xff]  }
   0xe   :  { %876 = vmatprep.subr.bf16.mxu1 %v949_v13  ;;  %614 = vmatprep.mubr.bf16.mxu0 %v768_v36  ;;  %v969_v41 = vld [vmem:[%s1242_s1 + $0x1c0] sm:$0xff]   ;;  %v973_v45 = vld [vmem:[%s1242_s1 + $0x1c8] sm:$0xff]   ;;  %v977_v49 = vld [vmem:[%s1242_s1 + $0x1d0] sm:$0xff]  }
   0xf   :  { %655 = vmatprep.mubr.bf16.mxu1 %v770_v39  ;;  %v970_v42 = vld [vmem:[%s1242_s1 + $0x100] sm:$0xff]   ;;  %v974_v46 = vld [vmem:[%s1242_s1 + $0x108] sm:$0xff]   ;;  %v978_v50 = vld [vmem:[%s1242_s1 + $0x110] sm:$0xff]  }
  0x10   :  { %855 = vmatpush3.bf16.msra.mxu0 %v950_v14  ;;  %v971_v43 = vld [vmem:[%s1242_s1 + $0x180] sm:$0xff]   ;;  %v975_v47 = vld [vmem:[%s1242_s1 + $0x188] sm:$0xff]   ;;  %v979_v51 = vld [vmem:[%s1242_s1 + $0x190] sm:$0xff]  }
  0x11   :  { %877 = vmatpush3.bf16.msra.mxu1 %v951_v15  ;;  %856 = vmatprep.subr.bf16.mxu0 %v952_v16  ;;  %v980_v52 = vld [vmem:[%s1242_s1 + $0x158] sm:$0xff]   ;;  %v984_v56 = vld [vmem:[%s1242_s1 + $0x160] sm:$0xff]   ;;  %v988_v60 = vld [vmem:[%s1242_s1 + $0x168] sm:$0xff]  }
  0x12   :  { %878 = vmatprep.subr.bf16.mxu1 %v953_v17  ;;  %v981_v53 = vld [vmem:[%s1242_s1 + $0x1d8] sm:$0xff]   ;;  %v985_v57 = vld [vmem:[%s1242_s1 + $0x1e0] sm:$0xff]   ;;  %v989_v61 = vld [vmem:[%s1242_s1 + $0x1e8] sm:$0xff]  }
  0x13   :  { %v982_v54 = vld [vmem:[%s1242_s1 + $0x118] sm:$0xff]   ;;  %v986_v58 = vld [vmem:[%s1242_s1 + $0x120] sm:$0xff]   ;;  %v990_v62 = vld [vmem:[%s1242_s1 + $0x128] sm:$0xff]  }
  0x14   :  { %857 = vmatpush3.bf16.msra.mxu0 %v954_v18  ;;  %v983_v55 = vld [vmem:[%s1242_s1 + $0x198] sm:$0xff]   ;;  %v987_v59 = vld [vmem:[%s1242_s1 + $0x1a0] sm:$0xff]   ;;  %v991_v63 = vld [vmem:[%s1242_s1 + $0x1a8] sm:$0xff]  }
  0x15   :  { %879 = vmatpush3.bf16.msra.mxu1 %v955_v19  ;;  %858 = vmatprep.subr.bf16.mxu0 %v956_v20  ;;  %v992_v0 = vld [vmem:[%s1242_s1 + $0x170] sm:$0xff]   ;;  %v996_v4 = vld [vmem:[%s1242_s1 + $0x178] sm:$0xff]   ;;  %v766_v18 = vld [vmem:[%s1244_s2] ss:$0 sm:$0xff] }
  0x16   :  { %880 = vmatprep.subr.bf16.mxu1 %v957_v21  ;;  %v993_v1 = vld [vmem:[%s1242_s1 + $0x1f0] sm:$0xff]   ;;  %v997_v5 = vld [vmem:[%s1242_s1 + $0x1f8] sm:$0xff]  }
  0x17   :  { %v994_v2 = vld [vmem:[%s1242_s1 + $0x130] sm:$0xff]   ;;  %v998_v6 = vld [vmem:[%s1242_s1 + $0x138] sm:$0xff]  }
  0x18   :  { %859 = vmatpush3.bf16.msra.mxu0 %v958_v22  ;;  %v995_v3 = vld [vmem:[%s1242_s1 + $0x1b0] sm:$0xff]   ;;  %v999_v7 = vld [vmem:[%s1242_s1 + $0x1b8] sm:$0xff]  }
  0x19   :  { %881 = vmatpush3.bf16.msra.mxu1 %v959_v23  ;;  %860 = vmatprep.subr.bf16.mxu0 %v960_v24  ;;  %v17_v8 = vld [vmem:[%s1243_s0 + $0x10] sm:$0xff]  ;;  %v18_v12 = vld [vmem:[%s1243_s0 + $0x18] sm:$0xff] }
  0x1a   :  { %882 = vmatprep.subr.bf16.mxu1 %v961_v25  ;;  %v21_v9 = vld [vmem:[%s1243_s0 + $0x30] sm:$0xff]  ;;  %v22_v13 = vld [vmem:[%s1243_s0 + $0x38] sm:$0xff] }
  0x1b   :  { %v771_v10 = vcombine.low %v17_v8, %v21_v9  ;;  %v772_v11 = vcombine.high %v17_v8, %v21_v9  ;;  %v773_v14 = vcombine.low %v18_v12, %v22_v13  ;;  %v774_v15 = vcombine.high %v18_v12, %v22_v13 }
  0x1c   :  { %861 = vmatpush3.bf16.msra.mxu0 %v962_v26 }
  0x1d   :  { %883 = vmatpush3.bf16.msra.mxu1 %v963_v27  ;;  %862 = vmatprep.subr.bf16.mxu0 %v964_v28 }
  0x1e   :  { %884 = vmatprep.subr.bf16.mxu1 %v965_v29 }
  0x20   :  { %863 = vmatpush3.bf16.msra.mxu0 %v966_v30 }
  0x21   :  { %885 = vmatpush3.bf16.msra.mxu1 %v967_v31  ;;  %892 = vmatprep.subr.bf16.mxu0 %v968_v40 }
  0x22   :  { %914 = vmatprep.subr.bf16.mxu1 %v969_v41 }
  0x23   :  { %615 = vmatmul.mubr.bf16.vlgmr.msra.gmra.mrb[0].mxu0 %v767_v35 }
  0x24   :  { %656 = vmatmul.mubr.bf16.vlgmr.msra.gmra.mrb[0].mxu1 %v769_v38  ;;  %893 = vmatpush3.bf16.msra.mxu0 %v970_v42 }
  0x25   :  { %915 = vmatpush3.bf16.msra.mxu1 %v971_v43  ;;  %894 = vmatprep.subr.bf16.mxu0 %v972_v44 }
  0x26   :  { %916 = vmatprep.subr.bf16.mxu1 %v973_v45  ;;  %696 = vmatprep.mubr.bf16.mxu0 %v772_v11 }
  0x27   :  { %737 = vmatprep.mubr.bf16.mxu1 %v774_v15 }
  0x28   :  { %895 = vmatpush3.bf16.msra.mxu0 %v974_v46 }
  0x29   :  { %917 = vmatpush3.bf16.msra.mxu1 %v975_v47  ;;  %896 = vmatprep.subr.bf16.mxu0 %v976_v48 }
  0x2a   :  { %918 = vmatprep.subr.bf16.mxu1 %v977_v49 }
  0x2c   :  { %897 = vmatpush3.bf16.msra.mxu0 %v978_v50 }
  0x2d   :  { %919 = vmatpush3.bf16.msra.mxu1 %v979_v51  ;;  %898 = vmatprep.subr.bf16.mxu0 %v980_v52 }
  0x2e   :  { %920 = vmatprep.subr.bf16.mxu1 %v981_v53 }
  0x30   :  { %899 = vmatpush3.bf16.msra.mxu0 %v982_v54 }
  0x31   :  { %921 = vmatpush3.bf16.msra.mxu1 %v983_v55  ;;  %900 = vmatprep.subr.bf16.mxu0 %v984_v56 }
  0x32   :  { %922 = vmatprep.subr.bf16.mxu1 %v985_v57 }
  0x34   :  { %901 = vmatpush3.bf16.msra.mxu0 %v986_v58 }
  0x35   :  { %923 = vmatpush3.bf16.msra.mxu1 %v987_v59  ;;  %902 = vmatprep.subr.bf16.mxu0 %v988_v60 }
  0x36   :  { %924 = vmatprep.subr.bf16.mxu1 %v989_v61 }
  0x38   :  { %903 = vmatpush3.bf16.msra.mxu0 %v990_v62 }
  0x39   :  { %925 = vmatpush3.bf16.msra.mxu1 %v991_v63  ;;  %904 = vmatprep.subr.bf16.mxu0 %v992_v0 }
  0x3a   :  { %926 = vmatprep.subr.bf16.mxu1 %v993_v1 }
  0x3c   :  { %905 = vmatpush3.bf16.msra.mxu0 %v994_v2 }
  0x3d   :  { %927 = vmatpush3.bf16.msra.mxu1 %v995_v3  ;;  %906 = vmatprep.subr.bf16.mxu0 %v996_v4 }
  0x3e   :  { %928 = vmatprep.subr.bf16.mxu1 %v997_v5 }
  0x40   :  { %907 = vmatpush3.bf16.msra.mxu0 %v998_v6 }
  0x41   :  { %929 = vmatpush3.bf16.msra.mxu1 %v999_v7 }
  0x43   :  { %697 = vmatmul.mubr.bf16.vlgmr.msra.gmra.mrb[4].mxu0 %v771_v10 }
  0x44   :  { %738 = vmatmul.mubr.bf16.vlgmr.msra.gmra.mrb[4].mxu1 %v773_v14 }
  0xf6   :  { %v864_v16 = vpop.f32.mrb[0].mxu0 }
  0xf7   :  { %v886_v17 = vpop.f32.mrb[0].mxu1  ;;  %v865_v19 = vpop.f32.mrb[1].mxu0 }
  0xf8   :  { %v866_v20 = vadd.f32 %v865_v19, %v864_v16  ;;  %v887_v21 = vpop.f32.mrb[1].mxu1  ;;  %v867_v22 = vpop.f32.mrb[2].mxu0 }
  0xf9   :  { %v888_v23 = vadd.f32 %v887_v21, %v886_v17  ;;  %v889_v24 = vpop.f32.mrb[2].mxu1  ;;  %v868_v25 = vpop.f32.mrb[3].mxu0 }
  0xfa   :  { %v617_v26 = vadd.f32 %v866_v20, %v766_v18  ;;  %v869_v27 = vadd.f32 %v868_v25, %v867_v22  ;;  %v890_v28 = vpop.f32.mrb[3].mxu1 }
  0xfb   :  { %v891_v29 = vadd.f32 %v890_v28, %v889_v24 }
  0xfc   :  { %v658_v30 = vadd.f32 %v888_v23, %v617_v26  ;;  %v620_v31 = vadd.f32 %v869_v27, %v766_v18 }
  0xfe   :  { %v661_v32 = vadd.f32 %v891_v29, %v620_v31 }
 0x116   :  { %v908_v33 = vpop.f32.mrb[4].mxu0 }
 0x117   :  { %v930_v34 = vpop.f32.mrb[4].mxu1  ;;  %v909_v35 = vpop.f32.mrb[5].mxu0 }
 0x118   :  { %v910_v36 = vadd.f32 %v909_v35, %v908_v33  ;;  %v931_v37 = vpop.f32.mrb[5].mxu1  ;;  %v911_v38 = vpop.f32.mrb[6].mxu0 }
 0x119   :  { %v932_v39 = vadd.f32 %v931_v37, %v930_v34  ;;  %v933_v40 = vpop.f32.mrb[6].mxu1  ;;  %v912_v41 = vpop.f32.mrb[7].mxu0 }
 0x11a   :  { %v699_v42 = vadd.f32 %v910_v36, %v658_v30  ;;  %v913_v43 = vadd.f32 %v912_v41, %v911_v38  ;;  %v934_v44 = vpop.f32.mrb[7].mxu1 }
 0x11b   :  { %v935_v45 = vadd.f32 %v934_v44, %v933_v40 }
 0x11c   :  { %v740_v46 = vadd.f32 %v932_v39, %v699_v42  ;;  %v702_v47 = vadd.f32 %v913_v43, %v661_v32 }
 0x11e   :  { %v748_v48 = vmul.f32 0.2, %v740_v46  ;;  %v743_v49 = vadd.f32 %v935_v45, %v702_v47  ;;  %vm746_vm0 = vcmp.gt.f32.partialorder %v740_v46, 0.0 }
 0x120   :  { %vm747_vm1 = vcmp.gt.f32.partialorder %v743_v49, 0.0  ;;  %v749_v50 = vmul.f32 0.2, %v743_v49  ;;  %v750_v51 = vsel %vm746_vm0, %v740_v46, %v748_v48 }
 0x122   :  { %v751_v52 = vsel %vm747_vm1, %v743_v49, %v749_v50 }
 0x123   :  { %v846_v53 = vpack.c.bf16 %v751_v52, %v750_v51 }
 0x125   :  { %847 = vst [vmem:[%s1245_s3] sm:$0xff] %v846_v53  }

// kernel: tile.44
= control target key start
LH: loop header
LB: loop body
LE: loop exit
PB: predicated region body
PF: predicated region fallthrough
CT: control target
= control target key end

     0   :  { %s7_s6 = smov 3  ;;  %s14_s9 = smov 3  ;;  %vm4_vm0 = vcmask 261120   ;;  %vm11_vm1 = vcmask 1048320   ;;  %vm18_vm2 = vcmask 785920   ;;  %vm25_vm3 = vcmask 523520   ;;  %s76_s0 = inlined_call_operand.vmem [shape: f32[8,32], index: 0, kind: input, shape index: {}]   ;;  %s77_s1 = inlined_call_operand.vmem [shape: f32[1,256], index: 1, kind: output, shape index: {}]  }
   0x1   :  { %v38_v0 = vld [vmem:[%s76_s0 + $0x3] ss:$4 sm:%s7_s6]   ;;  %s45_s10 = smov 96   ;;  %s21_s11 = smov 3  ;;  %v39_v1 = vld [vmem:[%s76_s0 + $0x2] ss:$4 sm:%s14_s9]  }
   0x2   :  { %9 = vrot.lane.b32.xlu0 %v38_v0, %s45_s10  ;;  %v40_v2 = vld [vmem:[%s76_s0 + $0x1] ss:$4 sm:%s21_s11]   ;;  %s2_s16 = smov 3  ;;  %s46_s17 = smov 32  }
   0x3   :  { %23 = vrot.lane.b32.xlu1 %v40_v2, %s46_s17  ;;  %v3_v3 = vld [vmem:[%s76_s0] ss:$4 sm:%s2_s16]   ;;  %s47_s0 = smov 64  }
   0x4   :  { %5 = vst.msk [vmem:[#allocation0] ss:$8 sm:$0x3] %vm4_vm0, %v3_v3  }
   0x6   :  { %16 = vrot.lane.b32.xlu0 %v39_v1, %s47_s0 }
  0x74   :  { %v10_v4 = vpop.permute.xlu0 %9  }
  0x75   :  { %12 = vst.msk [vmem:[#allocation0] ss:$8 sm:$0x3] %vm11_vm1, %v10_v4   ;;  %v24_v5 = vpop.permute.xlu1 %23  }
  0x78   :  { %v17_v6 = vpop.permute.xlu0 %16  }
  0x79   :  { %19 = vst.msk [vmem:[#allocation0] ss:$8 sm:$0x3] %vm18_vm2, %v17_v6  }
  0x7a   :  { %26 = vst.msk [vmem:[#allocation0] ss:$8 sm:$0x3] %vm25_vm3, %v24_v5  }
  0x81   :  { %v30_v7 = vld [vmem:[#allocation0] sm:$0x1]  ;;  %v34_v8 = vld [vmem:[#allocation0 + $0x8] sm:$0x1] }
  0x82   :  { %32 = vst [vmem:[%s77_s1] sm:$0x1] %v30_v7  ;;  %41 = vst [vmem:[%s77_s1 + $0x1] sm:$0x1] %v34_v8 }

// kernel: var_auto_enc_forward.10
= control target key start
LH: loop header
LB: loop body
LE: loop exit
PB: predicated region body
PF: predicated region fallthrough
CT: control target
= control target key end

     0   :  { %20 = vsyncpa [#allocation3], 0  ;;  %v864_v2 = vmov 0.0   ;;  %v99_v10 = vlaneseq  ;;  %v865_v15 = vmov 1966171168   ;;  %s1124_s0 = inlined_call_operand.vmem [shape: bf16[2,256], index: 0, kind: input, shape index: {}]   ;;  %s1125_s1 = inlined_call_operand.vmem [shape: bf16[256,64], index: 1, kind: input, shape index: {}]   ;;  %s1126_s2 = inlined_call_operand.vmem [shape: f32[1,64], index: 2, kind: input, shape index: {}]   ;;  %s1127_s3 = inlined_call_operand.vmem [shape: bf16[64,32], index: 3, kind: input, shape index: {}]   ;;  %s1128_s4 = inlined_call_operand.vmem [shape: f32[1,32], index: 4, kind: input, shape index: {}]   ;;  %s1129_s5 = inlined_call_operand.vmem [shape: bf16[64,32], index: 5, kind: input, shape index: {}]   ;;  %s1130_s6 = inlined_call_operand.vmem [shape: f32[1,32], index: 6, kind: input, shape index: {}]   ;;  %s1131_s7 = inlined_call_operand.vmem [shape: f32[2,32], index: 7, kind: input, shape index: {}]   ;;  %s1132_s8 = inlined_call_operand.vmem [shape: bf16[32,64], index: 8, kind: input, shape index: {}]   ;;  %s1133_s9 = inlined_call_operand.vmem [shape: f32[1,64], index: 9, kind: input, shape index: {}]   ;;  %s1134_s10 = inlined_call_operand.vmem [shape: bf16[64,256], index: 10, kind: input, shape index: {}]   ;;  %s1135_s11 = inlined_call_operand.vmem [shape: f32[1,256], index: 11, kind: input, shape index: {}]   ;;  %s1136_s12 = inlined_call_operand.vmem [shape: bf16[2,256], index: 12, kind: output, shape index: {0}]   ;;  %s1137_s13 = inlined_call_operand.hbm [shape: f32[2,32], index: 13, kind: output, shape index: {1}]   ;;  %s1138_s14 = inlined_call_operand.hbm [shape: f32[2,32], index: 14, kind: output, shape index: {2}]  }
   0x1   :  { %v776_v0 = vld [vmem:[%s1125_s1 + $0x40] sm:$0xff]   ;;  %738 = vmatprep.subr.bf16.mxu1 %v864_v2  ;;  %v778_v3 = vld [vmem:[%s1125_s1 + $0x48] sm:$0xff]   ;;  %v780_v5 = vld [vmem:[%s1125_s1 + $0x50] sm:$0xff]   ;;  %v97_v16 = vunpack.c.l.s4 %v865_v15 }
   0x2   :  { %v777_v1 = vld [vmem:[%s1125_s1] sm:$0xff]   ;;  %703 = vmatprep.subr.bf16.mxu0 %v776_v0  ;;  %v779_v4 = vld [vmem:[%s1125_s1 + $0x8] sm:$0xff]   ;;  %v781_v6 = vld [vmem:[%s1125_s1 + $0x10] sm:$0xff]   ;;  %v985_v17 = vshrl.u32 %v99_v10, 7 }
   0x3   :  { %704 = vmatpush3.bf16.msra.mxu0 %v777_v1  ;;  %v782_v7 = vld [vmem:[%s1125_s1 + $0x58] sm:$0xff]   ;;  %v784_v9 = vld [vmem:[%s1125_s1 + $0x60] sm:$0xff]   ;;  %v786_v12 = vld [vmem:[%s1125_s1 + $0x68] sm:$0xff]   ;;  %v98_v22 = vunpack.c.0.s8 %v97_v16 }
   0x4   :  { %705 = vmatprep.subr.bf16.mxu0 %v778_v3  ;;  %v783_v8 = vld [vmem:[%s1125_s1 + $0x18] sm:$0xff]   ;;  %v785_v11 = vld [vmem:[%s1125_s1 + $0x20] sm:$0xff]   ;;  %v787_v14 = vld [vmem:[%s1125_s1 + $0x28] sm:$0xff]  }
   0x5   :  { %v659_v13 = vld.sshfl [vmem:[%s1124_s0] sm:$0x11 pattern:$0x75316420]  ;;  %v788_v19 = vld [vmem:[%s1125_s1 + $0x70] sm:$0xff]   ;;  %v793_v20 = vld [vmem:[%s1127_s3 + $0x8] sm:$0xff]   ;;  %v1001_v24 = vsub.s32 %v98_v22, %v985_v17 }
   0x6   :  { %v792_v18 = vld [vmem:[%s1127_s3] sm:$0xff]   ;;  %v95_v21 = vcombine.high %v659_v13, %v659_v13  ;;  %v789_v23 = vld [vmem:[%s1125_s1 + $0x30] sm:$0xff]   ;;  %v790_v25 = vld [vmem:[%s1125_s1 + $0x78] sm:$0xff]  }
   0x7   :  { %706 = vmatpush3.bf16.msra.mxu0 %v779_v4  ;;  %739 = vmatpush3.bf16.msra.mxu1 %v792_v18  ;;  %v791_v27 = vld [vmem:[%s1125_s1 + $0x38] sm:$0xff]  }
   0x8   :  { %707 = vmatprep.subr.bf16.mxu0 %v780_v5  ;;  %740 = vmatprep.subr.bf16.mxu1 %v864_v2  ;;  %v109_v26 = vrot.slane %v95_v21, %v1001_v24 }
   0xa   :  { %240 = vmatprep.mubr.bf16.mxu0 %v109_v26 }
   0xb   :  { %708 = vmatpush3.bf16.msra.mxu0 %v781_v6  ;;  %741 = vmatpush3.bf16.msra.mxu1 %v793_v20 }
   0xc   :  { %709 = vmatprep.subr.bf16.mxu0 %v782_v7  ;;  %742 = vmatprep.subr.bf16.mxu1 %v864_v2 }
   0xf   :  { %710 = vmatpush3.bf16.msra.mxu0 %v783_v8 }
  0x10   :  { %711 = vmatprep.subr.bf16.mxu0 %v784_v9 }
  0x13   :  { %712 = vmatpush3.bf16.msra.mxu0 %v785_v11 }
  0x14   :  { %713 = vmatprep.subr.bf16.mxu0 %v786_v12 }
  0x17   :  { %714 = vmatpush3.bf16.msra.mxu0 %v787_v14 }
  0x18   :  { %715 = vmatprep.subr.bf16.mxu0 %v788_v19 }
  0x1b   :  { %716 = vmatpush3.bf16.msra.mxu0 %v789_v23 }
  0x1c   :  { %21 = vsyncpa [#allocation5], 0  ;;  %717 = vmatprep.subr.bf16.mxu0 %v790_v25  ;;  %v102_v28 = vrot.slane %v659_v13, %v1001_v24  ;;  %v794_v29 = vld [vmem:[%s1127_s3 + $0x10] sm:$0xff]   ;;  %v795_v30 = vld [vmem:[%s1127_s3 + $0x18] sm:$0xff]   ;;  %vm866_vm0 = vmmov 0   ;;  %vm291_vm2 = vcmask 523264  }
  0x1d   :  { %743 = vmatpush3.bf16.msra.mxu1 %v794_v29  ;;  %746 = vmatprep.mubr.msk.bf16.mxu1 %vm866_vm0, %v864_v2  ;;  %v658_v32 = vld [vmem:[%s1126_s2] ss:$0 sm:$0xff]  ;;  %v797_v42 = vld [vmem:[%s1129_s5 + $0x8] sm:$0xff]   ;;  %v798_v43 = vld [vmem:[%s1129_s5 + $0x10] sm:$0xff]   ;;  %vm414_vm3 = vcmask 254976   ;;  %vm447_vm4 = vcmask 261120  }
  0x1e   :  { %744 = vmatprep.subr.bf16.mxu1 %v864_v2  ;;  %v796_v40 = vld [vmem:[%s1129_s5] sm:$0xff]   ;;  %v799_v44 = vld [vmem:[%s1129_s5 + $0x18] sm:$0xff]   ;;  %v801_v46 = vld [vmem:[%s1132_s8 + $0x8] sm:$0xff]   ;;  %v867_v10 = vmov 0   ;;  %s869_s16 = smov [#allocation4]  }
  0x1f   :  { %718 = vmatpush3.bf16.msra.mxu0 %v791_v27  ;;  %v800_v45 = vld [vmem:[%s1132_s8] sm:$0xff]   ;;  %v807_v49 = vld [vmem:[%s1134_s10 + $0x14] ss:$8 sps:$4 sm:$0xff]   ;;  %v805_v50 = vld [vmem:[%s1134_s10 + $0x10] ss:$8 sps:$4 sm:$0xff]   ;;  %s644_s17 = sshll.u32 %s869_s16, 4  ;;  %s645_s17 = int_to_ptr.vmem [resolvable:$true] %s644_s17 }
  0x20   :  { %762 = vmatprep.subr.bf16.mxu0 %v864_v2  ;;  %v802_v47 = vld [vmem:[%s1134_s10] ss:$8 sps:$4 sm:$0xff]   ;;  %v804_v48 = vld [vmem:[%s1134_s10 + $0x4] ss:$8 sps:$4 sm:$0xff]   ;;  %v813_v8 = vld [vmem:[%s1134_s10 + $0x34] ss:$8 sps:$4 sm:$0xff]  }
  0x21   :  { %745 = vmatpush3.bf16.msra.mxu1 %v795_v30  ;;  %v676_v51 = vld [vmem:[%s1128_s4] ss:$0 sm:$0xff]  ;;  %v810_v6 = vld [vmem:[%s1134_s10 + $0x24] ss:$8 sps:$4 sm:$0xff]   ;;  %v811_v9 = vld [vmem:[%s1134_s10 + $0x30] ss:$8 sps:$4 sm:$0xff]  }
  0x22   :  { %241 = vmatmul.mubr.bf16.vlgmr.msra.gmra.mrb[0].mxu0 %v102_v28  ;;  %750 = vmatprep.subr.bf16.mxu1 %v864_v2  ;;  %v682_v57 = vld [vmem:[%s1130_s6] ss:$0 sm:$0xff] }
  0x23   :  { %766 = vmatprep.mubr.msk.bf16.mxu0 %vm866_vm0, %v864_v2  ;;  %763 = vmatpush3.bf16.msra.mxu0 %v800_v45  ;;  %v420_v1 = vld [vmem:[%s1131_s7] sm:$0x3] }
  0x24   :  { %764 = vmatprep.subr.bf16.mxu0 %v864_v2  ;;  %v808_v7 = vld [vmem:[%s1134_s10 + $0x20] ss:$8 sps:$4 sm:$0xff]   ;;  %s868_s10 = smov [#allocation2]  }
  0x25   :  { %v688_v11 = vld [vmem:[%s1133_s9] ss:$0 sm:$0xff]  ;;  %s634_s15 = sshll.u32 %s868_s10, 4  ;;  %s635_s15 = int_to_ptr.vmem [resolvable:$true] %s634_s15 }
  0x26   :  { %s816_s5 = scalar_lea.vmem %s635_s15, 32  ;;  %p821_p1 = scmp.lt.s32.totalorder %s635_s15, %s635_s15 }
  0x27   :  { %765 = vmatpush3.bf16.msra.mxu0 %v801_v46  ;;  %p817_p0 = scmp.ne.s32.totalorder %s635_s15, %s816_s5  ;;  %p822_p2 = scmp.lt.s32.totalorder %s816_s5, %s816_s5 }
  0x29   :  { %p823_p3 = por %p822_p2, %p821_p1 }
  0x2b   :  { %p824_p4 = pnand %p823_p3, %p817_p0 }
  0xf5   :  { %v719_v31 = vpop.f32.mrb[0].mxu0 }
  0xf6   :  { %v720_v33 = vpop.f32.mrb[1].mxu0 }
  0xf7   :  { %v721_v34 = vadd.f32 %v720_v33, %v719_v31  ;;  %v722_v35 = vpop.f32.mrb[2].mxu0 }
  0xf8   :  { %v723_v36 = vpop.f32.mrb[3].mxu0 }
  0xf9   :  { %v243_v37 = vadd.f32 %v721_v34, %v658_v32 }
  0xfb   :  { %vm248_vm1 = vcmp.gt.f32.partialorder %v243_v37, 0.0  ;;  %v249_v38 = vmul.f32 0.2, %v243_v37 }
  0xfd   :  { %v250_v39 = vsel %vm248_vm1, %v243_v37, %v249_v38 }
  0xfe   :  { %v251_v41 = vpack.c.bf16 %v250_v39, %v250_v39 }
 0x100   :  { %747 = vmatmul.mubr.msk.bf16.vlgmr.msra.gmra.mrb[0].mxu1 %vm291_vm2, %v251_v41 }
 0x101   :  { %751 = vmatpush3.bf16.msra.mxu1 %v796_v40  ;;  %758 = vmatprep.mubr.msk.bf16.mxu1 %vm866_vm0, %v864_v2 }
 0x102   :  { %752 = vmatprep.subr.bf16.mxu1 %v864_v2 }
 0x105   :  { %753 = vmatpush3.bf16.msra.mxu1 %v797_v42 }
 0x106   :  { %754 = vmatprep.subr.bf16.mxu1 %v864_v2 }
 0x109   :  { %755 = vmatpush3.bf16.msra.mxu1 %v798_v43 }
 0x10a   :  { %756 = vmatprep.subr.bf16.mxu1 %v864_v2 }
 0x10d   :  { %757 = vmatpush3.bf16.msra.mxu1 %v799_v44 }
 0x10e   :  { %558 = vmatprep.subr.bf16.mxu1 %v804_v48 }
 0x110   :  { %759 = vmatmul.mubr.msk.bf16.vlgmr.msra.gmra.mrb[4].mxu1 %vm291_vm2, %v251_v41 }
 0x111   :  { %559 = vmatpush1.bf16.msra.mxu1 %v802_v47  ;;  %590 = vmatprep.mubr.bf16.mxu1 %v867_v10 }
 0x112   :  { %560 = vmatprep.subr.bf16.mxu1 %v807_v49 }
 0x115   :  { %561 = vmatpush1.bf16.msra.mxu1 %v805_v50 }
 0x116   :  { %562 = vmatprep.subr.bf16.mxu1 %v810_v6 }
 0x119   :  { %563 = vmatpush1.bf16.msra.mxu1 %v808_v7 }
 0x11a   :  { %564 = vmatprep.subr.bf16.mxu1 %v813_v8 }
 0x11d   :  { %565 = vmatpush1.bf16.msra.mxu1 %v811_v9 }
 0x1d3   :  { %v329_v52 = vpop.f32.mrb[0].mxu1 }
 0x1d4   :  { %v330_v53 = vadd.f32 %v676_v51, %v329_v52  ;;  %v748_v54 = vpop.f32.mrb[1].mxu1 }
 0x1d5   :  { %v332_v55 = vpop.f32.mrb[2].mxu1 }
 0x1d6   :  { %v749_v56 = vpop.f32.mrb[3].mxu1  ;;  %415 = vst.msk [vmem:[#allocation2] sm:$0x3] %vm414_vm3, %v330_v53 }
 0x1e3   :  { %v408_v58 = vpop.f32.mrb[4].mxu1 }
 0x1e4   :  { %v409_v59 = vadd.f32 %v682_v57, %v408_v58  ;;  %v760_v60 = vpop.f32.mrb[5].mxu1 }
 0x1e5   :  { %v411_v61 = vpop.f32.mrb[6].mxu1 }
 0x1e6   :  { %v417_v62 = vmul.f32 0.5, %v409_v59  ;;  %v761_v63 = vpop.f32.mrb[7].mxu1  ;;  %416 = vst.msk [vmem:[#allocation4] sm:$0x3] %vm414_vm3, %v409_v59 }
 0x1e8   :  { %v418_v0 = vmul.f32 1.442695, %v417_v62 }
 0x1ea   :  { %814 = vpow2.f32 %v418_v0 }
 0x1f4   :  { %v815_v2 = vpop.eup %814 }
 0x1f5   :  { %v421_v3 = vmul.f32 %v815_v2, %v420_v1 }
 0x1f7   :  { %v422_v4 = vadd.f32 %v421_v3, %v330_v53 }
 0x1f9   :  { %v423_v5 = vpack.c.bf16 %v422_v4, %v422_v4 }
 0x1fb   :  { %767 = vmatmul.mubr.msk.bf16.vlgmr.msra.gmra.mrb[4].mxu0 %vm447_vm4, %v423_v5 }
 0x2ce   :  { %v485_v12 = vpop.f32.mrb[4].mxu0 }
 0x2cf   :  { %v486_v13 = vadd.f32 %v688_v11, %v485_v12  ;;  %v768_v14 = vpop.f32.mrb[5].mxu0 }
 0x2d0   :  { %v488_v15 = vpop.f32.mrb[6].mxu0 }
 0x2d1   :  { %vm491_vm5 = vcmp.gt.f32.partialorder %v486_v13, 0.0  ;;  %v492_v16 = vmul.f32 0.2, %v486_v13  ;;  %v769_v18 = vpop.f32.mrb[7].mxu0 }
 0x2d3   :  { %v493_v19 = vsel %vm491_vm5, %v486_v13, %v492_v16 }
 0x2d4   :  { %v494_v20 = vpack.c.bf16 %v493_v19, %v493_v19 }
 0x2d6   :  { %700 = vmatmul.mubr.msk.bf16.vlgmr.msra.gmra.mrb[8].mxu1 %vm291_vm2, %v494_v20 }
 0x2d7   :  { %827 = shalt.err (!%p824_p4)
}
 0x2d8   :  { %s828_s19 = scalar_lea.hbm %s1137_s13, 32 }
 0x2d9   :  { %p829_p5 = scmp.ne.s32.totalorder %s1137_s13, %s828_s19  ;;  %p832_p6 = scmp.lt.u32.totalorder %s828_s19, %s1137_s13 }
 0x2db   :  { %p834_p7 = pnand %p832_p6, %p829_p5 }
 0x2dd   :  { %837 = shalt.err (!%p834_p7)
}
 0x2de   :  { %637 = dma.vmem_to_hbm [thread:$0]  %s635_s15, 32, %s1137_s13, [#allocation3]  }
 0x2df   :  { %s838_s23 = scalar_lea.vmem %s645_s17, 32  ;;  %p843_p9 = scmp.lt.s32.totalorder %s645_s17, %s645_s17 }
 0x2e0   :  { %p839_p8 = scmp.ne.s32.totalorder %s645_s17, %s838_s23  ;;  %p844_p10 = scmp.lt.s32.totalorder %s838_s23, %s838_s23 }
 0x2e2   :  { %p845_p11 = por %p844_p10, %p843_p9 }
 0x2e4   :  { %p846_p12 = pnand %p845_p11, %p839_p8 }
 0x2e6   :  { %849 = shalt.err (!%p846_p12)
}
 0x2e7   :  { %s850_s6 = scalar_lea.hbm %s1138_s14, 32 }
 0x2e8   :  { %p851_p13 = scmp.ne.s32.totalorder %s1138_s14, %s850_s6  ;;  %p854_p0 = scmp.lt.u32.totalorder %s850_s6, %s1138_s14 }
 0x2ea   :  { %p856_p1 = pnand %p854_p0, %p851_p13 }
 0x2ec   :  { %859 = shalt.err (!%p856_p1)
}
 0x2ed   :  { %647 = dma.vmem_to_hbm [thread:$0]  %s645_s17, 32, %s1138_s14, [#allocation5]   ;;  %v507_v21 = vsub.s32 0, %v985_v17  ;;  %v503_v22 = vld [vmem:[%s1135_s11] sm:$0x3]  ;;  %v511_v23 = vsub.s32 1, %v985_v17 }
 0x2ef   :  { %v508_v25 = vrot.slane %v503_v22, %v507_v21  ;;  %v512_v26 = vrot.slane %v503_v22, %v511_v23 }
 0x3a9   :  { %v592_v27 = vpop.f32.mrb[8].mxu1 }
 0x3aa   :  { %v593_v28 = vadd.f32 %v592_v27, %v508_v25  ;;  %v594_v29 = vpop.f32.mrb[9].mxu1 }
 0x3ab   :  { %v595_v30 = vadd.f32 %v594_v29, %v512_v26  ;;  %v596_v31 = vpop.f32.mrb[10].mxu1 }
 0x3ac   :  { %vm599_vm6 = vcmp.gt.f32.partialorder %v593_v28, 0.0  ;;  %v601_v32 = vmul.f32 0.2, %v593_v28  ;;  %v597_v33 = vpop.f32.mrb[11].mxu1 }
 0x3ad   :  { %vm600_vm7 = vcmp.gt.f32.partialorder %v595_v30, 0.0  ;;  %v602_v34 = vmul.f32 0.2, %v595_v30 }
 0x3ae   :  { %v603_v35 = vsel %vm599_vm6, %v593_v28, %v601_v32 }
 0x3af   :  { %v604_v36 = vsel %vm600_vm7, %v595_v30, %v602_v34 }
 0x3b0   :  { %v701_v37 = vpack.c.bf16 %v604_v36, %v603_v35 }
 0x3b2   :  { %v616_v38 = vrot.slane %v701_v37, %v1001_v24 }
 0x3b4   :  { %702 = vst.sshfl [vmem:[%s1136_s12] sm:$0x5 pattern:$0x73625140] %v616_v38 }
 0x3b5   :  { %860 = dma.done.wait [#allocation3], 32  }
 0x3b6   :  { %861 = vsyncadd [#allocation3], 4294967264 }
 0x3b7   :  { %862 = dma.done.wait [#allocation5], 32  }
 0x3b8   :  { %863 = vsyncadd [#allocation5], 4294967264 }
 0x3b9   :  { %656 = vsyncpa [#allocation3], 1 }
 0x3ba   :  { %657 = vsyncpa [#allocation5], 1 }

// kernel: tile.48
= control target key start
LH: loop header
LB: loop body
LE: loop exit
PB: predicated region body
PF: predicated region fallthrough
CT: control target
= control target key end

     0   :  { %s22_s0 = inlined_call_operand.vmem [shape: f32[16], index: 0, kind: input, shape index: {}]   ;;  %s23_s1 = inlined_call_operand.vmem [shape: f32[8,16], index: 1, kind: output, shape index: {}]  }
   0x1   :  { %v4_v0 = vld [vmem:[%s22_s0] ss:$0 sm:$0xff] }
   0x2   :  { %5 = vst [vmem:[%s23_s1] sm:$0xff] %v4_v0 }

// kernel: mul.72
= control target key start
LH: loop header
LB: loop body
LE: loop exit
PB: predicated region body
PF: predicated region fallthrough
CT: control target
= control target key end

     0   :  { %s67_s10 = smov 112   ;;  %s68_s11 = smov 80   ;;  %vm3_vm0 = vcmask 130048   ;;  %vm9_vm1 = vcmask 1048448   ;;  %vm15_vm2 = vcmask 917248   ;;  %vm21_vm3 = vcmask 786048   ;;  %s111_s0 = inlined_call_operand.vmem [shape: f32[8,16], index: 0, kind: input, shape index: {}]   ;;  %s112_s1 = inlined_call_operand.vmem [shape: f32[128], index: 1, kind: output, shape index: {}]  }
   0x1   :  { %v53_v0 = vld [vmem:[%s111_s0 + $0x7] sm:$0x1]   ;;  %v55_v1 = vld [vmem:[%s111_s0 + $0x5] sm:$0x1]   ;;  %v54_v2 = vld [vmem:[%s111_s0 + $0x6] sm:$0x1]  }
   0x2   :  { %7 = vrot.lane.b32.xlu0 %v53_v0, %s67_s10  ;;  %19 = vrot.lane.b32.xlu1 %v55_v1, %s68_s11  ;;  %v56_v3 = vld [vmem:[%s111_s0 + $0x4] sm:$0x1]   ;;  %v2_v4 = vld [vmem:[%s111_s0] sm:$0x1]   ;;  %s69_s18 = smov 96   ;;  %s70_s19 = smov 64  }
   0x3   :  { %4 = vst.msk [vmem:[#allocation0] sm:$0x1] %vm3_vm0, %v2_v4   ;;  %v57_v5 = vld [vmem:[%s111_s0 + $0x3] sm:$0x1]   ;;  %v58_v6 = vld [vmem:[%s111_s0 + $0x2] sm:$0x1]  }
   0x4   :  { %s71_s24 = smov 48   ;;  %s72_s25 = smov 32   ;;  %v59_v7 = vld [vmem:[%s111_s0 + $0x1] sm:$0x1]   ;;  %vm27_vm4 = vcmask 654848   ;;  %vm33_vm5 = vcmask 523648  }
   0x5   :  { %s73_s0 = smov 16   ;;  %vm39_vm6 = vcmask 392448   ;;  %vm45_vm7 = vcmask 261248  }
   0x6   :  { %13 = vrot.lane.b32.xlu0 %v54_v2, %s69_s18  ;;  %25 = vrot.lane.b32.xlu1 %v56_v3, %s70_s19 }
   0xa   :  { %31 = vrot.lane.b32.xlu0 %v57_v5, %s71_s24  ;;  %37 = vrot.lane.b32.xlu1 %v58_v6, %s72_s25 }
   0xe   :  { %43 = vrot.lane.b32.xlu0 %v59_v7, %s73_s0 }
  0x74   :  { %v8_v8 = vpop.permute.xlu0 %7   ;;  %v20_v9 = vpop.permute.xlu1 %19  }
  0x75   :  { %10 = vst.msk [vmem:[#allocation0] sm:$0x1] %vm9_vm1, %v8_v8  }
  0x78   :  { %v14_v10 = vpop.permute.xlu0 %13   ;;  %v26_v11 = vpop.permute.xlu1 %25  }
  0x79   :  { %16 = vst.msk [vmem:[#allocation0] sm:$0x1] %vm15_vm2, %v14_v10  }
  0x7a   :  { %22 = vst.msk [vmem:[#allocation0] sm:$0x1] %vm21_vm3, %v20_v9  }
  0x7b   :  { %28 = vst.msk [vmem:[#allocation0] sm:$0x1] %vm27_vm4, %v26_v11  }
  0x7c   :  { %v32_v12 = vpop.permute.xlu0 %31   ;;  %v38_v13 = vpop.permute.xlu1 %37  }
  0x7d   :  { %34 = vst.msk [vmem:[#allocation0] sm:$0x1] %vm33_vm5, %v32_v12  }
  0x7e   :  { %40 = vst.msk [vmem:[#allocation0] sm:$0x1] %vm39_vm6, %v38_v13  }
  0x80   :  { %v44_v14 = vpop.permute.xlu0 %43  }
  0x81   :  { %46 = vst.msk [vmem:[#allocation0] sm:$0x1] %vm45_vm7, %v44_v14  }
  0x88   :  { %v50_v15 = vld [vmem:[#allocation0] sm:$0x1] }
  0x89   :  { %52 = vst [vmem:[%s112_s1] sm:$0x1] %v50_v15 }

// kernel: var_auto_enc_forward.11
= control target key start
LH: loop header
LB: loop body
LE: loop exit
PB: predicated region body
PF: predicated region fallthrough
CT: control target
= control target key end

     0   :  { %v934_v38 = vmov 0.0   ;;  %vm935_vm0 = vmmov 0   ;;  %s1151_s1 = inlined_call_operand.vmem [shape: bf16[896,128], index: 1, kind: input, shape index: {}]   ;;  %s1152_s0 = inlined_call_operand.vmem [shape: bf16[16,896], index: 0, kind: input, shape index: {}]   ;;  %s1153_s2 = inlined_call_operand.vmem [shape: f32[1,128], index: 2, kind: input, shape index: {}]   ;;  %s1154_s3 = inlined_call_operand.vmem [shape: bf16[16,128], index: 3, kind: output, shape index: {}]  }
   0x1   :  { %v868_v0 = vld [vmem:[%s1151_s1 + $0x40] sm:$0xff]   ;;  %v872_v4 = vld [vmem:[%s1151_s1 + $0x48] sm:$0xff]   ;;  %v876_v8 = vld [vmem:[%s1151_s1 + $0x50] sm:$0xff]  }
   0x2   :  { %v869_v1 = vld [vmem:[%s1151_s1] sm:$0xff]   ;;  %771 = vmatprep.subr.bf16.mxu0 %v868_v0  ;;  %v873_v5 = vld [vmem:[%s1151_s1 + $0x8] sm:$0xff]   ;;  %v877_v9 = vld [vmem:[%s1151_s1 + $0x10] sm:$0xff]  }
   0x3   :  { %v870_v2 = vld [vmem:[%s1151_s1 + $0xc0] sm:$0xff]   ;;  %772 = vmatpush3.bf16.msra.mxu0 %v869_v1  ;;  %v874_v6 = vld [vmem:[%s1151_s1 + $0xc8] sm:$0xff]   ;;  %v878_v10 = vld [vmem:[%s1151_s1 + $0xd0] sm:$0xff]  }
   0x4   :  { %v871_v3 = vld [vmem:[%s1151_s1 + $0x80] sm:$0xff]   ;;  %793 = vmatprep.subr.bf16.mxu1 %v870_v2  ;;  %773 = vmatprep.subr.bf16.mxu0 %v872_v4  ;;  %v875_v7 = vld [vmem:[%s1151_s1 + $0x88] sm:$0xff]   ;;  %v879_v11 = vld [vmem:[%s1151_s1 + $0x90] sm:$0xff]  }
   0x5   :  { %794 = vmatpush3.bf16.msra.mxu1 %v871_v3  ;;  %v880_v12 = vld [vmem:[%s1151_s1 + $0x58] sm:$0xff]   ;;  %v884_v16 = vld [vmem:[%s1151_s1 + $0x60] sm:$0xff]   ;;  %v888_v20 = vld [vmem:[%s1151_s1 + $0x68] sm:$0xff]  }
   0x6   :  { %795 = vmatprep.subr.bf16.mxu1 %v874_v6  ;;  %v881_v13 = vld [vmem:[%s1151_s1 + $0x18] sm:$0xff]   ;;  %v885_v17 = vld [vmem:[%s1151_s1 + $0x20] sm:$0xff]   ;;  %v889_v21 = vld [vmem:[%s1151_s1 + $0x28] sm:$0xff]  }
   0x7   :  { %774 = vmatpush3.bf16.msra.mxu0 %v873_v5  ;;  %v882_v14 = vld [vmem:[%s1151_s1 + $0xd8] sm:$0xff]   ;;  %v886_v18 = vld [vmem:[%s1151_s1 + $0xe0] sm:$0xff]   ;;  %v890_v22 = vld [vmem:[%s1151_s1 + $0xe8] sm:$0xff]  }
   0x8   :  { %775 = vmatprep.subr.bf16.mxu0 %v876_v8  ;;  %v883_v15 = vld [vmem:[%s1151_s1 + $0x98] sm:$0xff]   ;;  %v887_v19 = vld [vmem:[%s1151_s1 + $0xa0] sm:$0xff]   ;;  %v891_v23 = vld [vmem:[%s1151_s1 + $0xa8] sm:$0xff]  }
   0x9   :  { %796 = vmatpush3.bf16.msra.mxu1 %v875_v7  ;;  %v892_v24 = vld [vmem:[%s1151_s1 + $0x70] sm:$0xff]   ;;  %v896_v28 = vld [vmem:[%s1151_s1 + $0x78] sm:$0xff]   ;;  %v901_v32 = vld [vmem:[%s1152_s0 + $0x4] ss:$28 sps:$4 sm:$0xff]  }
   0xa   :  { %797 = vmatprep.subr.bf16.mxu1 %v878_v10  ;;  %v893_v25 = vld [vmem:[%s1151_s1 + $0x30] sm:$0xff]   ;;  %v897_v29 = vld [vmem:[%s1151_s1 + $0x38] sm:$0xff]   ;;  %546 = vmatprep.mubr.bf16.mxu0 %v901_v32  ;;  %v903_v34 = vld [vmem:[%s1151_s1 + $0x140] sm:$0xff]  }
   0xb   :  { %776 = vmatpush3.bf16.msra.mxu0 %v877_v9  ;;  %v894_v26 = vld [vmem:[%s1151_s1 + $0xf0] sm:$0xff]   ;;  %v898_v30 = vld [vmem:[%s1151_s1 + $0xf8] sm:$0xff]   ;;  %v904_v35 = vld [vmem:[%s1152_s0 + $0x8] ss:$28 sps:$4 sm:$0xff]  }
   0xc   :  { %777 = vmatprep.subr.bf16.mxu0 %v880_v12  ;;  %v895_v27 = vld [vmem:[%s1151_s1 + $0xb0] sm:$0xff]   ;;  %v899_v31 = vld [vmem:[%s1152_s0] ss:$28 sps:$4 sm:$0xff]   ;;  %v906_v36 = vld [vmem:[%s1152_s0 + $0xc] ss:$28 sps:$4 sm:$0xff]  }
   0xd   :  { %798 = vmatpush3.bf16.msra.mxu1 %v879_v11  ;;  %v902_v33 = vld [vmem:[%s1151_s1 + $0xb8] sm:$0xff]   ;;  %v907_v37 = vld [vmem:[%s1151_s1 + $0x100] sm:$0xff]   ;;  %587 = vmatprep.mubr.bf16.mxu1 %v906_v36  ;;  %v909_v40 = vld [vmem:[%s1151_s1 + $0x148] sm:$0xff]  }
   0xe   :  { %799 = vmatprep.subr.bf16.mxu1 %v882_v14  ;;  %v908_v39 = vld [vmem:[%s1151_s1 + $0x180] sm:$0xff]   ;;  %v910_v41 = vld [vmem:[%s1151_s1 + $0x108] sm:$0xff]   ;;  %v912_v43 = vld [vmem:[%s1151_s1 + $0x150] sm:$0xff]  }
   0xf   :  { %778 = vmatpush3.bf16.msra.mxu0 %v881_v13  ;;  %v911_v42 = vld [vmem:[%s1151_s1 + $0x188] sm:$0xff]   ;;  %v913_v44 = vld [vmem:[%s1151_s1 + $0x110] sm:$0xff]   ;;  %v915_v46 = vld [vmem:[%s1151_s1 + $0x158] sm:$0xff]  }
  0x10   :  { %779 = vmatprep.subr.bf16.mxu0 %v884_v16  ;;  %v914_v45 = vld [vmem:[%s1151_s1 + $0x190] sm:$0xff]   ;;  %v916_v47 = vld [vmem:[%s1151_s1 + $0x118] sm:$0xff]   ;;  %v918_v49 = vld [vmem:[%s1151_s1 + $0x160] sm:$0xff]  }
  0x11   :  { %800 = vmatpush3.bf16.msra.mxu1 %v883_v15  ;;  %v917_v48 = vld [vmem:[%s1151_s1 + $0x198] sm:$0xff]   ;;  %v919_v50 = vld [vmem:[%s1151_s1 + $0x120] sm:$0xff]   ;;  %v921_v52 = vld [vmem:[%s1151_s1 + $0x168] sm:$0xff]  }
  0x12   :  { %801 = vmatprep.subr.bf16.mxu1 %v886_v18  ;;  %v920_v51 = vld [vmem:[%s1151_s1 + $0x1a0] sm:$0xff]   ;;  %v922_v53 = vld [vmem:[%s1151_s1 + $0x128] sm:$0xff]   ;;  %v924_v55 = vld [vmem:[%s1151_s1 + $0x170] sm:$0xff]  }
  0x13   :  { %780 = vmatpush3.bf16.msra.mxu0 %v885_v17  ;;  %v923_v54 = vld [vmem:[%s1151_s1 + $0x1a8] sm:$0xff]   ;;  %v925_v56 = vld [vmem:[%s1151_s1 + $0x130] sm:$0xff]   ;;  %v927_v59 = vld [vmem:[%s1151_s1 + $0x178] sm:$0xff]  }
  0x14   :  { %781 = vmatprep.subr.bf16.mxu0 %v888_v20  ;;  %v926_v57 = vld [vmem:[%s1151_s1 + $0x1b0] sm:$0xff]   ;;  %v928_v60 = vld [vmem:[%s1151_s1 + $0x138] sm:$0xff]   ;;  %v698_v1 = vld [vmem:[%s1153_s2] ss:$0 sm:$0xff] }
  0x15   :  { %802 = vmatpush3.bf16.msra.mxu1 %v887_v19  ;;  %v931_v58 = vld [vmem:[%s1152_s0 + $0x14] ss:$28 sps:$4 sm:$0xff]   ;;  %v932_v61 = vld [vmem:[%s1151_s1 + $0x1b8] sm:$0xff]  }
  0x16   :  { %803 = vmatprep.subr.bf16.mxu1 %v890_v22  ;;  %v929_v62 = vld [vmem:[%s1152_s0 + $0x10] ss:$28 sps:$4 sm:$0xff]   ;;  %v933_v63 = vld [vmem:[%s1152_s0 + $0x18] ss:$28 sps:$4 sm:$0xff]  }
  0x17   :  { %782 = vmatpush3.bf16.msra.mxu0 %v889_v21 }
  0x18   :  { %783 = vmatprep.subr.bf16.mxu0 %v892_v24 }
  0x19   :  { %804 = vmatpush3.bf16.msra.mxu1 %v891_v23 }
  0x1a   :  { %805 = vmatprep.subr.bf16.mxu1 %v894_v26 }
  0x1b   :  { %784 = vmatpush3.bf16.msra.mxu0 %v893_v25 }
  0x1c   :  { %785 = vmatprep.subr.bf16.mxu0 %v896_v28 }
  0x1d   :  { %806 = vmatpush3.bf16.msra.mxu1 %v895_v27 }
  0x1e   :  { %807 = vmatprep.subr.bf16.mxu1 %v898_v30 }
  0x1f   :  { %786 = vmatpush3.bf16.msra.mxu0 %v897_v29 }
  0x20   :  { %815 = vmatprep.subr.bf16.mxu0 %v903_v34 }
  0x21   :  { %808 = vmatpush3.bf16.msra.mxu1 %v902_v33 }
  0x22   :  { %547 = vmatmul.mubr.bf16.vlgmr.msra.gmra.mrb[0].mxu0 %v899_v31  ;;  %846 = vmatprep.subr.bf16.mxu1 %v934_v38 }
  0x23   :  { %816 = vmatpush3.bf16.msra.mxu0 %v907_v37  ;;  %628 = vmatprep.mubr.bf16.mxu0 %v931_v58 }
  0x24   :  { %588 = vmatmul.mubr.bf16.vlgmr.msra.gmra.mrb[0].mxu1 %v904_v35  ;;  %817 = vmatprep.subr.bf16.mxu0 %v909_v40 }
  0x25   :  { %847 = vmatpush3.bf16.msra.mxu1 %v908_v39  ;;  %862 = vmatprep.mubr.msk.bf16.mxu1 %vm935_vm0, %v934_v38 }
  0x26   :  { %848 = vmatprep.subr.bf16.mxu1 %v934_v38 }
  0x27   :  { %818 = vmatpush3.bf16.msra.mxu0 %v910_v41 }
  0x28   :  { %819 = vmatprep.subr.bf16.mxu0 %v912_v43 }
  0x29   :  { %849 = vmatpush3.bf16.msra.mxu1 %v911_v42 }
  0x2a   :  { %850 = vmatprep.subr.bf16.mxu1 %v934_v38 }
  0x2b   :  { %820 = vmatpush3.bf16.msra.mxu0 %v913_v44 }
  0x2c   :  { %821 = vmatprep.subr.bf16.mxu0 %v915_v46 }
  0x2d   :  { %851 = vmatpush3.bf16.msra.mxu1 %v914_v45 }
  0x2e   :  { %852 = vmatprep.subr.bf16.mxu1 %v934_v38 }
  0x2f   :  { %822 = vmatpush3.bf16.msra.mxu0 %v916_v47 }
  0x30   :  { %823 = vmatprep.subr.bf16.mxu0 %v918_v49 }
  0x31   :  { %853 = vmatpush3.bf16.msra.mxu1 %v917_v48 }
  0x32   :  { %854 = vmatprep.subr.bf16.mxu1 %v934_v38 }
  0x33   :  { %824 = vmatpush3.bf16.msra.mxu0 %v919_v50 }
  0x34   :  { %825 = vmatprep.subr.bf16.mxu0 %v921_v52 }
  0x35   :  { %855 = vmatpush3.bf16.msra.mxu1 %v920_v51 }
  0x36   :  { %856 = vmatprep.subr.bf16.mxu1 %v934_v38 }
  0x37   :  { %826 = vmatpush3.bf16.msra.mxu0 %v922_v53 }
  0x38   :  { %827 = vmatprep.subr.bf16.mxu0 %v924_v55 }
  0x39   :  { %857 = vmatpush3.bf16.msra.mxu1 %v923_v54 }
  0x3a   :  { %858 = vmatprep.subr.bf16.mxu1 %v934_v38 }
  0x3b   :  { %828 = vmatpush3.bf16.msra.mxu0 %v925_v56 }
  0x3c   :  { %829 = vmatprep.subr.bf16.mxu0 %v927_v59 }
  0x3d   :  { %859 = vmatpush3.bf16.msra.mxu1 %v926_v57 }
  0x3e   :  { %860 = vmatprep.subr.bf16.mxu1 %v934_v38 }
  0x3f   :  { %830 = vmatpush3.bf16.msra.mxu0 %v928_v60 }
  0x41   :  { %861 = vmatpush3.bf16.msra.mxu1 %v932_v61 }
  0x42   :  { %629 = vmatmul.mubr.bf16.vlgmr.msra.gmra.mrb[4].mxu0 %v929_v62 }
  0x44   :  { %863 = vmatmul.mubr.bf16.vlgmr.msra.gmra.mrb[4].mxu1 %v933_v63 }
  0xf5   :  { %v787_v0 = vpop.f32.mrb[0].mxu0 }
  0xf6   :  { %v788_v2 = vpop.f32.mrb[1].mxu0 }
  0xf7   :  { %v789_v3 = vadd.f32 %v788_v2, %v787_v0  ;;  %v790_v4 = vpop.f32.mrb[2].mxu0  ;;  %v809_v5 = vpop.f32.mrb[0].mxu1 }
  0xf8   :  { %v791_v6 = vpop.f32.mrb[3].mxu0  ;;  %v810_v9 = vpop.f32.mrb[1].mxu1 }
  0xf9   :  { %v549_v7 = vadd.f32 %v789_v3, %v698_v1  ;;  %v792_v8 = vadd.f32 %v791_v6, %v790_v4  ;;  %v811_v10 = vadd.f32 %v810_v9, %v809_v5  ;;  %v812_v11 = vpop.f32.mrb[2].mxu1 }
  0xfa   :  { %v813_v13 = vpop.f32.mrb[3].mxu1 }
  0xfb   :  { %v552_v12 = vadd.f32 %v792_v8, %v698_v1  ;;  %v590_v14 = vadd.f32 %v811_v10, %v549_v7  ;;  %v814_v15 = vadd.f32 %v813_v13, %v812_v11 }
  0xfd   :  { %v593_v16 = vadd.f32 %v814_v15, %v552_v12 }
 0x115   :  { %v831_v17 = vpop.f32.mrb[4].mxu0 }
 0x116   :  { %v832_v18 = vpop.f32.mrb[5].mxu0 }
 0x117   :  { %v671_v19 = vpop.f32.mrb[4].mxu1  ;;  %v833_v20 = vadd.f32 %v832_v18, %v831_v17  ;;  %v834_v21 = vpop.f32.mrb[6].mxu0 }
 0x118   :  { %v864_v22 = vpop.f32.mrb[5].mxu1  ;;  %v835_v23 = vpop.f32.mrb[7].mxu0 }
 0x119   :  { %v674_v24 = vpop.f32.mrb[6].mxu1  ;;  %v631_v25 = vadd.f32 %v833_v20, %v590_v14  ;;  %v836_v26 = vadd.f32 %v835_v23, %v834_v21 }
 0x11a   :  { %v865_v27 = vpop.f32.mrb[7].mxu1 }
 0x11b   :  { %v672_v28 = vadd.f32 %v671_v19, %v631_v25  ;;  %v634_v29 = vadd.f32 %v836_v26, %v593_v16 }
 0x11d   :  { %v680_v30 = vmul.f32 0.2, %v672_v28  ;;  %v675_v31 = vadd.f32 %v674_v24, %v634_v29  ;;  %vm678_vm1 = vcmp.gt.f32.partialorder %v672_v28, 0.0 }
 0x11f   :  { %vm679_vm2 = vcmp.gt.f32.partialorder %v675_v31, 0.0  ;;  %v681_v32 = vmul.f32 0.2, %v675_v31  ;;  %v682_v33 = vsel %vm678_vm1, %v672_v28, %v680_v30 }
 0x121   :  { %v683_v34 = vsel %vm679_vm2, %v675_v31, %v681_v32 }
 0x122   :  { %v769_v35 = vpack.c.bf16 %v683_v34, %v682_v33 }
 0x124   :  { %770 = vst [vmem:[%s1154_s3] sm:$0xff] %v769_v35  }

// kernel: tile.58
= control target key start
LH: loop header
LB: loop body
LE: loop exit
PB: predicated region body
PF: predicated region fallthrough
CT: control target
= control target key end

     0   :  { %s22_s0 = inlined_call_operand.vmem [shape: f32[8], index: 0, kind: input, shape index: {}]   ;;  %s23_s1 = inlined_call_operand.vmem [shape: f32[8,8], index: 1, kind: output, shape index: {}]  }
   0x1   :  { %v4_v0 = vld [vmem:[%s22_s0] ss:$0 sm:$0xff] }
   0x2   :  { %5 = vst [vmem:[%s23_s1] sm:$0xff] %v4_v0 }

// kernel: mul.82
= control target key start
LH: loop header
LB: loop body
LE: loop exit
PB: predicated region body
PF: predicated region fallthrough
CT: control target
= control target key end

     0   :  { %s67_s10 = smov 56   ;;  %s68_s11 = smov 40   ;;  %vm3_vm0 = vcmask 64512   ;;  %vm9_vm1 = vcmask 523712   ;;  %vm15_vm2 = vcmask 458112   ;;  %vm21_vm3 = vcmask 392512   ;;  %s111_s0 = inlined_call_operand.vmem [shape: f32[8,8], index: 0, kind: input, shape index: {}]   ;;  %s112_s1 = inlined_call_operand.vmem [shape: f32[64], index: 1, kind: output, shape index: {}]  }
   0x1   :  { %v53_v0 = vld [vmem:[%s111_s0 + $0x7] sm:$0x1]   ;;  %v55_v1 = vld [vmem:[%s111_s0 + $0x5] sm:$0x1]   ;;  %v54_v2 = vld [vmem:[%s111_s0 + $0x6] sm:$0x1]  }
   0x2   :  { %7 = vrot.lane.b32.xlu0 %v53_v0, %s67_s10  ;;  %19 = vrot.lane.b32.xlu1 %v55_v1, %s68_s11  ;;  %v56_v3 = vld [vmem:[%s111_s0 + $0x4] sm:$0x1]   ;;  %v2_v4 = vld [vmem:[%s111_s0] sm:$0x1]   ;;  %s69_s18 = smov 48   ;;  %s70_s19 = smov 32  }
   0x3   :  { %4 = vst.msk [vmem:[#allocation0] sm:$0x1] %vm3_vm0, %v2_v4   ;;  %v57_v5 = vld [vmem:[%s111_s0 + $0x3] sm:$0x1]   ;;  %v58_v6 = vld [vmem:[%s111_s0 + $0x2] sm:$0x1]  }
   0x4   :  { %s71_s24 = smov 24   ;;  %s72_s25 = smov 16   ;;  %v59_v7 = vld [vmem:[%s111_s0 + $0x1] sm:$0x1]   ;;  %vm27_vm4 = vcmask 326912   ;;  %vm33_vm5 = vcmask 261312  }
   0x5   :  { %s73_s0 = smov 8   ;;  %vm39_vm6 = vcmask 195712   ;;  %vm45_vm7 = vcmask 130112  }
   0x6   :  { %13 = vrot.lane.b32.xlu0 %v54_v2, %s69_s18  ;;  %25 = vrot.lane.b32.xlu1 %v56_v3, %s70_s19 }
   0xa   :  { %31 = vrot.lane.b32.xlu0 %v57_v5, %s71_s24  ;;  %37 = vrot.lane.b32.xlu1 %v58_v6, %s72_s25 }
   0xe   :  { %43 = vrot.lane.b32.xlu0 %v59_v7, %s73_s0 }
  0x74   :  { %v8_v8 = vpop.permute.xlu0 %7   ;;  %v20_v9 = vpop.permute.xlu1 %19  }
  0x75   :  { %10 = vst.msk [vmem:[#allocation0] sm:$0x1] %vm9_vm1, %v8_v8  }
  0x78   :  { %v14_v10 = vpop.permute.xlu0 %13   ;;  %v26_v11 = vpop.permute.xlu1 %25  }
  0x79   :  { %16 = vst.msk [vmem:[#allocation0] sm:$0x1] %vm15_vm2, %v14_v10  }
  0x7a   :  { %22 = vst.msk [vmem:[#allocation0] sm:$0x1] %vm21_vm3, %v20_v9  }
  0x7b   :  { %28 = vst.msk [vmem:[#allocation0] sm:$0x1] %vm27_vm4, %v26_v11  }
  0x7c   :  { %v32_v12 = vpop.permute.xlu0 %31   ;;  %v38_v13 = vpop.permute.xlu1 %37  }
  0x7d   :  { %34 = vst.msk [vmem:[#allocation0] sm:$0x1] %vm33_vm5, %v32_v12  }
  0x7e   :  { %40 = vst.msk [vmem:[#allocation0] sm:$0x1] %vm39_vm6, %v38_v13  }
  0x80   :  { %v44_v14 = vpop.permute.xlu0 %43  }
  0x81   :  { %46 = vst.msk [vmem:[#allocation0] sm:$0x1] %vm45_vm7, %v44_v14  }
  0x88   :  { %v50_v15 = vld [vmem:[#allocation0] sm:$0x1] }
  0x89   :  { %52 = vst [vmem:[%s112_s1] sm:$0x1] %v50_v15 }

// kernel: var_auto_enc_forward.13
= control target key start
LH: loop header
LB: loop body
LE: loop exit
PB: predicated region body
PF: predicated region fallthrough
CT: control target
= control target key end

     0   :  { %s2218_s12 = smov 0   ;;  %s2220_s13 = smov 0   ;;  %s2536_s0 = inlined_call_operand.vmem [shape: bf16[1024,256], index: 0, kind: input, shape index: {}]   ;;  %s2537_s1 = inlined_call_operand.vmem [shape: bf16[256,128], index: 1, kind: input, shape index: {}]   ;;  %s2538_s2 = inlined_call_operand.vmem [shape: f32[1,128], index: 2, kind: input, shape index: {}]   ;;  %s2539_s3 = inlined_call_operand.vmem [shape: f32[1024,128], index: 3, kind: output, shape index: {}]  }
   0x1   :  { %s2222_s14 = smov 0  }
   0x2 LB: > { %s25_s15 = sadd.s32 1, %s2191_s13  ;;  %p1593_p0 = scmp.ge.s32.totalorder %s2195_s14, 1  ;;  %s2195_s14 = sphi %s2222_s14, %s13_s14   ;;  %s2191_s13 = sphi %s2220_s13, %s2541_s13   ;;  %s2187_s12 = sphi %s2218_s12, %s2540_s12  }
   0x3   : > { %p27_p1 = scmp.ge.s32.totalorder %s25_s15, 2  ;;  %p170_p2 = scmp.lt.s32.totalorder %s2195_s14, 3 }
   0x5   : > { %s2543_s15 = smov (%p27_p1, %s25_s15), 0  ;;  %p171_p3 = pnand %p1593_p0, %p170_p2 }
   0x6   : > { %v1804_v0 = vld [vmem:[%s2537_s1] sm:$0xff] (!%p171_p3)   ;;  %v2197_v1 = vmov (!%p171_p3), 0   ;;  %s1594_s18 = sshll.u32 (!%p171_p3), %s2187_s12, 6  ;;  %v1805_v2 = vld [vmem:[%s2537_s1 + $0x8] sm:$0xff] (!%p171_p3)   ;;  %v1806_v3 = vld [vmem:[%s2537_s1 + $0x10] sm:$0xff] (!%p171_p3)  }
   0x7   : > { %174 = sbr.rel (%p171_p3) target bundleno = 444 (0x1bc), region = 32  ;;  %748 = vmatprep.subr.bf16.mxu0 (!%p171_p3), %v2197_v1  ;;  %1747 = vmatprep.subr.bf16.mxu1 (!%p171_p3), %v2197_v1  ;;  %p206_p4 = scmp.lt.s32.totalorder (!%p171_p3), %s1594_s18, 127  ;;  %v1807_v4 = vld [vmem:[%s2537_s1 + $0x18] sm:$0xff] (!%p171_p3)   ;;  %v1808_v5 = vld [vmem:[%s2537_s1 + $0x20] sm:$0xff] (!%p171_p3)   ;;  %v1809_v7 = vld [vmem:[%s2537_s1 + $0x28] sm:$0xff] (!%p171_p3)  }
   0x8   : > { %749 = vmatpush1.bf16.msra.mxu0 (!%p171_p3), %v1804_v0  ;;  %1763 = vmatpush1.bf16.msra.mxu1 (!%p171_p3), %v1804_v0  ;;  %v1810_v9 = vld [vmem:[%s2537_s1 + $0x30] sm:$0xff] (!%p171_p3)   ;;  %v1811_v10 = vld [vmem:[%s2537_s1 + $0x38] sm:$0xff] (!%p171_p3)   ;;  %v1812_v11 = vld [vmem:[%s2537_s1 + $0x40] sm:$0xff] (!%p171_p3)  }
   0x9   : > { %750 = vmatprep.subr.bf16.mxu0 (!%p171_p3), %v2197_v1  ;;  %1748 = vmatprep.subr.bf16.mxu1 (!%p171_p3), %v2197_v1  ;;  %v1813_v12 = vld [vmem:[%s2537_s1 + $0x48] sm:$0xff] (!%p171_p3)   ;;  %v1814_v13 = vld [vmem:[%s2537_s1 + $0x50] sm:$0xff] (!%p171_p3)   ;;  %v1815_v14 = vld [vmem:[%s2537_s1 + $0x58] sm:$0xff] (!%p171_p3)  }
   0xa   : > { %v1816_v15 = vld [vmem:[%s2537_s1 + $0x60] sm:$0xff] (!%p171_p3)   ;;  %v1817_v16 = vld [vmem:[%s2537_s1 + $0x68] sm:$0xff] (!%p171_p3)   ;;  %v1818_v17 = vld [vmem:[%s2537_s1 + $0x70] sm:$0xff] (!%p171_p3)  }
   0xb   : > { %v1819_v18 = vld [vmem:[%s2537_s1 + $0x78] sm:$0xff] (!%p171_p3)  }
   0xc   : > { %751 = vmatpush1.bf16.msra.mxu0 (!%p171_p3), %v1805_v2  ;;  %1764 = vmatpush1.bf16.msra.mxu1 (!%p171_p3), %v1805_v2 }
   0xd   : > { %752 = vmatprep.subr.bf16.mxu0 (!%p171_p3), %v2197_v1  ;;  %1749 = vmatprep.subr.bf16.mxu1 (!%p171_p3), %v2197_v1 }
   0xe   : > { %s2545_s18 = smov (!%p206_p4, %s1594_s18), 127 }
   0xf   : > { %s1746_s25 = sshll.u32 %s2545_s18, 3 }
  0x10   : > { %753 = vmatpush1.bf16.msra.mxu0 %v1806_v3  ;;  %1765 = vmatpush1.bf16.msra.mxu1 %v1806_v3  ;;  %s2267_s30 = scalar_lea.vmem %s2536_s0, %s1746_s25  ;;  %s2414_s8 = scalar_lea.vmem %s2539_s3, %s1746_s25 }
  0x11   : > { %754 = vmatprep.subr.bf16.mxu0 %v2197_v1  ;;  %1750 = vmatprep.subr.bf16.mxu1 %v2197_v1  ;;  %v1822_v6 = vld [vmem:[%s2267_s30 + $0x4] ss:$8 sps:$4 sm:$0xff]   ;;  %v1820_v19 = vld [vmem:[%s2267_s30] ss:$8 sps:$4 sm:$0xff]   ;;  %v1826_v21 = vld [vmem:[%s2267_s30 + $0x14] ss:$8 sps:$4 sm:$0xff]  }
  0x12   : > { %v1825_v8 = vld [vmem:[%s2267_s30 + $0x104] ss:$8 sps:$4 sm:$0xff]   ;;  %780 = vmatprep.mubr.bf16.mxu0 %v1822_v6  ;;  %v1823_v20 = vld [vmem:[%s2267_s30 + $0x100] ss:$8 sps:$4 sm:$0xff]   ;;  %v1828_v22 = vld [vmem:[%s2267_s30 + $0x114] ss:$8 sps:$4 sm:$0xff]  }
  0x13   : > { %908 = vmatprep.mubr.bf16.mxu1 %v1825_v8  ;;  %v1830_v23 = vld [vmem:[%s2267_s30 + $0x10] ss:$8 sps:$4 sm:$0xff]   ;;  %v1832_v25 = vld [vmem:[%s2267_s30 + $0x24] ss:$8 sps:$4 sm:$0xff]   ;;  %v1836_v27 = vld [vmem:[%s2267_s30 + $0x20] ss:$8 sps:$4 sm:$0xff]  }
  0x14   : > { %755 = vmatpush1.bf16.msra.mxu0 %v1807_v4  ;;  %1766 = vmatpush1.bf16.msra.mxu1 %v1807_v4  ;;  %v1831_v24 = vld [vmem:[%s2267_s30 + $0x110] ss:$8 sps:$4 sm:$0xff]   ;;  %v1834_v26 = vld [vmem:[%s2267_s30 + $0x124] ss:$8 sps:$4 sm:$0xff]   ;;  %v1837_v28 = vld [vmem:[%s2267_s30 + $0x120] ss:$8 sps:$4 sm:$0xff]  }
  0x15   : > { %756 = vmatprep.subr.bf16.mxu0 %v2197_v1  ;;  %1751 = vmatprep.subr.bf16.mxu1 %v2197_v1  ;;  %v1838_v29 = vld [vmem:[%s2267_s30 + $0x34] ss:$8 sps:$4 sm:$0xff]   ;;  %v1842_v31 = vld [vmem:[%s2267_s30 + $0x30] ss:$8 sps:$4 sm:$0xff]   ;;  %v1844_v33 = vld [vmem:[%s2267_s30 + $0x44] ss:$8 sps:$4 sm:$0xff]  }
  0x16   : > { %v1840_v30 = vld [vmem:[%s2267_s30 + $0x134] ss:$8 sps:$4 sm:$0xff]   ;;  %v1843_v32 = vld [vmem:[%s2267_s30 + $0x130] ss:$8 sps:$4 sm:$0xff]   ;;  %v1846_v34 = vld [vmem:[%s2267_s30 + $0x144] ss:$8 sps:$4 sm:$0xff]  }
  0x17   : > { %v1848_v35 = vld [vmem:[%s2267_s30 + $0x40] ss:$8 sps:$4 sm:$0xff]   ;;  %v1850_v37 = vld [vmem:[%s2267_s30 + $0x54] ss:$8 sps:$4 sm:$0xff]   ;;  %v1854_v39 = vld [vmem:[%s2267_s30 + $0x50] ss:$8 sps:$4 sm:$0xff]  }
  0x18   : > { %757 = vmatpush1.bf16.msra.mxu0 %v1808_v5  ;;  %1767 = vmatpush1.bf16.msra.mxu1 %v1808_v5  ;;  %v1849_v36 = vld [vmem:[%s2267_s30 + $0x140] ss:$8 sps:$4 sm:$0xff]   ;;  %v1852_v38 = vld [vmem:[%s2267_s30 + $0x154] ss:$8 sps:$4 sm:$0xff]   ;;  %v1855_v40 = vld [vmem:[%s2267_s30 + $0x150] ss:$8 sps:$4 sm:$0xff]  }
  0x19   : > { %758 = vmatprep.subr.bf16.mxu0 %v2197_v1  ;;  %1752 = vmatprep.subr.bf16.mxu1 %v2197_v1  ;;  %v1856_v41 = vld [vmem:[%s2267_s30 + $0x64] ss:$8 sps:$4 sm:$0xff]   ;;  %v1860_v43 = vld [vmem:[%s2267_s30 + $0x60] ss:$8 sps:$4 sm:$0xff]   ;;  %v1862_v45 = vld [vmem:[%s2267_s30 + $0x74] ss:$8 sps:$4 sm:$0xff]  }
  0x1a   : > { %v1858_v42 = vld [vmem:[%s2267_s30 + $0x164] ss:$8 sps:$4 sm:$0xff]   ;;  %v1861_v44 = vld [vmem:[%s2267_s30 + $0x160] ss:$8 sps:$4 sm:$0xff]   ;;  %v1864_v46 = vld [vmem:[%s2267_s30 + $0x174] ss:$8 sps:$4 sm:$0xff]  }
  0x1b   : > { %v1866_v47 = vld [vmem:[%s2267_s30 + $0x70] ss:$8 sps:$4 sm:$0xff]   ;;  %v1868_v49 = vld [vmem:[%s2267_s30 + $0x84] ss:$8 sps:$4 sm:$0xff]   ;;  %v1872_v51 = vld [vmem:[%s2267_s30 + $0x80] ss:$8 sps:$4 sm:$0xff]  }
  0x1c   : > { %759 = vmatpush1.bf16.msra.mxu0 %v1809_v7  ;;  %1768 = vmatpush1.bf16.msra.mxu1 %v1809_v7  ;;  %v1867_v48 = vld [vmem:[%s2267_s30 + $0x170] ss:$8 sps:$4 sm:$0xff]   ;;  %v1870_v50 = vld [vmem:[%s2267_s30 + $0x184] ss:$8 sps:$4 sm:$0xff]   ;;  %v1873_v52 = vld [vmem:[%s2267_s30 + $0x180] ss:$8 sps:$4 sm:$0xff]  }
  0x1d   : > { %760 = vmatprep.subr.bf16.mxu0 %v2197_v1  ;;  %1753 = vmatprep.subr.bf16.mxu1 %v2197_v1  ;;  %v1874_v53 = vld [vmem:[%s2267_s30 + $0x94] ss:$8 sps:$4 sm:$0xff]   ;;  %v1878_v55 = vld [vmem:[%s2267_s30 + $0x90] ss:$8 sps:$4 sm:$0xff]   ;;  %v1880_v57 = vld [vmem:[%s2267_s30 + $0xa4] ss:$8 sps:$4 sm:$0xff]  }
  0x1e   : > { %v1876_v54 = vld [vmem:[%s2267_s30 + $0x194] ss:$8 sps:$4 sm:$0xff]   ;;  %v1879_v56 = vld [vmem:[%s2267_s30 + $0x190] ss:$8 sps:$4 sm:$0xff]   ;;  %v1882_v58 = vld [vmem:[%s2267_s30 + $0x1a4] ss:$8 sps:$4 sm:$0xff]  }
  0x1f   : > { %v1884_v59 = vld [vmem:[%s2267_s30 + $0xa0] ss:$8 sps:$4 sm:$0xff]   ;;  %v1886_v61 = vld [vmem:[%s2267_s30 + $0xb4] ss:$8 sps:$4 sm:$0xff]   ;;  %v1890_v63 = vld [vmem:[%s2267_s30 + $0xb0] ss:$8 sps:$4 sm:$0xff]  }
  0x20   : > { %761 = vmatpush1.bf16.msra.mxu0 %v1810_v9  ;;  %1769 = vmatpush1.bf16.msra.mxu1 %v1810_v9  ;;  %v1885_v60 = vld [vmem:[%s2267_s30 + $0x1a0] ss:$8 sps:$4 sm:$0xff]   ;;  %v1888_v62 = vld [vmem:[%s2267_s30 + $0x1b4] ss:$8 sps:$4 sm:$0xff]   ;;  %v1891_v0 = vld [vmem:[%s2267_s30 + $0x1b0] ss:$8 sps:$4 sm:$0xff]  }
  0x21   : > { %762 = vmatprep.subr.bf16.mxu0 %v2197_v1  ;;  %1754 = vmatprep.subr.bf16.mxu1 %v2197_v1  ;;  %v1894_v2 = vld [vmem:[%s2267_s30 + $0x1c4] ss:$8 sps:$4 sm:$0xff]   ;;  %v1896_v3 = vld [vmem:[%s2267_s30 + $0xc0] ss:$8 sps:$4 sm:$0xff]   ;;  %v1898_v5 = vld [vmem:[%s2267_s30 + $0xd4] ss:$8 sps:$4 sm:$0xff]  }
  0x22   : > { %v1897_v4 = vld [vmem:[%s2267_s30 + $0x1c0] ss:$8 sps:$4 sm:$0xff]   ;;  %v1900_v6 = vld [vmem:[%s2267_s30 + $0x1d4] ss:$8 sps:$4 sm:$0xff]   ;;  %v1902_v7 = vld [vmem:[%s2267_s30 + $0xd0] ss:$8 sps:$4 sm:$0xff]  }
  0x23   : > { %v1903_v8 = vld [vmem:[%s2267_s30 + $0x1d0] ss:$8 sps:$4 sm:$0xff]   ;;  %v1904_v9 = vld [vmem:[%s2267_s30 + $0xe4] ss:$8 sps:$4 sm:$0xff]  }
  0x24   : > { %763 = vmatpush1.bf16.msra.mxu0 %v1811_v10  ;;  %1770 = vmatpush1.bf16.msra.mxu1 %v1811_v10  ;;  %v1906_v10 = vld [vmem:[%s2267_s30 + $0x1e4] ss:$8 sps:$4 sm:$0xff]  }
  0x25   : > { %764 = vmatprep.subr.bf16.mxu0 %v2197_v1  ;;  %1755 = vmatprep.subr.bf16.mxu1 %v2197_v1 }
  0x28   : > { %765 = vmatpush1.bf16.msra.mxu0 %v1812_v11  ;;  %1771 = vmatpush1.bf16.msra.mxu1 %v1812_v11  ;;  %v1908_v11 = vld [vmem:[%s2267_s30 + $0xe0] ss:$8 sps:$4 sm:$0xff]  }
  0x29   : > { %766 = vmatprep.subr.bf16.mxu0 %v2197_v1  ;;  %1756 = vmatprep.subr.bf16.mxu1 %v2197_v1 }
  0x2c   : > { %767 = vmatpush1.bf16.msra.mxu0 %v1813_v12  ;;  %1772 = vmatpush1.bf16.msra.mxu1 %v1813_v12  ;;  %v1909_v12 = vld [vmem:[%s2267_s30 + $0x1e0] ss:$8 sps:$4 sm:$0xff]  }
  0x2d   : > { %768 = vmatprep.subr.bf16.mxu0 %v2197_v1  ;;  %1757 = vmatprep.subr.bf16.mxu1 %v2197_v1 }
  0x30   : > { %769 = vmatpush1.bf16.msra.mxu0 %v1814_v13  ;;  %1773 = vmatpush1.bf16.msra.mxu1 %v1814_v13  ;;  %v1910_v13 = vld [vmem:[%s2267_s30 + $0xf4] ss:$8 sps:$4 sm:$0xff]  }
  0x31   : > { %770 = vmatprep.subr.bf16.mxu0 %v2197_v1  ;;  %1758 = vmatprep.subr.bf16.mxu1 %v2197_v1 }
  0x34   : > { %771 = vmatpush1.bf16.msra.mxu0 %v1815_v14  ;;  %1774 = vmatpush1.bf16.msra.mxu1 %v1815_v14  ;;  %v1912_v14 = vld [vmem:[%s2267_s30 + $0x1f4] ss:$8 sps:$4 sm:$0xff]  }
  0x35   : > { %772 = vmatprep.subr.bf16.mxu0 %v2197_v1  ;;  %1759 = vmatprep.subr.bf16.mxu1 %v2197_v1 }
  0x38   : > { %773 = vmatpush1.bf16.msra.mxu0 %v1816_v15  ;;  %1775 = vmatpush1.bf16.msra.mxu1 %v1816_v15  ;;  %v1914_v15 = vld [vmem:[%s2267_s30 + $0xf0] ss:$8 sps:$4 sm:$0xff]  }
  0x39   : > { %774 = vmatprep.subr.bf16.mxu0 %v2197_v1  ;;  %1760 = vmatprep.subr.bf16.mxu1 %v2197_v1 }
  0x3c   : > { %775 = vmatpush1.bf16.msra.mxu0 %v1817_v16  ;;  %1776 = vmatpush1.bf16.msra.mxu1 %v1817_v16  ;;  %v1915_v16 = vld [vmem:[%s2267_s30 + $0x1f0] ss:$8 sps:$4 sm:$0xff]  }
  0x3d   : > { %776 = vmatprep.subr.bf16.mxu0 %v2197_v1  ;;  %1761 = vmatprep.subr.bf16.mxu1 %v2197_v1 }
  0x40   : > { %777 = vmatpush1.bf16.msra.mxu0 %v1818_v17  ;;  %1777 = vmatpush1.bf16.msra.mxu1 %v1818_v17  ;;  %v2393_v17 = vld [vmem:[%s2538_s2] ss:$0 sm:$0xff] }
  0x41   : > { %778 = vmatprep.subr.bf16.mxu0 %v2197_v1  ;;  %1762 = vmatprep.subr.bf16.mxu1 %v2197_v1  ;;  %v1892_v1 = vld [vmem:[%s2267_s30 + $0xc4] ss:$8 sps:$4 sm:$0xff]  }
  0x44   : > { %779 = vmatpush1.bf16.msra.mxu0 %v1819_v18  ;;  %1778 = vmatpush1.bf16.msra.mxu1 %v1819_v18 }
  0x47   : > { %781 = vmatmul.mubr.bf16.vlgmr.msra.gmra.mrb[0].mxu0 %v1820_v19  ;;  %909 = vmatmul.mubr.bf16.vlgmr.msra.gmra.mrb[0].mxu1 %v1823_v20 }
  0x48   : > { %788 = vmatprep.mubr.bf16.mxu0 %v1826_v21  ;;  %916 = vmatprep.mubr.bf16.mxu1 %v1828_v22 }
  0x4f   : > { %789 = vmatmul.mubr.bf16.gmra.mrb[4].mxu0 %v1830_v23  ;;  %917 = vmatmul.mubr.bf16.gmra.mrb[4].mxu1 %v1831_v24 }
  0x50   : > { %796 = vmatprep.mubr.bf16.mxu0 %v1832_v25  ;;  %924 = vmatprep.mubr.bf16.mxu1 %v1834_v26 }
  0x57   : > { %797 = vmatmul.mubr.bf16.gmra.mrb[8].mxu0 %v1836_v27  ;;  %925 = vmatmul.mubr.bf16.gmra.mrb[8].mxu1 %v1837_v28 }
  0x58   : > { %804 = vmatprep.mubr.bf16.mxu0 %v1838_v29  ;;  %932 = vmatprep.mubr.bf16.mxu1 %v1840_v30 }
  0x5f   : > { %805 = vmatmul.mubr.bf16.gmra.mrb[12].mxu0 %v1842_v31  ;;  %933 = vmatmul.mubr.bf16.gmra.mrb[12].mxu1 %v1843_v32 }
  0x60   : > { %812 = vmatprep.mubr.bf16.mxu0 %v1844_v33  ;;  %940 = vmatprep.mubr.bf16.mxu1 %v1846_v34 }
  0x67   : > { %813 = vmatmul.mubr.bf16.gmra.mrb[16].mxu0 %v1848_v35  ;;  %941 = vmatmul.mubr.bf16.gmra.mrb[16].mxu1 %v1849_v36 }
  0x68   : > { %820 = vmatprep.mubr.bf16.mxu0 %v1850_v37  ;;  %948 = vmatprep.mubr.bf16.mxu1 %v1852_v38 }
  0x6f   : > { %821 = vmatmul.mubr.bf16.gmra.mrb[20].mxu0 %v1854_v39  ;;  %949 = vmatmul.mubr.bf16.gmra.mrb[20].mxu1 %v1855_v40 }
  0x70   : > { %828 = vmatprep.mubr.bf16.mxu0 %v1856_v41  ;;  %956 = vmatprep.mubr.bf16.mxu1 %v1858_v42 }
  0x77   : > { %829 = vmatmul.mubr.bf16.gmra.mrb[24].mxu0 %v1860_v43  ;;  %957 = vmatmul.mubr.bf16.gmra.mrb[24].mxu1 %v1861_v44 }
  0x78   : > { %836 = vmatprep.mubr.bf16.mxu0 %v1862_v45  ;;  %964 = vmatprep.mubr.bf16.mxu1 %v1864_v46 }
  0x7f   : > { %837 = vmatmul.mubr.bf16.gmra.mrb[28].mxu0 %v1866_v47  ;;  %965 = vmatmul.mubr.bf16.gmra.mrb[28].mxu1 %v1867_v48 }
  0x80   : > { %844 = vmatprep.mubr.bf16.mxu0 %v1868_v49  ;;  %972 = vmatprep.mubr.bf16.mxu1 %v1870_v50 }
  0x87   : > { %845 = vmatmul.mubr.bf16.gmra.mrb[32].mxu0 %v1872_v51  ;;  %973 = vmatmul.mubr.bf16.gmra.mrb[32].mxu1 %v1873_v52 }
  0x88   : > { %852 = vmatprep.mubr.bf16.mxu0 %v1874_v53  ;;  %980 = vmatprep.mubr.bf16.mxu1 %v1876_v54 }
  0x8f   : > { %853 = vmatmul.mubr.bf16.gmra.mrb[36].mxu0 %v1878_v55  ;;  %981 = vmatmul.mubr.bf16.gmra.mrb[36].mxu1 %v1879_v56 }
  0x90   : > { %860 = vmatprep.mubr.bf16.mxu0 %v1880_v57  ;;  %988 = vmatprep.mubr.bf16.mxu1 %v1882_v58 }
  0x97   : > { %861 = vmatmul.mubr.bf16.gmra.mrb[40].mxu0 %v1884_v59  ;;  %989 = vmatmul.mubr.bf16.gmra.mrb[40].mxu1 %v1885_v60 }
  0x98   : > { %868 = vmatprep.mubr.bf16.mxu0 %v1886_v61  ;;  %996 = vmatprep.mubr.bf16.mxu1 %v1888_v62 }
  0x9f   : > { %869 = vmatmul.mubr.bf16.gmra.mrb[44].mxu0 %v1890_v63  ;;  %997 = vmatmul.mubr.bf16.gmra.mrb[44].mxu1 %v1891_v0 }
  0xa0   : > { %876 = vmatprep.mubr.bf16.mxu0 %v1892_v1  ;;  %1004 = vmatprep.mubr.bf16.mxu1 %v1894_v2 }
  0xa7   : > { %877 = vmatmul.mubr.bf16.gmra.mrb[48].mxu0 %v1896_v3  ;;  %1005 = vmatmul.mubr.bf16.gmra.mrb[48].mxu1 %v1897_v4 }
  0xa8   : > { %884 = vmatprep.mubr.bf16.mxu0 %v1898_v5  ;;  %1012 = vmatprep.mubr.bf16.mxu1 %v1900_v6 }
  0xaf   : > { %885 = vmatmul.mubr.bf16.gmra.mrb[52].mxu0 %v1902_v7  ;;  %1013 = vmatmul.mubr.bf16.gmra.mrb[52].mxu1 %v1903_v8 }
  0xb0   : > { %892 = vmatprep.mubr.bf16.mxu0 %v1904_v9  ;;  %1020 = vmatprep.mubr.bf16.mxu1 %v1906_v10 }
  0xb7   : > { %893 = vmatmul.mubr.bf16.gmra.mrb[56].mxu0 %v1908_v11  ;;  %1021 = vmatmul.mubr.bf16.gmra.mrb[56].mxu1 %v1909_v12 }
  0xb8   : > { %900 = vmatprep.mubr.bf16.mxu0 %v1910_v13  ;;  %1028 = vmatprep.mubr.bf16.mxu1 %v1912_v14 }
  0xbf   : > { %901 = vmatmul.mubr.bf16.gmra.mrb[60].mxu0 %v1914_v15  ;;  %1029 = vmatmul.mubr.bf16.gmra.mrb[60].mxu1 %v1915_v16 }
 0x11a   : > { %v782_v18 = vpop.f32.mrb[0].mxu0  ;;  %v910_v19 = vpop.f32.mrb[0].mxu1 }
 0x11b   : > { %v783_v20 = vadd.f32 %v2393_v17, %v782_v18  ;;  %v911_v21 = vadd.f32 %v2393_v17, %v910_v19  ;;  %v784_v22 = vpop.f32.mrb[1].mxu0  ;;  %v912_v23 = vpop.f32.mrb[1].mxu1 }
 0x11c   : > { %v785_v24 = vpop.f32.mrb[2].mxu0  ;;  %v913_v25 = vpop.f32.mrb[2].mxu1 }
 0x11d   : > { %v1680_v26 = vmul.f32 -1.442695, %v783_v20  ;;  %v1712_v27 = vmul.f32 -1.442695, %v911_v21  ;;  %v786_v28 = vadd.f32 %v2393_v17, %v785_v24  ;;  %v914_v29 = vadd.f32 %v2393_v17, %v913_v25  ;;  %v787_v30 = vpop.f32.mrb[3].mxu0  ;;  %v915_v31 = vpop.f32.mrb[3].mxu1 }
 0x11f   : > { %1916 = vpow2.f32 %v1680_v26  ;;  %v1681_v32 = vmul.f32 -1.442695, %v786_v28  ;;  %v1713_v33 = vmul.f32 -1.442695, %v914_v29 }
 0x120   : > { %1918 = vpow2.f32 %v1712_v27 }
 0x121   : > { %1920 = vpow2.f32 %v1681_v32 }
 0x122   : > { %1922 = vpow2.f32 %v1713_v33  ;;  %v790_v34 = vpop.f32.mrb[4].mxu0  ;;  %v918_v35 = vpop.f32.mrb[4].mxu1 }
 0x123   : > { %v791_v36 = vadd.f32 %v2393_v17, %v790_v34  ;;  %v919_v37 = vadd.f32 %v2393_v17, %v918_v35  ;;  %v792_v38 = vpop.f32.mrb[5].mxu0  ;;  %v920_v39 = vpop.f32.mrb[5].mxu1 }
 0x124   : > { %v793_v40 = vpop.f32.mrb[6].mxu0  ;;  %v921_v41 = vpop.f32.mrb[6].mxu1 }
 0x125   : > { %v1682_v42 = vmul.f32 -1.442695, %v791_v36  ;;  %v1714_v43 = vmul.f32 -1.442695, %v919_v37  ;;  %v794_v44 = vadd.f32 %v2393_v17, %v793_v40  ;;  %v922_v45 = vadd.f32 %v2393_v17, %v921_v41  ;;  %v795_v46 = vpop.f32.mrb[7].mxu0  ;;  %v923_v47 = vpop.f32.mrb[7].mxu1 }
 0x127   : > { %1924 = vpow2.f32 %v1682_v42  ;;  %v1683_v48 = vmul.f32 -1.442695, %v794_v44  ;;  %v1715_v49 = vmul.f32 -1.442695, %v922_v45 }
 0x128   : > { %1926 = vpow2.f32 %v1714_v43 }
 0x129   : > { %v1917_v50 = vpop.eup %1916  ;;  %1928 = vpow2.f32 %v1683_v48 }
 0x12a   : > { %v1919_v51 = vpop.eup %1918  ;;  %v1229_v52 = vadd.f32 1.0, %v1917_v50  ;;  %1930 = vpow2.f32 %v1715_v49  ;;  %v798_v53 = vpop.f32.mrb[8].mxu0 }
 0x12b   : > { %v926_v54 = vpop.f32.mrb[8].mxu1  ;;  %v1921_v55 = vpop.eup %1920  ;;  %v1261_v56 = vadd.f32 1.0, %v1919_v51  ;;  %v799_v57 = vadd.f32 %v2393_v17, %v798_v53 }
 0x12c   : > { %v927_v58 = vadd.f32 %v2393_v17, %v926_v54  ;;  %v800_v59 = vpop.f32.mrb[9].mxu0  ;;  %v928_v60 = vpop.f32.mrb[9].mxu1  ;;  %1932 = vrcp.f32 %v1229_v52  ;;  %v1230_v62 = vadd.f32 1.0, %v1921_v55 }
 0x12d   : > { %v1923_v61 = vpop.eup %1922  ;;  %v801_v63 = vpop.f32.mrb[10].mxu0  ;;  %1934 = vrcp.f32 %v1261_v56  ;;  %v1684_v2 = vmul.f32 -1.442695, %v799_v57 }
 0x12e   : > { %v929_v0 = vpop.f32.mrb[10].mxu1  ;;  %v1262_v1 = vadd.f32 1.0, %v1923_v61  ;;  %v1716_v3 = vmul.f32 -1.442695, %v927_v58  ;;  %v803_v4 = vpop.f32.mrb[11].mxu0  ;;  %1936 = vrcp.f32 %v1230_v62  ;;  %v802_v5 = vadd.f32 %v2393_v17, %v801_v63 }
 0x12f   : > { %v930_v6 = vadd.f32 %v2393_v17, %v929_v0  ;;  %v931_v7 = vpop.f32.mrb[11].mxu1 }
 0x130   : > { %1938 = vrcp.f32 %v1262_v1  ;;  %v1685_v8 = vmul.f32 -1.442695, %v802_v5 }
 0x131   : > { %1940 = vpow2.f32 %v1684_v2  ;;  %v1717_v9 = vmul.f32 -1.442695, %v930_v6  ;;  %v1925_v10 = vpop.eup %1924 }
 0x132   : > { %1942 = vpow2.f32 %v1716_v3  ;;  %v1927_v11 = vpop.eup %1926  ;;  %v1231_v12 = vadd.f32 1.0, %v1925_v10  ;;  %v806_v13 = vpop.f32.mrb[12].mxu0 }
 0x133   : > { %1944 = vpow2.f32 %v1685_v8  ;;  %v934_v14 = vpop.f32.mrb[12].mxu1  ;;  %v1929_v15 = vpop.eup %1928  ;;  %v1263_v16 = vadd.f32 1.0, %v1927_v11  ;;  %v807_v18 = vadd.f32 %v2393_v17, %v806_v13 }
 0x134   : > { %1946 = vpow2.f32 %v1717_v9  ;;  %v935_v19 = vadd.f32 %v2393_v17, %v934_v14  ;;  %v808_v20 = vpop.f32.mrb[13].mxu0  ;;  %v936_v21 = vpop.f32.mrb[13].mxu1  ;;  %v1232_v23 = vadd.f32 1.0, %v1929_v15 }
 0x135   : > { %v1931_v22 = vpop.eup %1930  ;;  %1948 = vrcp.f32 %v1231_v12  ;;  %v809_v24 = vpop.f32.mrb[14].mxu0  ;;  %v1686_v27 = vmul.f32 -1.442695, %v807_v18 }
 0x136   : > { %v937_v25 = vpop.f32.mrb[14].mxu1  ;;  %1950 = vrcp.f32 %v1263_v16  ;;  %v1264_v26 = vadd.f32 1.0, %v1931_v22  ;;  %v1718_v28 = vmul.f32 -1.442695, %v935_v19  ;;  %v811_v29 = vpop.f32.mrb[15].mxu0  ;;  %v810_v31 = vadd.f32 %v2393_v17, %v809_v24 }
 0x137   : > { %v1933_v30 = vpop.eup %1932  ;;  %1952 = vrcp.f32 %v1232_v23  ;;  %v938_v32 = vadd.f32 %v2393_v17, %v937_v25  ;;  %v939_v33 = vpop.f32.mrb[15].mxu1 }
 0x138   : > { %v1935_v34 = vpop.eup %1934  ;;  %1421 = vst [vmem:[%s2414_s8] sm:$0xff] %v1933_v30  ;;  %1954 = vrcp.f32 %v1264_v26  ;;  %v1687_v36 = vmul.f32 -1.442695, %v810_v31 }
 0x139   : > { %v1937_v35 = vpop.eup %1936  ;;  %1453 = vst [vmem:[%s2414_s8 + $0x100] sm:$0xff] %v1935_v34  ;;  %1956 = vpow2.f32 %v1686_v27  ;;  %v1719_v37 = vmul.f32 -1.442695, %v938_v32 }
 0x13a   : > { %v1939_v38 = vpop.eup %1938  ;;  %1422 = vst [vmem:[%s2414_s8 + $0x8] sm:$0xff] %v1937_v35  ;;  %1958 = vpow2.f32 %v1718_v28  ;;  %v814_v40 = vpop.f32.mrb[16].mxu0 }
 0x13b   : > { %v1941_v39 = vpop.eup %1940  ;;  %1454 = vst [vmem:[%s2414_s8 + $0x108] sm:$0xff] %v1939_v38  ;;  %1960 = vpow2.f32 %v1687_v36  ;;  %v942_v41 = vpop.f32.mrb[16].mxu1  ;;  %v815_v44 = vadd.f32 %v2393_v17, %v814_v40 }
 0x13c   : > { %v1943_v42 = vpop.eup %1942  ;;  %v1233_v43 = vadd.f32 1.0, %v1941_v39  ;;  %1962 = vpow2.f32 %v1719_v37  ;;  %v943_v45 = vadd.f32 %v2393_v17, %v942_v41  ;;  %v816_v46 = vpop.f32.mrb[17].mxu0 }
 0x13d   : > { %v944_v47 = vpop.f32.mrb[17].mxu1  ;;  %v1945_v48 = vpop.eup %1944  ;;  %v1265_v49 = vadd.f32 1.0, %v1943_v42  ;;  %v1688_v54 = vmul.f32 -1.442695, %v815_v44 }
 0x13e   : > { %v817_v50 = vpop.f32.mrb[18].mxu0  ;;  %v945_v51 = vpop.f32.mrb[18].mxu1  ;;  %1964 = vrcp.f32 %v1233_v43  ;;  %v1234_v53 = vadd.f32 1.0, %v1945_v48  ;;  %v1720_v55 = vmul.f32 -1.442695, %v943_v45 }
 0x13f   : > { %v1947_v52 = vpop.eup %1946  ;;  %v819_v56 = vpop.f32.mrb[19].mxu0  ;;  %1966 = vrcp.f32 %v1265_v49  ;;  %v818_v59 = vadd.f32 %v2393_v17, %v817_v50  ;;  %v946_v60 = vadd.f32 %v2393_v17, %v945_v51 }
 0x140   : > { %v1949_v57 = vpop.eup %1948  ;;  %v1266_v58 = vadd.f32 1.0, %v1947_v52  ;;  %v947_v61 = vpop.f32.mrb[19].mxu1  ;;  %1968 = vrcp.f32 %v1234_v53 }
 0x141   : > { %v1951_v62 = vpop.eup %1950  ;;  %1423 = vst [vmem:[%s2414_s8 + $0x10] sm:$0xff] %v1949_v57  ;;  %v1689_v0 = vmul.f32 -1.442695, %v818_v59  ;;  %v1721_v1 = vmul.f32 -1.442695, %v946_v60 }
 0x142   : > { %v1953_v63 = vpop.eup %1952  ;;  %1455 = vst [vmem:[%s2414_s8 + $0x110] sm:$0xff] %v1951_v62  ;;  %1970 = vrcp.f32 %v1266_v58  ;;  %v822_v4 = vpop.f32.mrb[20].mxu0 }
 0x143   : > { %v1955_v2 = vpop.eup %1954  ;;  %1424 = vst [vmem:[%s2414_s8 + $0x18] sm:$0xff] %v1953_v63  ;;  %1972 = vpow2.f32 %v1688_v54  ;;  %v950_v5 = vpop.f32.mrb[20].mxu1  ;;  %v823_v8 = vadd.f32 %v2393_v17, %v822_v4 }
 0x144   : > { %v1957_v3 = vpop.eup %1956  ;;  %1456 = vst [vmem:[%s2414_s8 + $0x118] sm:$0xff] %v1955_v2  ;;  %1974 = vpow2.f32 %v1720_v55  ;;  %v951_v9 = vadd.f32 %v2393_v17, %v950_v5  ;;  %v824_v10 = vpop.f32.mrb[21].mxu0 }
 0x145   : > { %v1959_v6 = vpop.eup %1958  ;;  %v1235_v7 = vadd.f32 1.0, %v1957_v3  ;;  %1976 = vpow2.f32 %v1689_v0  ;;  %v952_v11 = vpop.f32.mrb[21].mxu1  ;;  %v1690_v19 = vmul.f32 -1.442695, %v823_v8 }
 0x146   : > { %v1961_v12 = vpop.eup %1960  ;;  %v1267_v13 = vadd.f32 1.0, %v1959_v6  ;;  %1978 = vpow2.f32 %v1721_v1  ;;  %v825_v14 = vpop.f32.mrb[22].mxu0  ;;  %v1722_v20 = vmul.f32 -1.442695, %v951_v9 }
 0x147   : > { %v953_v15 = vpop.f32.mrb[22].mxu1  ;;  %v1963_v16 = vpop.eup %1962  ;;  %1980 = vrcp.f32 %v1235_v7  ;;  %v1236_v18 = vadd.f32 1.0, %v1961_v12  ;;  %v826_v23 = vadd.f32 %v2393_v17, %v825_v14 }
 0x148   : > { %v827_v21 = vpop.f32.mrb[23].mxu0  ;;  %1982 = vrcp.f32 %v1267_v13  ;;  %v1268_v22 = vadd.f32 1.0, %v1963_v16  ;;  %v954_v24 = vadd.f32 %v2393_v17, %v953_v15  ;;  %v955_v25 = vpop.f32.mrb[23].mxu1 }
 0x149   : > { %v1965_v26 = vpop.eup %1964  ;;  %1984 = vrcp.f32 %v1236_v18  ;;  %v1691_v28 = vmul.f32 -1.442695, %v826_v23 }
 0x14a   : > { %v1967_v27 = vpop.eup %1966  ;;  %1425 = vst [vmem:[%s2414_s8 + $0x20] sm:$0xff] %v1965_v26  ;;  %1986 = vrcp.f32 %v1268_v22  ;;  %v1723_v29 = vmul.f32 -1.442695, %v954_v24  ;;  %v830_v32 = vpop.f32.mrb[24].mxu0 }
 0x14b   : > { %v1969_v30 = vpop.eup %1968  ;;  %1457 = vst [vmem:[%s2414_s8 + $0x120] sm:$0xff] %v1967_v27  ;;  %1988 = vpow2.f32 %v1690_v19  ;;  %v958_v33 = vpop.f32.mrb[24].mxu1  ;;  %v831_v35 = vadd.f32 %v2393_v17, %v830_v32 }
 0x14c   : > { %v1971_v31 = vpop.eup %1970  ;;  %1426 = vst [vmem:[%s2414_s8 + $0x28] sm:$0xff] %v1969_v30  ;;  %1990 = vpow2.f32 %v1722_v20  ;;  %v959_v36 = vadd.f32 %v2393_v17, %v958_v33  ;;  %v832_v37 = vpop.f32.mrb[25].mxu0 }
 0x14d   : > { %v1973_v34 = vpop.eup %1972  ;;  %1458 = vst [vmem:[%s2414_s8 + $0x128] sm:$0xff] %v1971_v31  ;;  %1992 = vpow2.f32 %v1691_v28  ;;  %v960_v38 = vpop.f32.mrb[25].mxu1  ;;  %v1692_v49 = vmul.f32 -1.442695, %v831_v35 }
 0x14e   : > { %v1975_v39 = vpop.eup %1974  ;;  %v1237_v40 = vadd.f32 1.0, %v1973_v34  ;;  %1994 = vpow2.f32 %v1723_v29  ;;  %v833_v41 = vpop.f32.mrb[26].mxu0  ;;  %v1724_v54 = vmul.f32 -1.442695, %v959_v36 }
 0x14f   : > { %v961_v42 = vpop.f32.mrb[26].mxu1  ;;  %v1977_v43 = vpop.eup %1976  ;;  %v1269_v44 = vadd.f32 1.0, %v1975_v39  ;;  %v834_v45 = vadd.f32 %v2393_v17, %v833_v41 }
 0x150   : > { %v835_v46 = vpop.f32.mrb[27].mxu0  ;;  %v1979_v47 = vpop.eup %1978  ;;  %1996 = vrcp.f32 %v1237_v40  ;;  %v1238_v48 = vadd.f32 1.0, %v1977_v43  ;;  %v962_v50 = vadd.f32 %v2393_v17, %v961_v42 }
 0x151   : > { %v963_v51 = vpop.f32.mrb[27].mxu1  ;;  %v1981_v52 = vpop.eup %1980  ;;  %1998 = vrcp.f32 %v1269_v44  ;;  %v1270_v53 = vadd.f32 1.0, %v1979_v47  ;;  %v1693_v56 = vmul.f32 -1.442695, %v834_v45 }
 0x152   : > { %v1983_v55 = vpop.eup %1982  ;;  %1427 = vst [vmem:[%s2414_s8 + $0x30] sm:$0xff] %v1981_v52  ;;  %2000 = vrcp.f32 %v1238_v48  ;;  %v1725_v58 = vmul.f32 -1.442695, %v962_v50  ;;  %v838_v60 = vpop.f32.mrb[28].mxu0 }
 0x153   : > { %v1985_v57 = vpop.eup %1984  ;;  %1459 = vst [vmem:[%s2414_s8 + $0x130] sm:$0xff] %v1983_v55  ;;  %2002 = vrcp.f32 %v1270_v53  ;;  %v966_v61 = vpop.f32.mrb[28].mxu1  ;;  %v839_v63 = vadd.f32 %v2393_v17, %v838_v60 }
 0x154   : > { %v1987_v59 = vpop.eup %1986  ;;  %1428 = vst [vmem:[%s2414_s8 + $0x38] sm:$0xff] %v1985_v57  ;;  %2004 = vpow2.f32 %v1692_v49  ;;  %v967_v0 = vadd.f32 %v2393_v17, %v966_v61  ;;  %v840_v1 = vpop.f32.mrb[29].mxu0 }
 0x155   : > { %v1989_v62 = vpop.eup %1988  ;;  %1460 = vst [vmem:[%s2414_s8 + $0x138] sm:$0xff] %v1987_v59  ;;  %2006 = vpow2.f32 %v1724_v54  ;;  %v968_v2 = vpop.f32.mrb[29].mxu1  ;;  %v1694_v9 = vmul.f32 -1.442695, %v839_v63 }
 0x156   : > { %v1991_v3 = vpop.eup %1990  ;;  %v1239_v4 = vadd.f32 1.0, %v1989_v62  ;;  %2008 = vpow2.f32 %v1693_v56  ;;  %v841_v5 = vpop.f32.mrb[30].mxu0  ;;  %v1726_v18 = vmul.f32 -1.442695, %v967_v0 }
 0x157   : > { %v969_v6 = vpop.f32.mrb[30].mxu1  ;;  %v1993_v7 = vpop.eup %1992  ;;  %v1271_v8 = vadd.f32 1.0, %v1991_v3  ;;  %2010 = vpow2.f32 %v1725_v58  ;;  %v842_v13 = vadd.f32 %v2393_v17, %v841_v5 }
 0x158   : > { %v843_v10 = vpop.f32.mrb[31].mxu0  ;;  %v1995_v11 = vpop.eup %1994  ;;  %2012 = vrcp.f32 %v1239_v4  ;;  %v1240_v12 = vadd.f32 1.0, %v1993_v7  ;;  %v970_v14 = vadd.f32 %v2393_v17, %v969_v6 }
 0x159   : > { %v971_v15 = vpop.f32.mrb[31].mxu1  ;;  %2014 = vrcp.f32 %v1271_v8  ;;  %v1272_v16 = vadd.f32 1.0, %v1995_v11  ;;  %v1695_v20 = vmul.f32 -1.442695, %v842_v13 }
 0x15a   : > { %v1997_v19 = vpop.eup %1996  ;;  %2016 = vrcp.f32 %v1240_v12  ;;  %v1727_v22 = vmul.f32 -1.442695, %v970_v14  ;;  %v846_v24 = vpop.f32.mrb[32].mxu0 }
 0x15b   : > { %v1999_v21 = vpop.eup %1998  ;;  %1429 = vst [vmem:[%s2414_s8 + $0x40] sm:$0xff] %v1997_v19  ;;  %2018 = vrcp.f32 %v1272_v16  ;;  %v974_v25 = vpop.f32.mrb[32].mxu1  ;;  %v847_v27 = vadd.f32 %v2393_v17, %v846_v24 }
 0x15c   : > { %v2001_v23 = vpop.eup %2000  ;;  %1461 = vst [vmem:[%s2414_s8 + $0x140] sm:$0xff] %v1999_v21  ;;  %2020 = vpow2.f32 %v1694_v9  ;;  %v848_v28 = vpop.f32.mrb[33].mxu0  ;;  %v975_v31 = vadd.f32 %v2393_v17, %v974_v25 }
 0x15d   : > { %v2003_v26 = vpop.eup %2002  ;;  %1430 = vst [vmem:[%s2414_s8 + $0x48] sm:$0xff] %v2001_v23  ;;  %2022 = vpow2.f32 %v1726_v18  ;;  %v976_v29 = vpop.f32.mrb[33].mxu1  ;;  %v1696_v44 = vmul.f32 -1.442695, %v847_v27 }
 0x15e   : > { %v2005_v30 = vpop.eup %2004  ;;  %1462 = vst [vmem:[%s2414_s8 + $0x148] sm:$0xff] %v2003_v26  ;;  %2024 = vpow2.f32 %v1695_v20  ;;  %v849_v32 = vpop.f32.mrb[34].mxu0  ;;  %v1728_v47 = vmul.f32 -1.442695, %v975_v31 }
 0x15f   : > { %v977_v33 = vpop.f32.mrb[34].mxu1  ;;  %v2007_v34 = vpop.eup %2006  ;;  %v1241_v35 = vadd.f32 1.0, %v2005_v30  ;;  %2026 = vpow2.f32 %v1727_v22  ;;  %v850_v39 = vadd.f32 %v2393_v17, %v849_v32 }
 0x160   : > { %v851_v36 = vpop.f32.mrb[35].mxu0  ;;  %v2009_v37 = vpop.eup %2008  ;;  %v1273_v38 = vadd.f32 1.0, %v2007_v34  ;;  %v978_v40 = vadd.f32 %v2393_v17, %v977_v33 }
 0x161   : > { %v979_v41 = vpop.f32.mrb[35].mxu1  ;;  %v2011_v42 = vpop.eup %2010  ;;  %2028 = vrcp.f32 %v1241_v35  ;;  %v1242_v43 = vadd.f32 1.0, %v2009_v37  ;;  %v1697_v49 = vmul.f32 -1.442695, %v850_v39 }
 0x162   : > { %v2013_v45 = vpop.eup %2012  ;;  %2030 = vrcp.f32 %v1273_v38  ;;  %v1274_v46 = vadd.f32 1.0, %v2011_v42  ;;  %v1729_v51 = vmul.f32 -1.442695, %v978_v40  ;;  %v854_v52 = vpop.f32.mrb[36].mxu0 }
 0x163   : > { %v2015_v48 = vpop.eup %2014  ;;  %1431 = vst [vmem:[%s2414_s8 + $0x50] sm:$0xff] %v2013_v45  ;;  %2032 = vrcp.f32 %v1242_v43  ;;  %v982_v53 = vpop.f32.mrb[36].mxu1  ;;  %v855_v55 = vadd.f32 %v2393_v17, %v854_v52 }
 0x164   : > { %v2017_v50 = vpop.eup %2016  ;;  %1463 = vst [vmem:[%s2414_s8 + $0x150] sm:$0xff] %v2015_v48  ;;  %2034 = vrcp.f32 %v1274_v46  ;;  %v856_v56 = vpop.f32.mrb[37].mxu0  ;;  %v983_v59 = vadd.f32 %v2393_v17, %v982_v53 }
 0x165   : > { %v2019_v54 = vpop.eup %2018  ;;  %1432 = vst [vmem:[%s2414_s8 + $0x58] sm:$0xff] %v2017_v50  ;;  %2036 = vpow2.f32 %v1696_v44  ;;  %v984_v57 = vpop.f32.mrb[37].mxu1  ;;  %v1698_v8 = vmul.f32 -1.442695, %v855_v55 }
 0x166   : > { %v2021_v58 = vpop.eup %2020  ;;  %1464 = vst [vmem:[%s2414_s8 + $0x158] sm:$0xff] %v2019_v54  ;;  %2038 = vpow2.f32 %v1728_v47  ;;  %v857_v60 = vpop.f32.mrb[38].mxu0  ;;  %v1730_v10 = vmul.f32 -1.442695, %v983_v59 }
 0x167   : > { %v985_v61 = vpop.f32.mrb[38].mxu1  ;;  %v2023_v62 = vpop.eup %2022  ;;  %v1243_v63 = vadd.f32 1.0, %v2021_v58  ;;  %2040 = vpow2.f32 %v1697_v49  ;;  %v858_v3 = vadd.f32 %v2393_v17, %v857_v60 }
 0x168   : > { %v859_v0 = vpop.f32.mrb[39].mxu0  ;;  %v2025_v1 = vpop.eup %2024  ;;  %v1275_v2 = vadd.f32 1.0, %v2023_v62  ;;  %2042 = vpow2.f32 %v1729_v51  ;;  %v986_v4 = vadd.f32 %v2393_v17, %v985_v61 }
 0x169   : > { %v987_v5 = vpop.f32.mrb[39].mxu1  ;;  %v2027_v6 = vpop.eup %2026  ;;  %2044 = vrcp.f32 %v1243_v63  ;;  %v1244_v7 = vadd.f32 1.0, %v2025_v1  ;;  %v1699_v12 = vmul.f32 -1.442695, %v858_v3 }
 0x16a   : > { %2046 = vrcp.f32 %v1275_v2  ;;  %v1276_v9 = vadd.f32 1.0, %v2027_v6  ;;  %v1731_v14 = vmul.f32 -1.442695, %v986_v4  ;;  %v862_v15 = vpop.f32.mrb[40].mxu0  ;;  %v990_v16 = vpop.f32.mrb[40].mxu1 }
 0x16b   : > { %v2029_v11 = vpop.eup %2028  ;;  %2048 = vrcp.f32 %v1244_v7  ;;  %v863_v19 = vadd.f32 %v2393_v17, %v862_v15  ;;  %v864_v20 = vpop.f32.mrb[41].mxu0  ;;  %v991_v23 = vadd.f32 %v2393_v17, %v990_v16 }
 0x16c   : > { %v2031_v13 = vpop.eup %2030  ;;  %1433 = vst [vmem:[%s2414_s8 + $0x60] sm:$0xff] %v2029_v11  ;;  %2050 = vrcp.f32 %v1276_v9  ;;  %v992_v21 = vpop.f32.mrb[41].mxu1 }
 0x16d   : > { %v2033_v18 = vpop.eup %2032  ;;  %1465 = vst [vmem:[%s2414_s8 + $0x160] sm:$0xff] %v2031_v13  ;;  %2052 = vpow2.f32 %v1698_v8  ;;  %v865_v24 = vpop.f32.mrb[42].mxu0  ;;  %v1700_v27 = vmul.f32 -1.442695, %v863_v19  ;;  %v1732_v38 = vmul.f32 -1.442695, %v991_v23 }
 0x16e   : > { %v2035_v22 = vpop.eup %2034  ;;  %1434 = vst [vmem:[%s2414_s8 + $0x68] sm:$0xff] %v2033_v18  ;;  %2054 = vpow2.f32 %v1730_v10  ;;  %v993_v25 = vpop.f32.mrb[42].mxu1  ;;  %v866_v28 = vadd.f32 %v2393_v17, %v865_v24 }
 0x16f   : > { %v2037_v26 = vpop.eup %2036  ;;  %1466 = vst [vmem:[%s2414_s8 + $0x168] sm:$0xff] %v2035_v22  ;;  %2056 = vpow2.f32 %v1699_v12  ;;  %v867_v29 = vpop.f32.mrb[43].mxu0  ;;  %v994_v33 = vadd.f32 %v2393_v17, %v993_v25 }
 0x170   : > { %v995_v30 = vpop.f32.mrb[43].mxu1  ;;  %v2039_v31 = vpop.eup %2038  ;;  %v1245_v32 = vadd.f32 1.0, %v2037_v26  ;;  %2058 = vpow2.f32 %v1731_v14  ;;  %v1701_v41 = vmul.f32 -1.442695, %v866_v28 }
 0x171   : > { %v2041_v34 = vpop.eup %2040  ;;  %v1277_v35 = vadd.f32 1.0, %v2039_v31  ;;  %2060 = vpow2.f32 %v1700_v27  ;;  %v1733_v43 = vmul.f32 -1.442695, %v994_v33 }
 0x172   : > { %v2043_v36 = vpop.eup %2042  ;;  %2062 = vrcp.f32 %v1245_v32  ;;  %v1246_v37 = vadd.f32 1.0, %v2041_v34  ;;  %v870_v44 = vpop.f32.mrb[44].mxu0 }
 0x173   : > { %v2045_v39 = vpop.eup %2044  ;;  %2064 = vrcp.f32 %v1277_v35  ;;  %v1278_v40 = vadd.f32 1.0, %v2043_v36  ;;  %v998_v45 = vpop.f32.mrb[44].mxu1  ;;  %v871_v47 = vadd.f32 %v2393_v17, %v870_v44 }
 0x174   : > { %v2047_v42 = vpop.eup %2046  ;;  %1435 = vst [vmem:[%s2414_s8 + $0x70] sm:$0xff] %v2045_v39  ;;  %2066 = vrcp.f32 %v1246_v37  ;;  %v872_v48 = vpop.f32.mrb[45].mxu0  ;;  %v999_v55 = vadd.f32 %v2393_v17, %v998_v45 }
 0x175   : > { %v2049_v46 = vpop.eup %2048  ;;  %1467 = vst [vmem:[%s2414_s8 + $0x170] sm:$0xff] %v2047_v42  ;;  %2068 = vrcp.f32 %v1278_v40  ;;  %v1000_v49 = vpop.f32.mrb[45].mxu1  ;;  %v1702_v54 = vmul.f32 -1.442695, %v871_v47 }
 0x176   : > { %v2051_v50 = vpop.eup %2050  ;;  %1436 = vst [vmem:[%s2414_s8 + $0x78] sm:$0xff] %v2049_v46  ;;  %2070 = vpow2.f32 %v1732_v38  ;;  %v873_v51 = vpop.f32.mrb[46].mxu0  ;;  %v1734_v4 = vmul.f32 -1.442695, %v999_v55 }
 0x177   : > { %v1001_v52 = vpop.f32.mrb[46].mxu1  ;;  %v2053_v53 = vpop.eup %2052  ;;  %1468 = vst [vmem:[%s2414_s8 + $0x178] sm:$0xff] %v2051_v50  ;;  %2072 = vpow2.f32 %v1701_v41  ;;  %v874_v60 = vadd.f32 %v2393_v17, %v873_v51 }
 0x178   : > { %v875_v56 = vpop.f32.mrb[47].mxu0  ;;  %v1003_v57 = vpop.f32.mrb[47].mxu1  ;;  %v1247_v59 = vadd.f32 1.0, %v2053_v53  ;;  %2074 = vpow2.f32 %v1733_v43  ;;  %v1002_v63 = vadd.f32 %v2393_v17, %v1001_v52 }
 0x179   : > { %v2055_v58 = vpop.eup %2054  ;;  %2076 = vpow2.f32 %v1702_v54  ;;  %v1703_v7 = vmul.f32 -1.442695, %v874_v60 }
 0x17a   : > { %v2057_v61 = vpop.eup %2056  ;;  %v1279_v62 = vadd.f32 1.0, %v2055_v58  ;;  %2078 = vrcp.f32 %v1247_v59  ;;  %v878_v8 = vpop.f32.mrb[48].mxu0  ;;  %v1735_v11 = vmul.f32 -1.442695, %v1002_v63 }
 0x17b   : > { %v2059_v0 = vpop.eup %2058  ;;  %v1248_v1 = vadd.f32 1.0, %v2057_v61  ;;  %v1006_v9 = vpop.f32.mrb[48].mxu1  ;;  %v879_v12 = vadd.f32 %v2393_v17, %v878_v8 }
 0x17c   : > { %v2061_v2 = vpop.eup %2060  ;;  %2080 = vrcp.f32 %v1279_v62  ;;  %v1280_v3 = vadd.f32 1.0, %v2059_v0  ;;  %v880_v13 = vpop.f32.mrb[49].mxu0  ;;  %v1007_v21 = vadd.f32 %v2393_v17, %v1006_v9 }
 0x17d   : > { %v2063_v5 = vpop.eup %2062  ;;  %2082 = vrcp.f32 %v1248_v1  ;;  %v1249_v6 = vadd.f32 1.0, %v2061_v2  ;;  %v1008_v14 = vpop.f32.mrb[49].mxu1  ;;  %v1704_v20 = vmul.f32 -1.442695, %v879_v12 }
 0x17e   : > { %v2065_v10 = vpop.eup %2064  ;;  %1437 = vst [vmem:[%s2414_s8 + $0x80] sm:$0xff] %v2063_v5  ;;  %2084 = vrcp.f32 %v1280_v3  ;;  %v881_v16 = vpop.f32.mrb[50].mxu0  ;;  %v1736_v33 = vmul.f32 -1.442695, %v1007_v21 }
 0x17f   : > { %v2067_v15 = vpop.eup %2066  ;;  %1469 = vst [vmem:[%s2414_s8 + $0x180] sm:$0xff] %v2065_v10  ;;  %2086 = vrcp.f32 %v1249_v6  ;;  %v1009_v18 = vpop.f32.mrb[50].mxu1  ;;  %v882_v25 = vadd.f32 %v2393_v17, %v881_v16 }
 0x180   : > { %v2069_v19 = vpop.eup %2068  ;;  %1438 = vst [vmem:[%s2414_s8 + $0x88] sm:$0xff] %v2067_v15  ;;  %2088 = vpow2.f32 %v1734_v4  ;;  %v883_v22 = vpop.f32.mrb[51].mxu0  ;;  %v1010_v28 = vadd.f32 %v2393_v17, %v1009_v18 }
 0x181   : > { %v1011_v23 = vpop.f32.mrb[51].mxu1  ;;  %v2071_v24 = vpop.eup %2070  ;;  %1470 = vst [vmem:[%s2414_s8 + $0x188] sm:$0xff] %v2069_v19  ;;  %2090 = vpow2.f32 %v1703_v7  ;;  %v1705_v36 = vmul.f32 -1.442695, %v882_v25 }
 0x182   : > { %v2073_v26 = vpop.eup %2072  ;;  %v1281_v27 = vadd.f32 1.0, %v2071_v24  ;;  %2092 = vpow2.f32 %v1735_v11  ;;  %v886_v37 = vpop.f32.mrb[52].mxu0  ;;  %v1737_v40 = vmul.f32 -1.442695, %v1010_v28 }
 0x183   : > { %v2075_v29 = vpop.eup %2074  ;;  %v1250_v30 = vadd.f32 1.0, %v2073_v26  ;;  %2094 = vpow2.f32 %v1704_v20  ;;  %v1014_v38 = vpop.f32.mrb[52].mxu1  ;;  %v887_v41 = vadd.f32 %v2393_v17, %v886_v37 }
 0x184   : > { %v2077_v31 = vpop.eup %2076  ;;  %2096 = vrcp.f32 %v1281_v27  ;;  %v1282_v32 = vadd.f32 1.0, %v2075_v29  ;;  %v1015_v42 = vadd.f32 %v2393_v17, %v1014_v38  ;;  %v888_v43 = vpop.f32.mrb[53].mxu0 }
 0x185   : > { %v2079_v34 = vpop.eup %2078  ;;  %2098 = vrcp.f32 %v1250_v30  ;;  %v1251_v35 = vadd.f32 1.0, %v2077_v31  ;;  %v1016_v44 = vpop.f32.mrb[53].mxu1  ;;  %v1706_v49 = vmul.f32 -1.442695, %v887_v41 }
 0x186   : > { %v2081_v39 = vpop.eup %2080  ;;  %1439 = vst [vmem:[%s2414_s8 + $0x90] sm:$0xff] %v2079_v34  ;;  %2100 = vrcp.f32 %v1282_v32  ;;  %v889_v46 = vpop.f32.mrb[54].mxu0  ;;  %v1738_v50 = vmul.f32 -1.442695, %v1015_v42 }
 0x187   : > { %v2083_v45 = vpop.eup %2082  ;;  %1471 = vst [vmem:[%s2414_s8 + $0x190] sm:$0xff] %v2081_v39  ;;  %2102 = vrcp.f32 %v1251_v35  ;;  %v1017_v47 = vpop.f32.mrb[54].mxu1  ;;  %v890_v51 = vadd.f32 %v2393_v17, %v889_v46 }
 0x188   : > { %v2085_v48 = vpop.eup %2084  ;;  %1440 = vst [vmem:[%s2414_s8 + $0x98] sm:$0xff] %v2083_v45  ;;  %2104 = vpow2.f32 %v1736_v33  ;;  %v891_v52 = vpop.f32.mrb[55].mxu0  ;;  %v1018_v55 = vadd.f32 %v2393_v17, %v1017_v47 }
 0x189   : > { %v1019_v53 = vpop.f32.mrb[55].mxu1  ;;  %v2087_v54 = vpop.eup %2086  ;;  %1472 = vst [vmem:[%s2414_s8 + $0x198] sm:$0xff] %v2085_v48  ;;  %2106 = vpow2.f32 %v1705_v36  ;;  %v1707_v61 = vmul.f32 -1.442695, %v890_v51 }
 0x18a   : > { %v2089_v56 = vpop.eup %2088  ;;  %1441 = vst [vmem:[%s2414_s8 + $0xa0] sm:$0xff] %v2087_v54  ;;  %2108 = vpow2.f32 %v1737_v40  ;;  %v1739_v0 = vmul.f32 -1.442695, %v1018_v55  ;;  %v894_v1 = vpop.f32.mrb[56].mxu0 }
 0x18b   : > { %v2091_v57 = vpop.eup %2090  ;;  %v1283_v58 = vadd.f32 1.0, %v2089_v56  ;;  %2110 = vpow2.f32 %v1706_v49  ;;  %v1022_v2 = vpop.f32.mrb[56].mxu1  ;;  %v895_v5 = vadd.f32 %v2393_v17, %v894_v1 }
 0x18c   : > { %v2093_v59 = vpop.eup %2092  ;;  %v1252_v60 = vadd.f32 1.0, %v2091_v57  ;;  %2112 = vpow2.f32 %v1738_v50  ;;  %v1023_v6 = vadd.f32 %v2393_v17, %v1022_v2  ;;  %v896_v7 = vpop.f32.mrb[57].mxu0  ;;  %v2172_v17 = vld [vmem:[%s2538_s2] ss:$0 sm:$0xff] }
 0x18d   : > { %v2095_v62 = vpop.eup %2094  ;;  %2114 = vrcp.f32 %v1283_v58  ;;  %v1284_v63 = vadd.f32 1.0, %v2093_v59  ;;  %v1024_v8 = vpop.f32.mrb[57].mxu1  ;;  %v1708_v13 = vmul.f32 -1.442695, %v895_v5 }
 0x18e   : > { %v2097_v3 = vpop.eup %2096  ;;  %2116 = vrcp.f32 %v1252_v60  ;;  %v1253_v4 = vadd.f32 1.0, %v2095_v62  ;;  %v897_v10 = vpop.f32.mrb[58].mxu0  ;;  %v1740_v14 = vmul.f32 -1.442695, %v1023_v6 }
 0x18f   : > { %v2099_v9 = vpop.eup %2098  ;;  %1473 = vst [vmem:[%s2414_s8 + $0x1a0] sm:$0xff] %v2097_v3  ;;  %2118 = vrcp.f32 %v1284_v63  ;;  %v1025_v11 = vpop.f32.mrb[58].mxu1  ;;  %v898_v19 = vadd.f32 %v2172_v17, %v897_v10 }
 0x190   : > { %v2101_v12 = vpop.eup %2100  ;;  %1442 = vst [vmem:[%s2414_s8 + $0xa8] sm:$0xff] %v2099_v9  ;;  %2120 = vrcp.f32 %v1253_v4  ;;  %v899_v15 = vpop.f32.mrb[59].mxu0  ;;  %v1026_v23 = vadd.f32 %v2172_v17, %v1025_v11 }
 0x191   : > { %v1027_v16 = vpop.f32.mrb[59].mxu1  ;;  %v2103_v18 = vpop.eup %2102  ;;  %1474 = vst [vmem:[%s2414_s8 + $0x1a8] sm:$0xff] %v2101_v12  ;;  %2122 = vpow2.f32 %v1707_v61  ;;  %v1709_v28 = vmul.f32 -1.442695, %v898_v19 }
 0x192   : > { %v2105_v20 = vpop.eup %2104  ;;  %1443 = vst [vmem:[%s2414_s8 + $0xb0] sm:$0xff] %v2103_v18  ;;  %2124 = vpow2.f32 %v1739_v0  ;;  %v902_v29 = vpop.f32.mrb[60].mxu0  ;;  %v1741_v39 = vmul.f32 -1.442695, %v1026_v23 }
 0x193   : > { %v2107_v21 = vpop.eup %2106  ;;  %v1285_v22 = vadd.f32 1.0, %v2105_v20  ;;  %2126 = vpow2.f32 %v1708_v13  ;;  %v1030_v30 = vpop.f32.mrb[60].mxu1  ;;  %v903_v33 = vadd.f32 %v2172_v17, %v902_v29 }
 0x194   : > { %v2109_v24 = vpop.eup %2108  ;;  %v1254_v25 = vadd.f32 1.0, %v2107_v21  ;;  %2128 = vpow2.f32 %v1740_v14  ;;  %v1031_v34 = vadd.f32 %v2172_v17, %v1030_v30  ;;  %v904_v35 = vpop.f32.mrb[61].mxu0 }
 0x195   : > { %v2111_v26 = vpop.eup %2110  ;;  %2130 = vrcp.f32 %v1285_v22  ;;  %v1286_v27 = vadd.f32 1.0, %v2109_v24  ;;  %v1032_v36 = vpop.f32.mrb[61].mxu1  ;;  %v1710_v43 = vmul.f32 -1.442695, %v903_v33 }
 0x196   : > { %v2113_v31 = vpop.eup %2112  ;;  %2132 = vrcp.f32 %v1254_v25  ;;  %v1255_v32 = vadd.f32 1.0, %v2111_v26  ;;  %v905_v40 = vpop.f32.mrb[62].mxu0  ;;  %v1742_v47 = vmul.f32 -1.442695, %v1031_v34 }
 0x197   : > { %v2115_v37 = vpop.eup %2114  ;;  %2134 = vrcp.f32 %v1286_v27  ;;  %v1287_v38 = vadd.f32 1.0, %v2113_v31  ;;  %v1033_v41 = vpop.f32.mrb[62].mxu1  ;;  %v906_v49 = vadd.f32 %v2172_v17, %v905_v40 }
 0x198   : > { %v2117_v42 = vpop.eup %2116  ;;  %1475 = vst [vmem:[%s2414_s8 + $0x1b0] sm:$0xff] %v2115_v37  ;;  %2136 = vrcp.f32 %v1255_v32  ;;  %v907_v44 = vpop.f32.mrb[63].mxu0  ;;  %v1034_v51 = vadd.f32 %v2172_v17, %v1033_v41 }
 0x199   : > { %v1035_v45 = vpop.f32.mrb[63].mxu1  ;;  %v2119_v46 = vpop.eup %2118  ;;  %1444 = vst [vmem:[%s2414_s8 + $0xb8] sm:$0xff] %v2117_v42  ;;  %2138 = vrcp.f32 %v1287_v38  ;;  %v1711_v58 = vmul.f32 -1.442695, %v906_v49 }
 0x19a   : > { %v2121_v48 = vpop.eup %2120  ;;  %1476 = vst [vmem:[%s2414_s8 + $0x1b8] sm:$0xff] %v2119_v46  ;;  %2140 = vpow2.f32 %v1709_v28  ;;  %v1743_v61 = vmul.f32 -1.442695, %v1034_v51 }
 0x19b   : > { %v2123_v50 = vpop.eup %2122  ;;  %1445 = vst [vmem:[%s2414_s8 + $0xc0] sm:$0xff] %v2121_v48  ;;  %2142 = vpow2.f32 %v1741_v39 }
 0x19c   : > { %v2125_v52 = vpop.eup %2124  ;;  %v1256_v53 = vadd.f32 1.0, %v2123_v50  ;;  %2144 = vpow2.f32 %v1710_v43 }
 0x19d   : > { %v2127_v54 = vpop.eup %2126  ;;  %v1288_v55 = vadd.f32 1.0, %v2125_v52  ;;  %2146 = vpow2.f32 %v1742_v47 }
 0x19e   : > { %v2129_v56 = vpop.eup %2128  ;;  %2148 = vrcp.f32 %v1256_v53  ;;  %v1257_v57 = vadd.f32 1.0, %v2127_v54 }
 0x19f   : > { %v2131_v59 = vpop.eup %2130  ;;  %2150 = vrcp.f32 %v1288_v55  ;;  %v1289_v60 = vadd.f32 1.0, %v2129_v56 }
 0x1a0   : > { %v2133_v62 = vpop.eup %2132  ;;  %1477 = vst [vmem:[%s2414_s8 + $0x1c0] sm:$0xff] %v2131_v59  ;;  %2152 = vrcp.f32 %v1257_v57 }
 0x1a1   : > { %v2135_v63 = vpop.eup %2134  ;;  %1446 = vst [vmem:[%s2414_s8 + $0xc8] sm:$0xff] %v2133_v62  ;;  %2154 = vrcp.f32 %v1289_v60 }
 0x1a2   : > { %v2137_v0 = vpop.eup %2136  ;;  %1478 = vst [vmem:[%s2414_s8 + $0x1c8] sm:$0xff] %v2135_v63  ;;  %2156 = vpow2.f32 %v1711_v58 }
 0x1a3   : > { %v2139_v1 = vpop.eup %2138  ;;  %1447 = vst [vmem:[%s2414_s8 + $0xd0] sm:$0xff] %v2137_v0  ;;  %2158 = vpow2.f32 %v1743_v61 }
 0x1a4   : > { %v2141_v2 = vpop.eup %2140  ;;  %1479 = vst [vmem:[%s2414_s8 + $0x1d0] sm:$0xff] %v2139_v1 }
 0x1a5   : > { %v2143_v3 = vpop.eup %2142  ;;  %v1258_v4 = vadd.f32 1.0, %v2141_v2 }
 0x1a6   : > { %v2145_v5 = vpop.eup %2144  ;;  %v1290_v6 = vadd.f32 1.0, %v2143_v3 }
 0x1a7   : > { %v2147_v7 = vpop.eup %2146  ;;  %2160 = vrcp.f32 %v1258_v4  ;;  %v1259_v8 = vadd.f32 1.0, %v2145_v5 }
 0x1a8   : > { %v2149_v9 = vpop.eup %2148  ;;  %2162 = vrcp.f32 %v1290_v6  ;;  %v1291_v10 = vadd.f32 1.0, %v2147_v7 }
 0x1a9   : > { %v2151_v11 = vpop.eup %2150  ;;  %1448 = vst [vmem:[%s2414_s8 + $0xd8] sm:$0xff] %v2149_v9  ;;  %2164 = vrcp.f32 %v1259_v8 }
 0x1aa   : > { %v2153_v12 = vpop.eup %2152  ;;  %1480 = vst [vmem:[%s2414_s8 + $0x1d8] sm:$0xff] %v2151_v11  ;;  %2166 = vrcp.f32 %v1291_v10 }
 0x1ab   : > { %v2155_v13 = vpop.eup %2154  ;;  %1449 = vst [vmem:[%s2414_s8 + $0xe0] sm:$0xff] %v2153_v12 }
 0x1ac   : > { %v2157_v14 = vpop.eup %2156  ;;  %1481 = vst [vmem:[%s2414_s8 + $0x1e0] sm:$0xff] %v2155_v13 }
 0x1ad   : > { %v2159_v15 = vpop.eup %2158  ;;  %v1260_v16 = vadd.f32 1.0, %v2157_v14 }
 0x1ae   : > { %v1292_v18 = vadd.f32 1.0, %v2159_v15 }
 0x1af   : > { %2168 = vrcp.f32 %v1260_v16 }
 0x1b0   : > { %2170 = vrcp.f32 %v1292_v18 }
 0x1b1   : > { %v2161_v17 = vpop.eup %2160 }
 0x1b2   : > { %v2163_v19 = vpop.eup %2162  ;;  %1450 = vst [vmem:[%s2414_s8 + $0xe8] sm:$0xff] %v2161_v17 }
 0x1b3   : > { %v2165_v20 = vpop.eup %2164  ;;  %1482 = vst [vmem:[%s2414_s8 + $0x1e8] sm:$0xff] %v2163_v19 }
 0x1b4   : > { %v2167_v21 = vpop.eup %2166  ;;  %1451 = vst [vmem:[%s2414_s8 + $0xf0] sm:$0xff] %v2165_v20 }
 0x1b5   : > { %1483 = vst [vmem:[%s2414_s8 + $0x1f0] sm:$0xff] %v2167_v21 }
 0x1b9   : > { %v2169_v22 = vpop.eup %2168 }
 0x1ba   : > { %v2171_v23 = vpop.eup %2170  ;;  %1452 = vst [vmem:[%s2414_s8 + $0xf8] sm:$0xff] %v2169_v22 }
 0x1bb   : > { %1484 = vst [vmem:[%s2414_s8 + $0x1f8] sm:$0xff] %v2171_v23 }
 0x1bc PF: > { %s13_s14 = sadd.s32 1, %s2195_s14   ;;  %s2540_s12 = smov %s2191_s13 }
 0x1bd   : > { %p10_p5 = scmp.ge.s32.totalorder %s13_s14, 4   ;;  %s2541_s13 = smov %s2543_s15 }
 0x1bf   :  { %12 = sbr.rel (!%p10_p5) target bundleno = 2 (0x2), region = 68 }

</bundles_post_ra>
